<compile_context>
chip_gen: v6e
topology: v6e:2x2x1
jax: 0.10.0
libtpu: 0.0.40
codegen_flags: <defaults>
</compile_context>

<pallas_src>
import functools
import math

import jax
import jax.numpy as jnp
from jax.experimental import pallas as pl
from jax.experimental.pallas import tpu as pltpu

BN_EPS = 1e-5


# --------------------------- pass 1: conv + BN stats ---------------------------


def _conv_stats_kernel(x_ref, w1_ref, w2_ref, b2_ref, gamma_ref, beta_ref,
                       y_ref, logit_ref, ss_ref,
                       xwin_ref, patch_ref, mean_ref, m2_ref,
                       *, B, W, Cin, Cout, TH, NRT):
    """Per (batch, row-tile): conv1 via bf16 im2col MXU matmul, conv2 logits
    per tap on the VPU, streamed BN batch statistics (Chan's combine).

    x_ref:     (1, H, W, Cin)      f32  resident per-image input block
    w1_ref:    (9*Cin, Cout)       bf16 conv1 weight, rows ordered (ky,kx,cin)
    w2_ref:    (9, Cin)            f32  conv2 weight per tap
    b2_ref:    (1, 1)              f32  conv2 bias
    gamma/beta:(1, Cout)           f32  BN affine
    y_ref:     (1, TH, W, Cout)    f32  conv1 output tile (pre-BN)
    logit_ref: (1, TH, W)          f32  conv2 logits tile
    ss_ref:    (2, Cout)           f32  folded BN scale/shift (written last step)
    xwin_ref:  (1, TH+2, W+2, Cin) f32  zero-padded window scratch
    patch_ref: (TH*W, 9*Cin)       bf16 im2col scratch
    mean/m2:   (1, Cout)           f32  streaming BN stat accumulators
    """
    b = pl.program_id(0)
    r = pl.program_id(1)
    MT = TH * W
    row0 = pl.multiple_of(r * TH, TH)

    # ---- padded window: halo-only zeroing, interior stored exactly once -----
    zcol = jnp.zeros((1, TH + 2, 1, Cin), jnp.float32)
    xwin_ref[:, :, 0:1, :] = zcol                       # left border
    xwin_ref[:, :, W + 1:W + 2, :] = zcol               # right border

    zrow = jnp.zeros((1, 1, W, Cin), jnp.float32)

    @pl.when(r == 0)                                    # top halo row
    def _():
        xwin_ref[:, 0:1, 1:W + 1, :] = zrow

    @pl.when(r > 0)
    def _():
        xwin_ref[:, 0:1, 1:W + 1, :] = x_ref[:, pl.ds(row0 - 1, 1), :, :]

    @pl.when(r == NRT - 1)                              # bottom halo row
    def _():
        xwin_ref[:, TH + 1:TH + 2, 1:W + 1, :] = zrow

    @pl.when(r < NRT - 1)
    def _():
        xwin_ref[:, TH + 1:TH + 2, 1:W + 1, :] = x_ref[:, pl.ds(row0 + TH, 1), :, :]

    # interior rows of this tile
    xwin_ref[:, 1:TH + 1, 1:W + 1, :] = x_ref[:, pl.ds(row0, TH), :, :]

    # ---- im2col (bf16, written once per tap) + incremental conv2 logits -----
    logit = jnp.zeros((1, TH, W), jnp.float32)
    for dy in range(3):
        for dx in range(3):
            t = dy * 3 + dx
            win = xwin_ref[:, dy:dy + TH, dx:dx + W, :]         # (1,TH,W,Cin) f32
            patch_ref[:, t * Cin:(t + 1) * Cin] = (
                win.reshape(MT, Cin).astype(jnp.bfloat16))
            # conv2 mask logits: per-tap Cin-wide lane reduce on VPU/XLU
            logit = logit + jnp.sum(win * w2_ref[t:t + 1, :], axis=-1)

    logit_ref[...] = logit + b2_ref[...]

    # ---- conv1: big-K MXU matmul (K = 9*Cin), bf16 operands, f32 accumulate --
    # conv1 bias dropped: under train-mode BatchNorm a constant per-channel
    # shift cancels in (x - mean) and does not change the variance.
    acc = jnp.dot(patch_ref[...], w1_ref[...],
                  preferred_element_type=jnp.float32)            # (MT, Cout)
    y_ref[...] = acc.reshape(1, TH, W, Cout)

    # ---- streamed BN batch statistics: Chan's parallel-variance combine ------
    inv_mt = 1.0 / float(MT)
    mean_t = jnp.sum(acc, axis=0, keepdims=True) * inv_mt        # (1, Cout)
    cen = acc - mean_t
    m2_t = jnp.sum(cen * cen, axis=0, keepdims=True)             # (1, Cout)

    idx = b * NRT + r                                            # tiles done so far

    @pl.when(idx == 0)
    def _():
        mean_ref[...] = mean_t
        m2_ref[...] = m2_t

    @pl.when(idx > 0)
    def _():
        n_prev = idx.astype(jnp.float32) * float(MT)
        n_new = n_prev + float(MT)
        delta = mean_t - mean_ref[...]
        mean_ref[...] = mean_ref[...] + delta * (float(MT) / n_new)
        m2_ref[...] = (m2_ref[...] + m2_t
                       + (delta * delta) * (n_prev * float(MT) / n_new))

    # ---- finalize: fold BN into per-channel scale/shift (written once) -------
    @pl.when(idx == B * NRT - 1)
    def _():
        n_total = float(B * NRT * MT)
        var = m2_ref[...] * (1.0 / n_total)                      # biased (train BN)
        scale = gamma_ref[...] * jax.lax.rsqrt(var + BN_EPS)
        ss_ref[0:1, :] = scale
        ss_ref[1:2, :] = beta_ref[...] - mean_ref[...] * scale


# ----------------- pass 2: fused normalize + sigmoid mask + store --------------


def _norm_mask_kernel(y_ref, logit_ref, ss_ref, out_ref):
    """out = (y * scale + shift) * sigmoid(logit); single read-modify-write sweep."""
    scale = ss_ref[0:1, :]                                       # (1, Cout)
    shift = ss_ref[1:2, :]
    # sigmoid = EUP exp + EUP approx reciprocal (VALU slots stay free)
    mask = pl.reciprocal(1.0 + jnp.exp(-logit_ref[...]), approx=True)  # (1,TH,W)
    out_ref[...] = (y_ref[...] * scale + shift) * mask[..., None]


# ----------------------------------- wrapper -----------------------------------


def _vmem_capacity_bytes():
    try:
        return int(pltpu.get_tpu_info().vmem_capacity_bytes)
    except Exception:
        return 64 * 1024 * 1024          # v7x-safe fallback


def _choose_tile_h(H, W, Cin, Cout, vmem_cap):
    """Largest row-tile TH (divisor of H, multiple of 8 or == H) under budget."""
    budget = vmem_cap // 2               # leave headroom for double-buffering etc.
    candidates = [th for th in range(H, 0, -1)
                  if H % th == 0 and (th % 8 == 0 or th == H)]
    for th in candidates:
        mt = th * W
        need = (2 * H * W * Cin * 4          # resident input image block (x2 buf)
                + 2 * mt * Cout * 4          # conv1 output tile (x2 buf)
                + 2 * mt * 4                 # logit tile
                + (th + 2) * (W + 2) * Cin * 4
                + mt * 9 * Cin * 2           # bf16 im2col
                + 9 * Cin * Cout * 2 + 9 * Cin * 4 + 32 * Cout)
        if need <= budget:
            return th
    return candidates[-1]


def mask_atten_forward(x_nchw, params, *, tile_h=None):
    """MaskAtten.forward. x_nchw: (B, Cin, H, W) f32; params in PyTorch layouts."""
    w1, b1, gamma, beta, w2, b2 = params
    del b1  # no-op under train-mode BN (cancels in x - mean); see kernel comment.
    B, Cin, H, W = x_nchw.shape
    Cout = w1.shape[0]
    K = 9 * Cin

    vmem_cap = _vmem_capacity_bytes()
    TH = tile_h if tile_h is not None else _choose_tile_h(H, W, Cin, Cout, vmem_cap)
    assert H % TH == 0 and (TH % 8 == 0 or TH == H), (H, TH)
    NRT = H // TH
    MT = TH * W
    vmem_limit = int(min(0.9 * vmem_cap, 128 * 1024 * 1024))

    # Layout plumbing (thin XLA ops outside the kernels).
    x = jnp.transpose(x_nchw, (0, 2, 3, 1)).astype(jnp.float32)            # NHWC
    w1r = jnp.transpose(w1, (2, 3, 1, 0)).reshape(K, Cout).astype(jnp.bfloat16)
    w2r = jnp.transpose(w2[0], (1, 2, 0)).reshape(9, Cin).astype(jnp.float32)
    b2r = b2.reshape(1, 1).astype(jnp.float32)
    gr = gamma.reshape(1, Cout).astype(jnp.float32)
    br = beta.reshape(1, Cout).astype(jnp.float32)

    # ---- pass 1: conv1 + conv2 logits + streamed BN stats ---------------------
    y, logits, ss = pl.pallas_call(
        functools.partial(_conv_stats_kernel, B=B, W=W, Cin=Cin, Cout=Cout,
                          TH=TH, NRT=NRT),
        grid=(B, NRT),
        in_specs=[
            pl.BlockSpec((1, H, W, Cin), lambda b, r: (b, 0, 0, 0)),   # resident/image
            pl.BlockSpec((K, Cout), lambda b, r: (0, 0)),
            pl.BlockSpec((9, Cin), lambda b, r: (0, 0)),
            pl.BlockSpec((1, 1), lambda b, r: (0, 0)),
            pl.BlockSpec((1, Cout), lambda b, r: (0, 0)),
            pl.BlockSpec((1, Cout), lambda b, r: (0, 0)),
        ],
        out_specs=[
            pl.BlockSpec((1, TH, W, Cout), lambda b, r: (b, r, 0, 0)),
            pl.BlockSpec((1, TH, W), lambda b, r: (b, r, 0)),
            pl.BlockSpec((2, Cout), lambda b, r: (0, 0)),
        ],
        out_shape=[
            jax.ShapeDtypeStruct((B, H, W, Cout), jnp.float32),        # conv1 (pre-BN)
            jax.ShapeDtypeStruct((B, H, W), jnp.float32),              # conv2 logits
            jax.ShapeDtypeStruct((2, Cout), jnp.float32),              # BN scale/shift
        ],
        scratch_shapes=[
            pltpu.VMEM((1, TH + 2, W + 2, Cin), jnp.float32),          # padded window
            pltpu.VMEM((MT, K), jnp.bfloat16),                         # bf16 im2col
            pltpu.VMEM((1, Cout), jnp.float32),                        # running mean
            pltpu.VMEM((1, Cout), jnp.float32),                        # running M2
        ],
        compiler_params=pltpu.CompilerParams(
            dimension_semantics=("arbitrary", "arbitrary"),            # stats reduce
            vmem_limit_bytes=vmem_limit),
        cost_estimate=pl.CostEstimate(
            flops=int(2 * B * H * W * K * Cout + 2 * B * H * W * K
                      + 6 * B * H * W * Cout),
            transcendentals=0,
            bytes_accessed=int(4 * x.size + 4 * B * H * W * (Cout + 1)
                               + 2 * w1r.size)),
    )(x, w1r, w2r, b2r, gr, br)

    # ---- pass 2: fused normalize + sigmoid-mask + multiply + store ------------
    out = pl.pallas_call(
        _norm_mask_kernel,
        grid=(B, NRT),
        in_specs=[
            pl.BlockSpec((1, TH, W, Cout), lambda b, r: (b, r, 0, 0)),
            pl.BlockSpec((1, TH, W), lambda b, r: (b, r, 0)),
            pl.BlockSpec((2, Cout), lambda b, r: (0, 0)),
        ],
        out_specs=pl.BlockSpec((1, TH, W, Cout), lambda b, r: (b, r, 0, 0)),
        out_shape=jax.ShapeDtypeStruct((B, H, W, Cout), jnp.float32),
        compiler_params=pltpu.CompilerParams(
            dimension_semantics=("parallel", "parallel"),              # megacore-able
            vmem_limit_bytes=vmem_limit),
        cost_estimate=pl.CostEstimate(
            flops=int(6 * B * H * W * Cout),
            transcendentals=int(2 * B * H * W),
            bytes_accessed=int(8 * B * H * W * Cout + 4 * B * H * W)),
    )(y, logits, ss)

    return jnp.transpose(out, (0, 3, 1, 2))                            # NCHW


# ------------------------------ pure-JAX reference ------------------------------


def ref_forward(x_nchw, params):
    w1, b1, gamma, beta, w2, b2 = params
    dn = ('NCHW', 'OIHW', 'NCHW')
    hi = jax.lax.Precision.HIGHEST

    y1 = jax.lax.conv_general_dilated(x_nchw, w1, (1, 1), 'SAME',
                                      dimension_numbers=dn, precision=hi)
    y1 = y1 + b1[None, :, None, None]
    mean = jnp.mean(y1, axis=(0, 2, 3), keepdims=True)
    var = jnp.mean((y1 - mean) ** 2, axis=(0, 2, 3), keepdims=True)  # biased (train)
    y1 = (y1 - mean) * jax.lax.rsqrt(var + BN_EPS)
    y1 = y1 * gamma[None, :, None, None] + beta[None, :, None, None]

    s = jax.lax.conv_general_dilated(x_nchw, w2, (1, 1), 'SAME',
                                     dimension_numbers=dn, precision=hi)
    s = s + b2[None, :, None, None]
    return y1 * jax.nn.sigmoid(s)


# ------------------------------------ main ---------------------------------------


if __name__ == "__main__":
    B, Cin, Cout, H, W = 2, 32, 128, 16, 16

    key = jax.random.PRNGKey(0)
    ks = jax.random.split(key, 7)
    bound = 1.0 / math.sqrt(Cin * 9)

    x = jax.random.normal(ks[0], (B, Cin, H, W), jnp.float32)
    w1 = jax.random.uniform(ks[1], (Cout, Cin, 3, 3), jnp.float32, -bound, bound)
    b1 = jax.random.uniform(ks[2], (Cout,), jnp.float32, -bound, bound)
    gamma = 1.0 + 0.1 * jax.random.normal(ks[3], (Cout,), jnp.float32)
    beta = 0.1 * jax.random.normal(ks[4], (Cout,), jnp.float32)
    w2 = jax.random.uniform(ks[5], (1, Cin, 3, 3), jnp.float32, -bound, bound)
    b2 = jax.random.uniform(ks[6], (1,), jnp.float32, -bound, bound)
    params = (w1, b1, gamma, beta, w2, b2)

    # tile_h=8 forces a (B=2, NRT=2) grid so the halo / Chan-combine paths are
    # exercised even at this small demo size.
    out = jax.block_until_ready(mask_atten_forward(x, params, tile_h=8))
    ref = jax.block_until_ready(ref_forward(x, params))

    assert out.shape == ref.shape == (B, Cout, H, W) and out.dtype == ref.dtype
    max_err = float(jnp.max(jnp.abs(out - ref)))
    # bf16 MXU operands (f32 accumulation) + approx EUP reciprocal, validated
    # against an f32 HIGHEST reference with a correspondingly relaxed tolerance.
    assert jnp.allclose(out, ref, atol=2e-2, rtol=2e-2), max_err

    print("KERNEL_OK")
</pallas_src>

<mosaic_0001>
module attributes {stable_mosaic.version = 11 : i64} {
  func.func @_conv_stats_kernel(%arg0: i32, %arg1: i32, %arg2: memref<1x16x16x32xf32, #tpu.memory_space<vmem>>, %arg3: memref<288x128xbf16, #tpu.memory_space<vmem>>, %arg4: memref<9x32xf32, #tpu.memory_space<vmem>>, %arg5: memref<1x1xf32, #tpu.memory_space<vmem>>, %arg6: memref<1x128xf32, #tpu.memory_space<vmem>>, %arg7: memref<1x128xf32, #tpu.memory_space<vmem>>, %arg8: memref<1x8x16x128xf32, #tpu.memory_space<vmem>>, %arg9: memref<1x8x16xf32, #tpu.memory_space<vmem>>, %arg10: memref<2x128xf32, #tpu.memory_space<vmem>>, %arg11: memref<1x10x18x32xf32, #tpu.memory_space<vmem>>, %arg12: memref<128x288xbf16, #tpu.memory_space<vmem>>, %arg13: memref<1x128xf32, #tpu.memory_space<vmem>>, %arg14: memref<1x128xf32, #tpu.memory_space<vmem>>) attributes {dimension_semantics = [#tpu.dimension_semantics<arbitrary>, #tpu.dimension_semantics<arbitrary>], iteration_bounds = array<i64: 2, 2>, scalar_prefetch = 0 : i64, scratch_operands = 4 : i64, tpu.core_type = #tpu.core_type<tc>, window_params = [{transform_indices = @transform_0, window_bounds = array<i64: 1, 16, 16, 32>}, {pipeline_mode = #tpu.pipeline_mode<synchronous>, transform_indices = @transform_1, window_bounds = array<i64: 288, 128>}, {pipeline_mode = #tpu.pipeline_mode<synchronous>, transform_indices = @transform_2, window_bounds = array<i64: 9, 32>}, {pipeline_mode = #tpu.pipeline_mode<synchronous>, transform_indices = @transform_3, window_bounds = array<i64: 1, 1>}, {pipeline_mode = #tpu.pipeline_mode<synchronous>, transform_indices = @transform_4, window_bounds = array<i64: 1, 128>}, {pipeline_mode = #tpu.pipeline_mode<synchronous>, transform_indices = @transform_5, window_bounds = array<i64: 1, 128>}, {transform_indices = @transform_6, window_bounds = array<i64: 1, 8, 16, 128>}, {transform_indices = @transform_7, window_bounds = array<i64: 1, 8, 16>}, {pipeline_mode = #tpu.pipeline_mode<synchronous>, transform_indices = @transform_8, window_bounds = array<i64: 2, 128>}]} {
    %c8_i32 = arith.constant 8 : i32
    %0 = arith.muli %arg1, %c8_i32 : i32
    %1 = tpu.assume_multiple %0, 8 : i32
    %cst = arith.constant 0.000000e+00 : f32
    %2 = vector.broadcast %cst : f32 to vector<1x10x1x32xf32>
    %c0 = arith.constant 0 : index
    %c0_0 = arith.constant 0 : index
    %c0_1 = arith.constant 0 : index
    %c0_2 = arith.constant 0 : index
    %3 = vector.load %arg11[%c0, %c0_0, %c0_1, %c0_2] : memref<1x10x18x32xf32, #tpu.memory_space<vmem>>, vector<1x10x1x32xf32>
    tpu.vector_store %arg11[%c0, %c0_0, %c0_1, %c0_2], %2 {strides = array<i32>} : memref<1x10x18x32xf32, #tpu.memory_space<vmem>>, vector<1x10x1x32xf32>,
    %c0_3 = arith.constant 0 : index
    %c0_4 = arith.constant 0 : index
    %c17 = arith.constant 17 : index
    %c0_5 = arith.constant 0 : index
    %4 = vector.load %arg11[%c0_3, %c0_4, %c17, %c0_5] : memref<1x10x18x32xf32, #tpu.memory_space<vmem>>, vector<1x10x1x32xf32>
    tpu.vector_store %arg11[%c0_3, %c0_4, %c17, %c0_5], %2 {strides = array<i32>} : memref<1x10x18x32xf32, #tpu.memory_space<vmem>>, vector<1x10x1x32xf32>,
    %cst_6 = arith.constant 0.000000e+00 : f32
    %5 = vector.broadcast %cst_6 : f32 to vector<1x1x16x32xf32>
    %c0_i32 = arith.constant 0 : i32
    %6 = arith.cmpi eq, %arg1, %c0_i32 : i32
    %7 = arith.extui %6 : i1 to i32
    %c0_i32_7 = arith.constant 0 : i32
    %8 = arith.cmpi ne, %7, %c0_i32_7 : i32
    scf.if %8 {
      %c0_108 = arith.constant 0 : index
      %c0_109 = arith.constant 0 : index
      %c1_110 = arith.constant 1 : index
      %c0_111 = arith.constant 0 : index
      %142 = vector.load %arg11[%c0_108, %c0_109, %c1_110, %c0_111] : memref<1x10x18x32xf32, #tpu.memory_space<vmem>>, vector<1x1x16x32xf32>
      tpu.vector_store %arg11[%c0_108, %c0_109, %c1_110, %c0_111], %5 {strides = array<i32>} : memref<1x10x18x32xf32, #tpu.memory_space<vmem>>, vector<1x1x16x32xf32>,
    } else {
    }
    %c0_i32_8 = arith.constant 0 : i32
    %9 = arith.cmpi sgt, %arg1, %c0_i32_8 : i32
    %10 = arith.extui %9 : i1 to i32
    %c0_i32_9 = arith.constant 0 : i32
    %11 = arith.cmpi ne, %10, %c0_i32_9 : i32
    scf.if %11 {
      %c1_i32_108 = arith.constant 1 : i32
      %142 = arith.subi %1, %c1_i32_108 : i32
      %c0_109 = arith.constant 0 : index
      %143 = arith.index_cast %142 : i32 to index
      %c0_110 = arith.constant 0 : index
      %c0_111 = arith.constant 0 : index
      %144 = vector.load %arg2[%c0_109, %143, %c0_110, %c0_111] : memref<1x16x16x32xf32, #tpu.memory_space<vmem>>, vector<1x1x16x32xf32>
      %c0_112 = arith.constant 0 : index
      %c0_113 = arith.constant 0 : index
      %c1_114 = arith.constant 1 : index
      %c0_115 = arith.constant 0 : index
      %145 = vector.load %arg11[%c0_112, %c0_113, %c1_114, %c0_115] : memref<1x10x18x32xf32, #tpu.memory_space<vmem>>, vector<1x1x16x32xf32>
      tpu.vector_store %arg11[%c0_112, %c0_113, %c1_114, %c0_115], %144 {strides = array<i32>} : memref<1x10x18x32xf32, #tpu.memory_space<vmem>>, vector<1x1x16x32xf32>,
    } else {
    }
    %c1_i32 = arith.constant 1 : i32
    %12 = arith.cmpi eq, %arg1, %c1_i32 : i32
    %13 = arith.extui %12 : i1 to i32
    %c0_i32_10 = arith.constant 0 : i32
    %14 = arith.cmpi ne, %13, %c0_i32_10 : i32
    scf.if %14 {
      %c0_108 = arith.constant 0 : index
      %c9 = arith.constant 9 : index
      %c1_109 = arith.constant 1 : index
      %c0_110 = arith.constant 0 : index
      %142 = vector.load %arg11[%c0_108, %c9, %c1_109, %c0_110] : memref<1x10x18x32xf32, #tpu.memory_space<vmem>>, vector<1x1x16x32xf32>
      tpu.vector_store %arg11[%c0_108, %c9, %c1_109, %c0_110], %5 {strides = array<i32>} : memref<1x10x18x32xf32, #tpu.memory_space<vmem>>, vector<1x1x16x32xf32>,
    } else {
    }
    %c1_i32_11 = arith.constant 1 : i32
    %15 = arith.cmpi slt, %arg1, %c1_i32_11 : i32
    %16 = arith.extui %15 : i1 to i32
    %c0_i32_12 = arith.constant 0 : i32
    %17 = arith.cmpi ne, %16, %c0_i32_12 : i32
    scf.if %17 {
      %c8_i32_108 = arith.constant 8 : i32
      %142 = arith.addi %1, %c8_i32_108 : i32
      %c0_109 = arith.constant 0 : index
      %143 = arith.index_cast %142 : i32 to index
      %c0_110 = arith.constant 0 : index
      %c0_111 = arith.constant 0 : index
      %144 = vector.load %arg2[%c0_109, %143, %c0_110, %c0_111] : memref<1x16x16x32xf32, #tpu.memory_space<vmem>>, vector<1x1x16x32xf32>
      %c0_112 = arith.constant 0 : index
      %c9 = arith.constant 9 : index
      %c1_113 = arith.constant 1 : index
      %c0_114 = arith.constant 0 : index
      %145 = vector.load %arg11[%c0_112, %c9, %c1_113, %c0_114] : memref<1x10x18x32xf32, #tpu.memory_space<vmem>>, vector<1x1x16x32xf32>
      tpu.vector_store %arg11[%c0_112, %c9, %c1_113, %c0_114], %144 {strides = array<i32>} : memref<1x10x18x32xf32, #tpu.memory_space<vmem>>, vector<1x1x16x32xf32>,
    } else {
    }
    %c0_13 = arith.constant 0 : index
    %18 = arith.index_cast %1 : i32 to index
    %c0_14 = arith.constant 0 : index
    %c0_15 = arith.constant 0 : index
    %19 = vector.load %arg2[%c0_13, %18, %c0_14, %c0_15] : memref<1x16x16x32xf32, #tpu.memory_space<vmem>>, vector<1x8x16x32xf32>
    %c0_16 = arith.constant 0 : index
    %c1 = arith.constant 1 : index
    %c1_17 = arith.constant 1 : index
    %c0_18 = arith.constant 0 : index
    %20 = vector.load %arg11[%c0_16, %c1, %c1_17, %c0_18] : memref<1x10x18x32xf32, #tpu.memory_space<vmem>>, vector<1x8x16x32xf32>
    tpu.vector_store %arg11[%c0_16, %c1, %c1_17, %c0_18], %19 {strides = array<i32>} : memref<1x10x18x32xf32, #tpu.memory_space<vmem>>, vector<1x8x16x32xf32>,
    %cst_19 = arith.constant 0.000000e+00 : f32
    %21 = vector.broadcast %cst_19 : f32 to vector<1x8x16xf32>
    %c0_20 = arith.constant 0 : index
    %c0_21 = arith.constant 0 : index
    %c0_22 = arith.constant 0 : index
    %c0_23 = arith.constant 0 : index
    %22 = vector.load %arg11[%c0_20, %c0_21, %c0_22, %c0_23] : memref<1x10x18x32xf32, #tpu.memory_space<vmem>>, vector<1x8x16x32xf32>
    %23 = vector.shape_cast %22 : vector<1x8x16x32xf32> to vector<128x32xf32>
    %24 = arith.truncf %23 : vector<128x32xf32> to vector<128x32xbf16>
    %c0_24 = arith.constant 0 : index
    %c0_25 = arith.constant 0 : index
    %25 = vector.load %arg12[%c0_24, %c0_25] : memref<128x288xbf16, #tpu.memory_space<vmem>>, vector<128x32xbf16>
    tpu.vector_store %arg12[%c0_24, %c0_25], %24 {strides = array<i32>} : memref<128x288xbf16, #tpu.memory_space<vmem>>, vector<128x32xbf16>,
    %c0_26 = arith.constant 0 : index
    %c0_27 = arith.constant 0 : index
    %26 = vector.load %arg4[%c0_26, %c0_27] : memref<9x32xf32, #tpu.memory_space<vmem>>, vector<1x32xf32>
    %27 = vector.shape_cast %26 : vector<1x32xf32> to vector<1x1x1x32xf32>
    %28 = vector.broadcast %27 : vector<1x1x1x32xf32> to vector<1x8x16x32xf32>
    %29 = arith.mulf %22, %28 : vector<1x8x16x32xf32>
    %cst_28 = arith.constant dense<0.000000e+00> : vector<1x8x16xf32>
    %30 = vector.multi_reduction <add>, %29, %cst_28 [3] : vector<1x8x16x32xf32> to vector<1x8x16xf32>
    %31 = arith.addf %21, %30 : vector<1x8x16xf32>
    %c0_29 = arith.constant 0 : index
    %c0_30 = arith.constant 0 : index
    %c1_31 = arith.constant 1 : index
    %c0_32 = arith.constant 0 : index
    %32 = vector.load %arg11[%c0_29, %c0_30, %c1_31, %c0_32] : memref<1x10x18x32xf32, #tpu.memory_space<vmem>>, vector<1x8x16x32xf32>
    %33 = vector.shape_cast %32 : vector<1x8x16x32xf32> to vector<128x32xf32>
    %34 = arith.truncf %33 : vector<128x32xf32> to vector<128x32xbf16>
    %c0_33 = arith.constant 0 : index
    %c32 = arith.constant 32 : index
    %35 = vector.load %arg12[%c0_33, %c32] : memref<128x288xbf16, #tpu.memory_space<vmem>>, vector<128x32xbf16>
    tpu.vector_store %arg12[%c0_33, %c32], %34 {strides = array<i32>} : memref<128x288xbf16, #tpu.memory_space<vmem>>, vector<128x32xbf16>,
    %c1_34 = arith.constant 1 : index
    %c0_35 = arith.constant 0 : index
    %36 = vector.load %arg4[%c1_34, %c0_35] : memref<9x32xf32, #tpu.memory_space<vmem>>, vector<1x32xf32>
    %37 = vector.shape_cast %36 : vector<1x32xf32> to vector<1x1x1x32xf32>
    %38 = vector.broadcast %37 : vector<1x1x1x32xf32> to vector<1x8x16x32xf32>
    %39 = arith.mulf %32, %38 : vector<1x8x16x32xf32>
    %cst_36 = arith.constant dense<0.000000e+00> : vector<1x8x16xf32>
    %40 = vector.multi_reduction <add>, %39, %cst_36 [3] : vector<1x8x16x32xf32> to vector<1x8x16xf32>
    %41 = arith.addf %31, %40 : vector<1x8x16xf32>
    %c0_37 = arith.constant 0 : index
    %c0_38 = arith.constant 0 : index
    %c2 = arith.constant 2 : index
    %c0_39 = arith.constant 0 : index
    %42 = vector.load %arg11[%c0_37, %c0_38, %c2, %c0_39] : memref<1x10x18x32xf32, #tpu.memory_space<vmem>>, vector<1x8x16x32xf32>
    %43 = vector.shape_cast %42 : vector<1x8x16x32xf32> to vector<128x32xf32>
    %44 = arith.truncf %43 : vector<128x32xf32> to vector<128x32xbf16>
    %c0_40 = arith.constant 0 : index
    %c64 = arith.constant 64 : index
    %45 = vector.load %arg12[%c0_40, %c64] : memref<128x288xbf16, #tpu.memory_space<vmem>>, vector<128x32xbf16>
    tpu.vector_store %arg12[%c0_40, %c64], %44 {strides = array<i32>} : memref<128x288xbf16, #tpu.memory_space<vmem>>, vector<128x32xbf16>,
    %c2_41 = arith.constant 2 : index
    %c0_42 = arith.constant 0 : index
    %46 = vector.load %arg4[%c2_41, %c0_42] : memref<9x32xf32, #tpu.memory_space<vmem>>, vector<1x32xf32>
    %47 = vector.shape_cast %46 : vector<1x32xf32> to vector<1x1x1x32xf32>
    %48 = vector.broadcast %47 : vector<1x1x1x32xf32> to vector<1x8x16x32xf32>
    %49 = arith.mulf %42, %48 : vector<1x8x16x32xf32>
    %cst_43 = arith.constant dense<0.000000e+00> : vector<1x8x16xf32>
    %50 = vector.multi_reduction <add>, %49, %cst_43 [3] : vector<1x8x16x32xf32> to vector<1x8x16xf32>
    %51 = arith.addf %41, %50 : vector<1x8x16xf32>
    %c0_44 = arith.constant 0 : index
    %c1_45 = arith.constant 1 : index
    %c0_46 = arith.constant 0 : index
    %c0_47 = arith.constant 0 : index
    %52 = vector.load %arg11[%c0_44, %c1_45, %c0_46, %c0_47] : memref<1x10x18x32xf32, #tpu.memory_space<vmem>>, vector<1x8x16x32xf32>
    %53 = vector.shape_cast %52 : vector<1x8x16x32xf32> to vector<128x32xf32>
    %54 = arith.truncf %53 : vector<128x32xf32> to vector<128x32xbf16>
    %c0_48 = arith.constant 0 : index
    %c96 = arith.constant 96 : index
    %55 = vector.load %arg12[%c0_48, %c96] : memref<128x288xbf16, #tpu.memory_space<vmem>>, vector<128x32xbf16>
    tpu.vector_store %arg12[%c0_48, %c96], %54 {strides = array<i32>} : memref<128x288xbf16, #tpu.memory_space<vmem>>, vector<128x32xbf16>,
    %c3 = arith.constant 3 : index
    %c0_49 = arith.constant 0 : index
    %56 = vector.load %arg4[%c3, %c0_49] : memref<9x32xf32, #tpu.memory_space<vmem>>, vector<1x32xf32>
    %57 = vector.shape_cast %56 : vector<1x32xf32> to vector<1x1x1x32xf32>
    %58 = vector.broadcast %57 : vector<1x1x1x32xf32> to vector<1x8x16x32xf32>
    %59 = arith.mulf %52, %58 : vector<1x8x16x32xf32>
    %cst_50 = arith.constant dense<0.000000e+00> : vector<1x8x16xf32>
    %60 = vector.multi_reduction <add>, %59, %cst_50 [3] : vector<1x8x16x32xf32> to vector<1x8x16xf32>
    %61 = arith.addf %51, %60 : vector<1x8x16xf32>
    %c0_51 = arith.constant 0 : index
    %c1_52 = arith.constant 1 : index
    %c1_53 = arith.constant 1 : index
    %c0_54 = arith.constant 0 : index
    %62 = vector.load %arg11[%c0_51, %c1_52, %c1_53, %c0_54] : memref<1x10x18x32xf32, #tpu.memory_space<vmem>>, vector<1x8x16x32xf32>
    %63 = vector.shape_cast %62 : vector<1x8x16x32xf32> to vector<128x32xf32>
    %64 = arith.truncf %63 : vector<128x32xf32> to vector<128x32xbf16>
    %c0_55 = arith.constant 0 : index
    %c128 = arith.constant 128 : index
    %65 = vector.load %arg12[%c0_55, %c128] : memref<128x288xbf16, #tpu.memory_space<vmem>>, vector<128x32xbf16>
    tpu.vector_store %arg12[%c0_55, %c128], %64 {strides = array<i32>} : memref<128x288xbf16, #tpu.memory_space<vmem>>, vector<128x32xbf16>,
    %c4 = arith.constant 4 : index
    %c0_56 = arith.constant 0 : index
    %66 = vector.load %arg4[%c4, %c0_56] : memref<9x32xf32, #tpu.memory_space<vmem>>, vector<1x32xf32>
    %67 = vector.shape_cast %66 : vector<1x32xf32> to vector<1x1x1x32xf32>
    %68 = vector.broadcast %67 : vector<1x1x1x32xf32> to vector<1x8x16x32xf32>
    %69 = arith.mulf %62, %68 : vector<1x8x16x32xf32>
    %cst_57 = arith.constant dense<0.000000e+00> : vector<1x8x16xf32>
    %70 = vector.multi_reduction <add>, %69, %cst_57 [3] : vector<1x8x16x32xf32> to vector<1x8x16xf32>
    %71 = arith.addf %61, %70 : vector<1x8x16xf32>
    %c0_58 = arith.constant 0 : index
    %c1_59 = arith.constant 1 : index
    %c2_60 = arith.constant 2 : index
    %c0_61 = arith.constant 0 : index
    %72 = vector.load %arg11[%c0_58, %c1_59, %c2_60, %c0_61] : memref<1x10x18x32xf32, #tpu.memory_space<vmem>>, vector<1x8x16x32xf32>
    %73 = vector.shape_cast %72 : vector<1x8x16x32xf32> to vector<128x32xf32>
    %74 = arith.truncf %73 : vector<128x32xf32> to vector<128x32xbf16>
    %c0_62 = arith.constant 0 : index
    %c160 = arith.constant 160 : index
    %75 = vector.load %arg12[%c0_62, %c160] : memref<128x288xbf16, #tpu.memory_space<vmem>>, vector<128x32xbf16>
    tpu.vector_store %arg12[%c0_62, %c160], %74 {strides = array<i32>} : memref<128x288xbf16, #tpu.memory_space<vmem>>, vector<128x32xbf16>,
    %c5 = arith.constant 5 : index
    %c0_63 = arith.constant 0 : index
    %76 = vector.load %arg4[%c5, %c0_63] : memref<9x32xf32, #tpu.memory_space<vmem>>, vector<1x32xf32>
    %77 = vector.shape_cast %76 : vector<1x32xf32> to vector<1x1x1x32xf32>
    %78 = vector.broadcast %77 : vector<1x1x1x32xf32> to vector<1x8x16x32xf32>
    %79 = arith.mulf %72, %78 : vector<1x8x16x32xf32>
    %cst_64 = arith.constant dense<0.000000e+00> : vector<1x8x16xf32>
    %80 = vector.multi_reduction <add>, %79, %cst_64 [3] : vector<1x8x16x32xf32> to vector<1x8x16xf32>
    %81 = arith.addf %71, %80 : vector<1x8x16xf32>
    %c0_65 = arith.constant 0 : index
    %c2_66 = arith.constant 2 : index
    %c0_67 = arith.constant 0 : index
    %c0_68 = arith.constant 0 : index
    %82 = vector.load %arg11[%c0_65, %c2_66, %c0_67, %c0_68] : memref<1x10x18x32xf32, #tpu.memory_space<vmem>>, vector<1x8x16x32xf32>
    %83 = vector.shape_cast %82 : vector<1x8x16x32xf32> to vector<128x32xf32>
    %84 = arith.truncf %83 : vector<128x32xf32> to vector<128x32xbf16>
    %c0_69 = arith.constant 0 : index
    %c192 = arith.constant 192 : index
    %85 = vector.load %arg12[%c0_69, %c192] : memref<128x288xbf16, #tpu.memory_space<vmem>>, vector<128x32xbf16>
    tpu.vector_store %arg12[%c0_69, %c192], %84 {strides = array<i32>} : memref<128x288xbf16, #tpu.memory_space<vmem>>, vector<128x32xbf16>,
    %c6 = arith.constant 6 : index
    %c0_70 = arith.constant 0 : index
    %86 = vector.load %arg4[%c6, %c0_70] : memref<9x32xf32, #tpu.memory_space<vmem>>, vector<1x32xf32>
    %87 = vector.shape_cast %86 : vector<1x32xf32> to vector<1x1x1x32xf32>
    %88 = vector.broadcast %87 : vector<1x1x1x32xf32> to vector<1x8x16x32xf32>
    %89 = arith.mulf %82, %88 : vector<1x8x16x32xf32>
    %cst_71 = arith.constant dense<0.000000e+00> : vector<1x8x16xf32>
    %90 = vector.multi_reduction <add>, %89, %cst_71 [3] : vector<1x8x16x32xf32> to vector<1x8x16xf32>
    %91 = arith.addf %81, %90 : vector<1x8x16xf32>
    %c0_72 = arith.constant 0 : index
    %c2_73 = arith.constant 2 : index
    %c1_74 = arith.constant 1 : index
    %c0_75 = arith.constant 0 : index
    %92 = vector.load %arg11[%c0_72, %c2_73, %c1_74, %c0_75] : memref<1x10x18x32xf32, #tpu.memory_space<vmem>>, vector<1x8x16x32xf32>
    %93 = vector.shape_cast %92 : vector<1x8x16x32xf32> to vector<128x32xf32>
    %94 = arith.truncf %93 : vector<128x32xf32> to vector<128x32xbf16>
    %c0_76 = arith.constant 0 : index
    %c224 = arith.constant 224 : index
    %95 = vector.load %arg12[%c0_76, %c224] : memref<128x288xbf16, #tpu.memory_space<vmem>>, vector<128x32xbf16>
    tpu.vector_store %arg12[%c0_76, %c224], %94 {strides = array<i32>} : memref<128x288xbf16, #tpu.memory_space<vmem>>, vector<128x32xbf16>,
    %c7 = arith.constant 7 : index
    %c0_77 = arith.constant 0 : index
    %96 = vector.load %arg4[%c7, %c0_77] : memref<9x32xf32, #tpu.memory_space<vmem>>, vector<1x32xf32>
    %97 = vector.shape_cast %96 : vector<1x32xf32> to vector<1x1x1x32xf32>
    %98 = vector.broadcast %97 : vector<1x1x1x32xf32> to vector<1x8x16x32xf32>
    %99 = arith.mulf %92, %98 : vector<1x8x16x32xf32>
    %cst_78 = arith.constant dense<0.000000e+00> : vector<1x8x16xf32>
    %100 = vector.multi_reduction <add>, %99, %cst_78 [3] : vector<1x8x16x32xf32> to vector<1x8x16xf32>
    %101 = arith.addf %91, %100 : vector<1x8x16xf32>
    %c0_79 = arith.constant 0 : index
    %c2_80 = arith.constant 2 : index
    %c2_81 = arith.constant 2 : index
    %c0_82 = arith.constant 0 : index
    %102 = vector.load %arg11[%c0_79, %c2_80, %c2_81, %c0_82] : memref<1x10x18x32xf32, #tpu.memory_space<vmem>>, vector<1x8x16x32xf32>
    %103 = vector.shape_cast %102 : vector<1x8x16x32xf32> to vector<128x32xf32>
    %104 = arith.truncf %103 : vector<128x32xf32> to vector<128x32xbf16>
    %c0_83 = arith.constant 0 : index
    %c256 = arith.constant 256 : index
    %105 = vector.load %arg12[%c0_83, %c256] : memref<128x288xbf16, #tpu.memory_space<vmem>>, vector<128x32xbf16>
    tpu.vector_store %arg12[%c0_83, %c256], %104 {strides = array<i32>} : memref<128x288xbf16, #tpu.memory_space<vmem>>, vector<128x32xbf16>,
    %c8 = arith.constant 8 : index
    %c0_84 = arith.constant 0 : index
    %106 = vector.load %arg4[%c8, %c0_84] : memref<9x32xf32, #tpu.memory_space<vmem>>, vector<1x32xf32>
    %107 = vector.shape_cast %106 : vector<1x32xf32> to vector<1x1x1x32xf32>
    %108 = vector.broadcast %107 : vector<1x1x1x32xf32> to vector<1x8x16x32xf32>
    %109 = arith.mulf %102, %108 : vector<1x8x16x32xf32>
    %cst_85 = arith.constant dense<0.000000e+00> : vector<1x8x16xf32>
    %110 = vector.multi_reduction <add>, %109, %cst_85 [3] : vector<1x8x16x32xf32> to vector<1x8x16xf32>
    %111 = arith.addf %101, %110 : vector<1x8x16xf32>
    %c0_86 = arith.constant 0 : index
    %c0_87 = arith.constant 0 : index
    %112 = vector.load %arg5[%c0_86, %c0_87] : memref<1x1xf32, #tpu.memory_space<vmem>>, vector<1x1xf32>
    %113 = vector.shape_cast %112 : vector<1x1xf32> to vector<1x1x1xf32>
    %114 = vector.broadcast %113 : vector<1x1x1xf32> to vector<1x8x16xf32>
    %115 = arith.addf %111, %114 : vector<1x8x16xf32>
    %c0_88 = arith.constant 0 : index
    %c0_89 = arith.constant 0 : index
    %c0_90 = arith.constant 0 : index
    %116 = vector.load %arg9[%c0_88, %c0_89, %c0_90] : memref<1x8x16xf32, #tpu.memory_space<vmem>>, vector<1x8x16xf32>
    tpu.vector_store %arg9[%c0_88, %c0_89, %c0_90], %115 {strides = array<i32>} : memref<1x8x16xf32, #tpu.memory_space<vmem>>, vector<1x8x16xf32>,
    %c0_91 = arith.constant 0 : index
    %c0_92 = arith.constant 0 : index
    %117 = vector.load %arg12[%c0_91, %c0_92] : memref<128x288xbf16, #tpu.memory_space<vmem>>, vector<128x288xbf16>
    %c0_93 = arith.constant 0 : index
    %c0_94 = arith.constant 0 : index
    %118 = vector.load %arg3[%c0_93, %c0_94] : memref<288x128xbf16, #tpu.memory_space<vmem>>, vector<288x128xbf16>
    %cst_95 = arith.constant dense<0.000000e+00> : vector<128x128xf32>
    %119 = tpu.matmul %117, %118, %cst_95 {dimension_numbers = #tpu.dot_dimension_numbers<[1], [0], [0], [1], [0, 0, 1, 1], [], []>} : vector<128x288xbf16>, vector<288x128xbf16>, vector<128x128xf32> -> vector<128x128xf32>
    %120 = vector.shape_cast %119 : vector<128x128xf32> to vector<1x8x16x128xf32>
    %c0_96 = arith.constant 0 : index
    %c0_97 = arith.constant 0 : index
    %c0_98 = arith.constant 0 : index
    %c0_99 = arith.constant 0 : index
    %121 = vector.load %arg8[%c0_96, %c0_97, %c0_98, %c0_99] : memref<1x8x16x128xf32, #tpu.memory_space<vmem>>, vector<1x8x16x128xf32>
    tpu.vector_store %arg8[%c0_96, %c0_97, %c0_98, %c0_99], %120 {strides = array<i32>} : memref<1x8x16x128xf32, #tpu.memory_space<vmem>>, vector<1x8x16x128xf32>,
    %cst_100 = arith.constant dense<0.000000e+00> : vector<128xf32>
    %122 = vector.multi_reduction <add>, %119, %cst_100 [0] : vector<128x128xf32> to vector<128xf32>
    %123 = vector.shape_cast %122 : vector<128xf32> to vector<1x128xf32>
    %cst_101 = arith.constant 7.812500e-03 : f32
    %124 = vector.broadcast %cst_101 : f32 to vector<1x128xf32>
    %125 = arith.mulf %123, %124 : vector<1x128xf32>
    %126 = vector.broadcast %125 : vector<1x128xf32> to vector<128x128xf32>
    %127 = arith.subf %119, %126 : vector<128x128xf32>
    %128 = arith.mulf %127, %127 : vector<128x128xf32>
    %cst_102 = arith.constant dense<0.000000e+00> : vector<128xf32>
    %129 = vector.multi_reduction <add>, %128, %cst_102 [0] : vector<128x128xf32> to vector<128xf32>
    %130 = vector.shape_cast %129 : vector<128xf32> to vector<1x128xf32>
    %c2_i32 = arith.constant 2 : i32
    %131 = arith.muli %arg0, %c2_i32 : i32
    %132 = arith.addi %131, %arg1 : i32
    %c0_i32_103 = arith.constant 0 : i32
    %133 = arith.cmpi eq, %132, %c0_i32_103 : i32
    %134 = arith.extui %133 : i1 to i32
    %c0_i32_104 = arith.constant 0 : i32
    %135 = arith.cmpi ne, %134, %c0_i32_104 : i32
    scf.if %135 {
      %c0_108 = arith.constant 0 : index
      %c0_109 = arith.constant 0 : index
      %142 = vector.load %arg13[%c0_108, %c0_109] : memref<1x128xf32, #tpu.memory_space<vmem>>, vector<1x128xf32>
      tpu.vector_store %arg13[%c0_108, %c0_109], %125 {strides = array<i32>} : memref<1x128xf32, #tpu.memory_space<vmem>>, vector<1x128xf32>,
      %c0_110 = arith.constant 0 : index
      %c0_111 = arith.constant 0 : index
      %143 = vector.load %arg14[%c0_110, %c0_111] : memref<1x128xf32, #tpu.memory_space<vmem>>, vector<1x128xf32>
      tpu.vector_store %arg14[%c0_110, %c0_111], %130 {strides = array<i32>} : memref<1x128xf32, #tpu.memory_space<vmem>>, vector<1x128xf32>,
    } else {
    }
    %c0_i32_105 = arith.constant 0 : i32
    %136 = arith.cmpi sgt, %132, %c0_i32_105 : i32
    %137 = arith.extui %136 : i1 to i32
    %c0_i32_106 = arith.constant 0 : i32
    %138 = arith.cmpi ne, %137, %c0_i32_106 : i32
    scf.if %138 {
      %142 = arith.sitofp %132 : i32 to f32
      %cst_108 = arith.constant 1.280000e+02 : f32
      %143 = arith.mulf %142, %cst_108 : f32
      %cst_109 = arith.constant 1.280000e+02 : f32
      %144 = arith.addf %143, %cst_109 : f32
      %c0_110 = arith.constant 0 : index
      %c0_111 = arith.constant 0 : index
      %145 = vector.load %arg13[%c0_110, %c0_111] : memref<1x128xf32, #tpu.memory_space<vmem>>, vector<1x128xf32>
      %146 = arith.subf %125, %145 : vector<1x128xf32>
      %c0_112 = arith.constant 0 : index
      %c0_113 = arith.constant 0 : index
      %147 = vector.load %arg13[%c0_112, %c0_113] : memref<1x128xf32, #tpu.memory_space<vmem>>, vector<1x128xf32>
      %cst_114 = arith.constant 1.280000e+02 : f32
      %148 = arith.divf %cst_114, %144 : f32
      %149 = vector.broadcast %148 : f32 to vector<1x128xf32>
      %150 = arith.mulf %146, %149 : vector<1x128xf32>
      %151 = arith.addf %147, %150 : vector<1x128xf32>
      %c0_115 = arith.constant 0 : index
      %c0_116 = arith.constant 0 : index
      %152 = vector.load %arg13[%c0_115, %c0_116] : memref<1x128xf32, #tpu.memory_space<vmem>>, vector<1x128xf32>
      tpu.vector_store %arg13[%c0_115, %c0_116], %151 {strides = array<i32>} : memref<1x128xf32, #tpu.memory_space<vmem>>, vector<1x128xf32>,
      %c0_117 = arith.constant 0 : index
      %c0_118 = arith.constant 0 : index
      %153 = vector.load %arg14[%c0_117, %c0_118] : memref<1x128xf32, #tpu.memory_space<vmem>>, vector<1x128xf32>
      %154 = arith.addf %153, %130 : vector<1x128xf32>
      %155 = arith.mulf %146, %146 : vector<1x128xf32>
      %cst_119 = arith.constant 1.280000e+02 : f32
      %156 = arith.mulf %143, %cst_119 : f32
      %157 = arith.divf %156, %144 : f32
      %158 = vector.broadcast %157 : f32 to vector<1x128xf32>
      %159 = arith.mulf %155, %158 : vector<1x128xf32>
      %160 = arith.addf %154, %159 : vector<1x128xf32>
      %c0_120 = arith.constant 0 : index
      %c0_121 = arith.constant 0 : index
      %161 = vector.load %arg14[%c0_120, %c0_121] : memref<1x128xf32, #tpu.memory_space<vmem>>, vector<1x128xf32>
      tpu.vector_store %arg14[%c0_120, %c0_121], %160 {strides = array<i32>} : memref<1x128xf32, #tpu.memory_space<vmem>>, vector<1x128xf32>,
    } else {
    }
    %c3_i32 = arith.constant 3 : i32
    %139 = arith.cmpi eq, %132, %c3_i32 : i32
    %140 = arith.extui %139 : i1 to i32
    %c0_i32_107 = arith.constant 0 : i32
    %141 = arith.cmpi ne, %140, %c0_i32_107 : i32
    scf.if %141 {
      %c0_108 = arith.constant 0 : index
      %c0_109 = arith.constant 0 : index
      %142 = vector.load %arg14[%c0_108, %c0_109] : memref<1x128xf32, #tpu.memory_space<vmem>>, vector<1x128xf32>
      %cst_110 = arith.constant 0.001953125 : f32
      %143 = vector.broadcast %cst_110 : f32 to vector<1x128xf32>
      %144 = arith.mulf %142, %143 : vector<1x128xf32>
      %c0_111 = arith.constant 0 : index
      %c0_112 = arith.constant 0 : index
      %145 = vector.load %arg6[%c0_111, %c0_112] : memref<1x128xf32, #tpu.memory_space<vmem>>, vector<1x128xf32>
      %cst_113 = arith.constant 9.99999974E-6 : f32
      %146 = vector.broadcast %cst_113 : f32 to vector<1x128xf32>
      %147 = arith.addf %144, %146 : vector<1x128xf32>
      %148 = math.rsqrt %147 : vector<1x128xf32>
      %149 = arith.mulf %145, %148 : vector<1x128xf32>
      %c0_114 = arith.constant 0 : index
      %c0_115 = arith.constant 0 : index
      %150 = vector.load %arg10[%c0_114, %c0_115] : memref<2x128xf32, #tpu.memory_space<vmem>>, vector<1x128xf32>
      tpu.vector_store %arg10[%c0_114, %c0_115], %149 {strides = array<i32>} : memref<2x128xf32, #tpu.memory_space<vmem>>, vector<1x128xf32>,
      %c0_116 = arith.constant 0 : index
      %c0_117 = arith.constant 0 : index
      %151 = vector.load %arg7[%c0_116, %c0_117] : memref<1x128xf32, #tpu.memory_space<vmem>>, vector<1x128xf32>
      %c0_118 = arith.constant 0 : index
      %c0_119 = arith.constant 0 : index
      %152 = vector.load %arg13[%c0_118, %c0_119] : memref<1x128xf32, #tpu.memory_space<vmem>>, vector<1x128xf32>
      %153 = arith.mulf %152, %149 : vector<1x128xf32>
      %154 = arith.subf %151, %153 : vector<1x128xf32>
      %c1_120 = arith.constant 1 : index
      %c0_121 = arith.constant 0 : index
      %155 = vector.load %arg10[%c1_120, %c0_121] : memref<2x128xf32, #tpu.memory_space<vmem>>, vector<1x128xf32>
      tpu.vector_store %arg10[%c1_120, %c0_121], %154 {strides = array<i32>} : memref<2x128xf32, #tpu.memory_space<vmem>>, vector<1x128xf32>,
    } else {
    }
    return
  }
  func.func @transform_0(%arg0: i32, %arg1: i32) -> (i32, i32, i32, i32) {
    %c0_i32 = arith.constant 0 : i32
    %c0_i32_0 = arith.constant 0 : i32
    %c0_i32_1 = arith.constant 0 : i32
    %c0_i32_2 = arith.constant 0 : i32
    return %arg0, %c0_i32, %c0_i32_0, %c0_i32_1 : i32, i32, i32, i32
  }
  func.func @transform_1(%arg0: i32, %arg1: i32) -> (i32, i32) {
    %c0_i32 = arith.constant 0 : i32
    %c0_i32_0 = arith.constant 0 : i32
    %c0_i32_1 = arith.constant 0 : i32
    return %c0_i32, %c0_i32_0 : i32, i32
  }
  func.func @transform_2(%arg0: i32, %arg1: i32) -> (i32, i32) {
    %c0_i32 = arith.constant 0 : i32
    %c0_i32_0 = arith.constant 0 : i32
    %c0_i32_1 = arith.constant 0 : i32
    return %c0_i32, %c0_i32_0 : i32, i32
  }
  func.func @transform_3(%arg0: i32, %arg1: i32) -> (i32, i32) {
    %c0_i32 = arith.constant 0 : i32
    %c0_i32_0 = arith.constant 0 : i32
    %c0_i32_1 = arith.constant 0 : i32
    return %c0_i32, %c0_i32_0 : i32, i32
  }
  func.func @transform_4(%arg0: i32, %arg1: i32) -> (i32, i32) {
    %c0_i32 = arith.constant 0 : i32
    %c0_i32_0 = arith.constant 0 : i32
    %c0_i32_1 = arith.constant 0 : i32
    return %c0_i32, %c0_i32_0 : i32, i32
  }
  func.func @transform_5(%arg0: i32, %arg1: i32) -> (i32, i32) {
    %c0_i32 = arith.constant 0 : i32
    %c0_i32_0 = arith.constant 0 : i32
    %c0_i32_1 = arith.constant 0 : i32
    return %c0_i32, %c0_i32_0 : i32, i32
  }
  func.func @transform_6(%arg0: i32, %arg1: i32) -> (i32, i32, i32, i32) {
    %c0_i32 = arith.constant 0 : i32
    %c0_i32_0 = arith.constant 0 : i32
    %c0_i32_1 = arith.constant 0 : i32
    return %arg0, %arg1, %c0_i32, %c0_i32_0 : i32, i32, i32, i32
  }
  func.func @transform_7(%arg0: i32, %arg1: i32) -> (i32, i32, i32) {
    %c0_i32 = arith.constant 0 : i32
    %c0_i32_0 = arith.constant 0 : i32
    return %arg0, %arg1, %c0_i32 : i32, i32, i32
  }
  func.func @transform_8(%arg0: i32, %arg1: i32) -> (i32, i32) {
    %c0_i32 = arith.constant 0 : i32
    %c0_i32_0 = arith.constant 0 : i32
    %c0_i32_1 = arith.constant 0 : i32
    return %c0_i32, %c0_i32_0 : i32, i32
  }
}

</mosaic_0001>

<bundles_post_ra>
// kernel: tpu_custom_call.1
= control target key start
LH: loop header
LB: loop body
LE: loop exit
PB: predicated region body
PF: predicated region fallthrough
CT: control target
= control target key end

     0   :  { %s6276_s0 = inlined_call_operand.hbm [shape: f32[2,16,16,32], index: 0, kind: input, shape index: {}]   ;;  %s6277_s1 = inlined_call_operand.hbm [shape: bf16[288,128], index: 1, kind: input, shape index: {}]   ;;  %s6278_s2 = inlined_call_operand.hbm [shape: f32[9,32], index: 2, kind: input, shape index: {}]   ;;  %s6279_s3 = inlined_call_operand.<no memory space> [shape: f32[1,1], index: 3, kind: input, shape index: {}]   ;;  %s6280_s4 = inlined_call_operand.vmem [shape: f32[1,128], index: 4, kind: input, shape index: {}]   ;;  %s6281_s5 = inlined_call_operand.vmem [shape: f32[1,128], index: 5, kind: input, shape index: {}]   ;;  %s6282_s6 = inlined_call_operand.hbm [shape: f32[2,16,16,128], index: 6, kind: output, shape index: {0}]   ;;  %s6283_s7 = inlined_call_operand.hbm [shape: f32[2,16,16], index: 7, kind: output, shape index: {1}]   ;;  %s6284_s8 = inlined_call_operand.hbm [shape: f32[2,128], index: 8, kind: output, shape index: {2}]  }
   0x1   :  { %6312 = sst [smem:[#allocation60_spill]] %s6276_s0  ;;  %v14_v0 = vstv %s6279_s3 }
   0x2   :  { %6313 = sst [smem:[#allocation61_spill]] %s6277_s1  ;;  %15 = vst [vmem:[#allocation6] sm:$0x1] %v14_v0 }
   0x3   :  { %6314 = sst [smem:[#allocation62_spill]] %s6278_s2 }
   0x4   :  { %6315 = sst [smem:[#allocation63_spill]] %s6280_s4 }
   0x5   :  { %6316 = sst [smem:[#allocation64_spill]] %s6281_s5 }
   0x6   :  { %6317 = sst [smem:[#allocation65_spill]] %s6282_s6 }
   0x7   :  { %6318 = sst [smem:[#allocation66_spill]] %s6283_s7 }
   0x8   :  { %6319 = sst [smem:[#allocation67_spill]] %s6284_s8 }
   0x9   :  { %16 = vsyncpa [#allocation8], 0 }
   0xa   :  { %18 = vsyncpa [#allocation8 + $0x1], 0 }
   0xb   :  { %19 = vsyncpa [#allocation11], 0 }
   0xc   :  { %20 = vsyncpa [#allocation9], 0 }
   0xd   :  { %22 = vsyncpa [#allocation9 + $0x1], 0 }
   0xe   :  { %23 = vsyncpa [#allocation15], 0 }
   0xf   :  { %25 = vsyncpa [#allocation15 + $0x1], 0  ;;  %s4403_s29 = smov 0   ;;  %s4405_s30 = smov 0  }
  0x10   :  { %s4407_s9 = smov 0   ;;  %s4409_s10 = smov 0  }
  0x11   :  { %s4411_s11 = smov 0   ;;  %s4413_s12 = smov 0  }
  0x12   :  { %s4415_s3 = smov 0   ;;  %s4417_s13 = smov 0  }
  0x13   :  { %s4419_s14 = smov 0   ;;  %s4421_s15 = smov 0  }
  0x14   :  { %s4423_s16 = smov 0  }
  0x15 LB: > { %6320 = sst [smem:[#allocation22_spill]] %s4294_s29  ;;  %s4457_s17 = sadd.s32 4294967295, %s4334_s16   ;;  %s4334_s16 = sphi %s4423_s16, %s31_s16   ;;  %s4330_s15 = sphi %s4421_s15, %s6459_s15   ;;  %s4326_s14 = sphi %s4419_s14, %s6458_s14   ;;  %s4322_s13 = sphi %s4417_s13, %s6457_s13   ;;  %s4318_s3 = sphi %s4415_s3, %s6449_s3   ;;  %s4314_s12 = sphi %s4413_s12, %s6456_s12   ;;  %s4310_s11 = sphi %s4411_s11, %s6455_s11   ;;  %s4306_s10 = sphi %s4409_s10, %s6454_s10   ;;  %s4302_s9 = sphi %s4407_s9, %s6453_s9   ;;  %s4298_s30 = sphi %s4405_s30, %s6452_s30   ;;  %s4294_s29 = sphi %s4403_s29, %s6451_s29  }
  0x16   : > { %6321 = sst [smem:[#allocation23_spill]] %s4326_s14  ;;  %s6286_s18 = sadd.s32 4294967294, %s4334_s16  }
  0x17   : > { %p63_p0 = scmp.ne.s32.totalorder %s4310_s11, %s4306_s10  ;;  %p6288_p1 = scmp.eq.s32.totalorder %s4457_s17, 0 }
  0x18   : > { %p193_p2 = scmp.ne.s32.totalorder %s4302_s9, %s4298_s30  ;;  %p6285_p4 = scmp.eq.s32.totalorder %s4457_s17, 3 }
  0x19   : > { %p4467_p3 = por %p6288_p1, %p63_p0  ;;  %p199_p5 = scmp.ne.s32.totalorder %s4298_s30, %s4294_s29 }
  0x1a   : > { %p200_p6 = scmp.eq.s32.totalorder %s6286_s18, 3  ;;  %p4478_p7 = por %p6285_p4, %p193_p2 }
  0x1b   : > { %p3306_p8 = scmp.ge.s32.totalorder %s4334_s16, 1  ;;  %p256_p10 = scmp.lt.s32.totalorder %s4334_s16, 5 }
  0x1c   : > { %s6323_s21 = scalar_select %p4478_p7, 1, 0 }
  0x1d   : > { %p4483_p9 = por %p200_p6, %p199_p5  ;;  %p4488_p11 = pnand %p3306_p8, %p256_p10 }
  0x1e   : > { %6324 = sst [smem:[#allocation24_spill]] %s6323_s21  ;;  %s4336_s24 = smov [#allocation10]  }
  0x1f   : > { %s6325_s22 = scalar_select %p4483_p9, 1, 0 }
  0x20   : > { %s268_s25 = sshll.u32 %s4336_s24, 4  ;;  %p3829_p12 = pneg %p4488_p11  ;;  %s269_s25 = int_to_ptr.vmem [resolvable:$true] %s268_s25 }
  0x21   : > { %6326 = sst [smem:[#allocation25_spill]] %s6325_s22  ;;  %s4337_s27 = smov [#allocation12]  }
  0x22   : > { %p4496_p13 = pnand %p3829_p12, %p6288_p1  ;;  %s281_s28 = sshll.u32 %s4337_s27, 4  ;;  %s282_s28 = int_to_ptr.vmem [resolvable:$true] %s281_s28 }
  0x23   : > { %s4083_s10 = scalar_lea.vmem %s269_s25, 2304  ;;  %p4091_p8 = scmp.lt.s32.totalorder %s269_s25, %s269_s25 }
  0x24   : > { %p4074_p0 = pneg %p4496_p13  ;;  %p4084_p2 = scmp.ne.s32.totalorder %s269_s25, %s4083_s10 }
  0x25   : > { %p4092_p10 = scmp.lt.s32.totalorder %s4083_s10, %s4083_s10 }
  0x26   : > { %p4086_p5 = pnand %p4084_p2, %p4074_p0 }
  0x27   : > { %p4093_p4 = por %p4092_p10, %p4091_p8 }
  0x28   : > { %p4087_p6 = pneg %p4086_p5 }
  0x2a   : > { %p4094_p12 = pnand %p4093_p4, %p4087_p6 }
  0x2c   : > { %4097 = shalt.err (!%p4094_p12)
}
  0x2d   : > { %s4338_s24 = smov 64   ;;  %s4339_s18 = smov 4  }
  0x2e   : > { %s6329_s1 = sld [smem:[#allocation61_spill]]  ;;  %s4109_s22 = scalar_lea.vmem %s282_s28, 256 }
  0x2f   : > { %p4110_p1 = scmp.ne.s32.totalorder %s282_s28, %s4109_s22  ;;  %p4117_p9 = scmp.lt.s32.totalorder %s282_s28, %s282_s28 }
  0x30   : > { %p4118_p7 = scmp.lt.s32.totalorder %s4109_s22, %s4109_s22 }
  0x31   : > { %p4112_p2 = pnand %p4110_p1, %p4074_p0 }
  0x32   : > { %p4119_p8 = por %p4118_p7, %p4117_p9 }
  0x33   : > { %p4113_p5 = pneg %p4112_p2 }
  0x34   : > { %3832 = dma.hbm_to_vmem [thread:$0]  (!%p4496_p13), %s6329_s1, 2304, %s269_s25, [#allocation11], %s4338_s24, %s4338_s24, %s4339_s18  }
  0x35   : > { %p4120_p4 = pnand %p4119_p8, %p4113_p5 }
  0x37   : > { %4123 = shalt.err (!%p4120_p4)
}
  0x38   : > { %s6290_s10 = smov 128   ;;  %s6291_s18 = smov 8  }
  0x39   : > { %s6330_s2 = sld [smem:[#allocation62_spill]]  ;;  %s40_s25 = sadd.s32 1, %s4326_s14 }
  0x3a   : > { %s43_s24 = sadd.s32 1, %s4330_s15  ;;  %p41_p1 = scmp.ge.s32.totalorder %s40_s25, 2 }
  0x3b   : > { %s50_s27 = sadd.s32 1, %s4314_s12  ;;  %p57_p7 = scmp.ne.s32.totalorder %s4314_s12, %s4310_s11 }
  0x3c   : > { %p58_p9 = scmp.eq.s32.totalorder %s4334_s16, 0  ;;  %s6461_s25 = smov (%p41_p1, %s40_s25), 0 }
  0x3d   : > { %6331 = sst [smem:[#allocation26_spill]] %s6461_s25  ;;  %s6463_s24 = smov (!%p41_p1, %s43_s24), %s4330_s15 }
  0x3e   : > { %p4530_p0 = por %p58_p9, %p57_p7  ;;  %s179_s19 = ssub.s32 %s4326_s14, %s6461_s25 }
  0x3f   : > { %3835 = dma.hbm_to_vmem [thread:$0]  (!%p4496_p13), %s6330_s2, 256, %s282_s28, [#allocation11], %s6290_s10, %s6290_s10, %s6291_s18  }
  0x40   : > { %p45_p13 = scmp.ge.s32.totalorder %s6463_s24, 2  ;;  %p3849_p6 = scmp.lt.s32.totalorder %s4334_s16, 4 }
  0x41   : > { %s304_s28 = sand.u32 1, %s4314_s12   ;;  %s3551_s22 = sshll.u32 %s4330_s15, 12 }
  0x42   : > { %s6465_s24 = smov (%p45_p13, %s6463_s24), 0  ;;  %s3310_s10 = sshll.u32 %s304_s28, 8 }
  0x43   : > { %s47_s18 = ssub.s32 %s4330_s15, %s6465_s24  ;;  %s6333_s0 = sld [smem:[#allocation60_spill]] }
  0x44   : > { %p48_p10 = scmp.eq.s32.totalorder %s47_s18, 0  ;;  %s180_s1 = sor.u32 %s179_s19, %s47_s18 }
  0x45   : > { %p181_p12 = scmp.eq.s32.totalorder %s180_s1, 0  ;;  %s6334_s25 = sadd.s32 1, %s4302_s9 }
  0x46   : > { %s4547_s6 = scalar_select %p48_p10, %s4314_s12, %s50_s27  }
  0x47   : > { %s4552_s14 = scalar_select %p181_p12, %s4302_s9, %s6334_s25  }
  0x48   : > { %s308_s7 = scalar_lea.vmem [#allocation7], %s3310_s10  ;;  %p4558_p2 = pnand %p3849_p6, %p4530_p0 }
  0x49   : > { %s314_s8 = scalar_lea.hbm %s6333_s0, %s3551_s22  ;;  %s315_s21 = sshll.u32 %s308_s7, 4  ;;  %s316_s21 = int_to_ptr.vmem [resolvable:$true] %s315_s21 }
  0x4a   : > { %s305_s1 = scalar_lea.sflag [#allocation8], %s304_s28  ;;  %p4126_p5 = pneg %p4558_p2 }
  0x4b   : > { %s4137_s2 = scalar_lea.vmem %s316_s21, 4096  ;;  %s4342_s29 = smov [#allocation7]  }
  0x4c   : > { %p4138_p8 = scmp.ne.s32.totalorder %s316_s21, %s4137_s2  ;;  %s4142_s18 = sshll.u32 %s4342_s29, 4  ;;  %s4143_s18 = int_to_ptr.vmem [resolvable:$false] %s4142_s18 }
  0x4d   : > { %s4144_s10 = scalar_lea.vmem %s4143_s18, 8192  ;;  %p4145_p7 = scmp.lt.s32.totalorder %s316_s21, %s4143_s18 }
  0x4e   : > { %p4140_p4 = pnand %p4138_p8, %p4126_p5  ;;  %p4146_p9 = scmp.lt.s32.totalorder %s4144_s10, %s4137_s2 }
  0x50   : > { %p4141_p1 = pneg %p4140_p4  ;;  %p4147_p13 = por %p4146_p9, %p4145_p7 }
  0x52   : > { %p4148_p0 = pnand %p4147_p13, %p4141_p1 }
  0x54   : > { %4151 = shalt.err (!%p4148_p0)
}
  0x55   : > { %s6336_s7 = smov 8   ;;  %s6337_s25 = smov 128  }
  0x56   : > { %3839 = dma.hbm_to_vmem [thread:$0]  (!%p4558_p2), %s314_s8, 4096, %s316_s21, %s305_s1, %s6337_s25, %s6337_s25, %s6336_s7  }
  0x57   : > { %327 = sbr.rel (%p4488_p11) target bundleno = 1165 (0x48d), region = 44 }
  0x5c   : > { %s329_s27 = sand.u32 1, %s4310_s11  }
  0x5d   : > { %s3314_s26 = sshll.u32 %s329_s27, 8  ;;  %s330_s19 = scalar_lea.sflag [#allocation8], %s329_s27 }
  0x5e   : > { %s4572_s28 = scalar_lea.vmem [#allocation7], %s3314_s26 }
  0x5f   : > { %4273 = dma.done.wait (%p4467_p3), %s330_s19, 4096  }
  0x60   : > { %4275 = vsyncadd (%p4467_p3), %s330_s19, 4294963200  ;;  %p6338_p6 = scmp.eq.s32.totalorder %s4457_s17, 0 }
  0x62   : > { %4277 = dma.done.wait (%p6338_p6), [#allocation11], 2560   ;;  %p6339_p10 = pmov %p6338_p6 }
  0x63   : > { %s4583_s5 = sand.u32 1, %s4298_s30   ;;  %s3319_s8 = sshll.u32 %s4318_s3, 3  ;;  %vm382_vm0 = vcmask 253952   ;;  %v4343_v1 = vmov 0.0  }
  0x64   : > { %4279 = vsyncadd (%p6339_p10), [#allocation11], 4294964736  ;;  %s3317_s21 = sshll.u32 %s4583_s5, 7  ;;  %s3318_s23 = sshll.u32 %s4583_s5, 3  ;;  %383 = vst.msk [vmem:[#allocation2] sm:$0x1] %vm382_vm0, %v4343_v1 }
  0x65   : > { %384 = vst.msk [vmem:[#allocation2 + $0x18] sm:$0x1] %vm382_vm0, %v4343_v1  ;;  %385 = vst.msk [vmem:[#allocation2 + $0x30] sm:$0x1] %vm382_vm0, %v4343_v1  ;;  %s4608_s20 = scalar_lea.vmem [#allocation13], %s3317_s21  ;;  %s4610_s22 = scalar_lea.vmem [#allocation14], %s3318_s23 }
  0x66   : > { %386 = vst.msk [vmem:[#allocation2 + $0x48] sm:$0x1] %vm382_vm0, %v4343_v1  ;;  %387 = vst.msk [vmem:[#allocation2 + $0x60] sm:$0x1] %vm382_vm0, %v4343_v1  ;;  %p3320_p3 = scmp.ne.s32.totalorder %s4318_s3, 0 }
  0x67   : > { %388 = vst.msk [vmem:[#allocation2 + $0x78] sm:$0x1] %vm382_vm0, %v4343_v1  ;;  %389 = vst.msk [vmem:[#allocation2 + $0x90] sm:$0x1] %vm382_vm0, %v4343_v1 }
  0x68   : > { %390 = vst.msk [vmem:[#allocation2 + $0xa8] sm:$0x1] %vm382_vm0, %v4343_v1  ;;  %391 = vst.msk [vmem:[#allocation2 + $0xc0] sm:$0x1] %vm382_vm0, %v4343_v1 }
  0x69   : > { %392 = vst.msk [vmem:[#allocation2 + $0xd8] sm:$0x1] %vm382_vm0, %v4343_v1  ;;  %393 = vst.msk [vmem:[#allocation2 + $0x11] sm:$0x1] %vm382_vm0, %v4343_v1 }
  0x6a   : > { %394 = vst.msk [vmem:[#allocation2 + $0x29] sm:$0x1] %vm382_vm0, %v4343_v1  ;;  %395 = vst.msk [vmem:[#allocation2 + $0x41] sm:$0x1] %vm382_vm0, %v4343_v1  ;;  %406 = sbr.rel (%p3320_p3) target bundleno = 113 (0x71), region = 60 }
  0x6b   : > { %396 = vst.msk [vmem:[#allocation2 + $0x59] sm:$0x1] %vm382_vm0, %v4343_v1  ;;  %397 = vst.msk [vmem:[#allocation2 + $0x71] sm:$0x1] %vm382_vm0, %v4343_v1 }
  0x6c   : > { %398 = vst.msk [vmem:[#allocation2 + $0x89] sm:$0x1] %vm382_vm0, %v4343_v1  ;;  %399 = vst.msk [vmem:[#allocation2 + $0xa1] sm:$0x1] %vm382_vm0, %v4343_v1 }
  0x6d   : > { %400 = vst.msk [vmem:[#allocation2 + $0xb9] sm:$0x1] %vm382_vm0, %v4343_v1  ;;  %401 = vst.msk [vmem:[#allocation2 + $0xd1] sm:$0x1] %vm382_vm0, %v4343_v1 }
  0x6e   : > { %402 = vst.msk [vmem:[#allocation2 + $0xe9] sm:$0x1] %vm382_vm0, %v4343_v1 }
  0x6f   : > { %vm407_vm1 = vcmask 261120   ;;  %v4344_v2 = vmov 0.0  }
  0x70   : > { %408 = vst.msk [vmem:[#allocation2 + $0x1] sm:$0xff] %vm407_vm1, %v4344_v2  ;;  %409 = vst.msk [vmem:[#allocation2 + $0x9] sm:$0xff] %vm407_vm1, %v4344_v2 }
  0x71 PF: > { %p3321_p11 = scmp.le.s32.totalorder %s4318_s3, 0 }
  0x72   : > { %s3322_s1 = sadd.s32 (!%p3321_p11), 4294967295, %s3319_s8 }
  0x73   : > { %413 = sbr.rel (%p3321_p11) target bundleno = 122 (0x7a), region = 64  ;;  %s3323_s2 = sshll.u32 (!%p3321_p11), %s3322_s1, 4 }
  0x74   : > { %s416_s29 = scalar_lea.vmem (!%p3321_p11), %s4572_s28, %s3323_s2 [#allocation7] }
  0x78   : > { %vm419_vm2 = vcmask 261120   ;;  %v417_v3 = vld [vmem:[%s416_s29] sm:$0xff]  ;;  %v418_v4 = vld [vmem:[%s416_s29 + $0x8] sm:$0xff] }
  0x79   : > { %420 = vst.msk [vmem:[#allocation2 + $0x1] sm:$0xff] %vm419_vm2, %v417_v3  ;;  %421 = vst.msk [vmem:[#allocation2 + $0x9] sm:$0xff] %vm419_vm2, %v418_v4 }
  0x7a PF: > { %p3324_p12 = scmp.ne.s32.totalorder %s4318_s3, 1 }
  0x7c   : > { %425 = sbr.rel (%p3324_p12) target bundleno = 131 (0x83), region = 68 }
  0x81   : > { %vm427_vm3 = vcmask 261120   ;;  %v4345_v5 = vmov 0.0  }
  0x82   : > { %428 = vst.msk [vmem:[#allocation2 + $0xd9] sm:$0xff] %vm427_vm3, %v4345_v5  ;;  %429 = vst.msk [vmem:[#allocation2 + $0xe1] sm:$0xff] %vm427_vm3, %v4345_v5 }
  0x83 PF: > { %p3325_p2 = scmp.ge.s32.totalorder %s4318_s3, 1 }
  0x84   : > { %s3552_s18 = sshll.u32 (!%p3325_p2), %s4318_s3, 7 }
  0x85   : > { %433 = sbr.rel (%p3325_p2) target bundleno = 140 (0x8c), region = 72  ;;  %s3211_s10 = scalar_lea.vmem (!%p3325_p2), %s4572_s28, %s3552_s18 [#allocation7] }
  0x8a   : > { %vm440_vm4 = vcmask 261120   ;;  %v3328_v6 = vld [vmem:[%s3211_s10 + $0x80] sm:$0xff]  ;;  %v3329_v7 = vld [vmem:[%s3211_s10 + $0x88] sm:$0xff] }
  0x8b   : > { %441 = vst.msk [vmem:[#allocation2 + $0xd9] sm:$0xff] %vm440_vm4, %v3328_v6  ;;  %442 = vst.msk [vmem:[#allocation2 + $0xe1] sm:$0xff] %vm440_vm4, %v3329_v7 }
  0x8c PF: > { %vm462_vm5 = vcmask 261120   ;;  %v4621_v8 = vld [vmem:[#allocation2] sm:$0xff]  ;;  %v4625_v10 = vld [vmem:[#allocation2 + $0x8] sm:$0xff]  ;;  %s3553_s7 = sshll.u32 %s4318_s3, 7  ;;  %vm559_vm6 = vcmask 257024   ;;  %s4346_s27 = smov 32  }
  0x8d   : > { %v4623_v9 = vld [vmem:[#allocation12] ss:$0 sm:$0xff]  ;;  %s4633_s25 = scalar_lea.vmem %s4572_s28, %s3553_s7 [#allocation7]  ;;  %v3554_v7 = vpack.c.bf16 %v4621_v8, %v4621_v8  ;;  %s4347_s26 = smov 64   ;;  %vm773_vm7 = vcmask 519424   ;;  %vm987_vm8 = vcmask 781824   ;;  %vm1201_vm9 = vcmask 1044224  }
  0x8e   : > { %v581_v11 = vmul.f32 %v4623_v9, %v4621_v8  ;;  %v582_v12 = vmul.f32 %v4623_v9, %v4625_v10  ;;  %v447_v13 = vld [vmem:[%s4633_s25 + $0x10] sm:$0xff]  ;;  %v445_v14 = vld [vmem:[%s4633_s25] sm:$0xff]  ;;  %v446_v17 = vld [vmem:[%s4633_s25 + $0x8] sm:$0xff]  ;;  %s4348_s19 = smov 96   ;;  %s3535_s28 = sshll.u32 %s4322_s13, 1  ;;  %vm2358_vm10 = vcmask 130112  }
  0x8f   : > { %v449_v15 = vld [vmem:[%s4633_s25 + $0x20] sm:$0xff]  ;;  %465 = vst.msk [vmem:[#allocation2 + $0x31] sm:$0xff] %vm462_vm5, %v447_v13  ;;  %463 = vst.msk [vmem:[#allocation2 + $0x19] sm:$0xff] %vm462_vm5, %v445_v14  ;;  %v451_v18 = vld [vmem:[%s4633_s25 + $0x30] sm:$0xff]  ;;  %s5884_s8 = sadd.s32 %s4318_s3, %s3535_s28  ;;  %vm2423_vm11 = vcmask 1041409   ;;  %vm2425_vm12 = vcmask 1042434  }
  0x90   : > { %v597_v16 = vsel %vm462_vm5, %v581_v11, 0.0  ;;  %467 = vst.msk [vmem:[#allocation2 + $0x49] sm:$0xff] %vm462_vm5, %v449_v15  ;;  %v448_v19 = vld [vmem:[%s4633_s25 + $0x18] sm:$0xff]  ;;  %464 = vst.msk [vmem:[#allocation2 + $0x21] sm:$0xff] %vm462_vm5, %v446_v17  ;;  %v453_v20 = vld [vmem:[%s4633_s25 + $0x40] sm:$0xff]  ;;  %v600_v23 = vsel %vm462_vm5, %v582_v12, 0.0  ;;  %v3555_v11 = vpack.c.bf16 %v4625_v10, %v4625_v10 }
  0x91   : > { %598 = vadd.xlane.f32.xlu0 %v597_v16  ;;  %469 = vst.msk [vmem:[#allocation2 + $0x61] sm:$0xff] %vm462_vm5, %v451_v18  ;;  %466 = vst.msk [vmem:[#allocation2 + $0x39] sm:$0xff] %vm462_vm5, %v448_v19  ;;  %v450_v21 = vld [vmem:[%s4633_s25 + $0x28] sm:$0xff]  ;;  %v455_v22 = vld [vmem:[%s4633_s25 + $0x50] sm:$0xff]  ;;  %vm2427_vm13 = vcmask 1043459   ;;  %vm2429_vm14 = vcmask 1044484  }
  0x92   : > { %471 = vst.msk [vmem:[#allocation2 + $0x79] sm:$0xff] %vm462_vm5, %v453_v20  ;;  %468 = vst.msk [vmem:[#allocation2 + $0x51] sm:$0xff] %vm462_vm5, %v450_v21  ;;  %v452_v24 = vld [vmem:[%s4633_s25 + $0x38] sm:$0xff]  ;;  %v457_v25 = vld [vmem:[%s4633_s25 + $0x60] sm:$0xff]  ;;  %vm2431_vm15 = vcmask 1045509   ;;  %vm2433_vm0 = vcmask 1046534  }
  0x93   : > { %473 = vst.msk [vmem:[#allocation2 + $0x91] sm:$0xff] %vm462_vm5, %v455_v22  ;;  %v454_v26 = vld [vmem:[%s4633_s25 + $0x48] sm:$0xff]  ;;  %470 = vst.msk [vmem:[#allocation2 + $0x69] sm:$0xff] %vm462_vm5, %v452_v24  ;;  %v456_v27 = vld [vmem:[%s4633_s25 + $0x58] sm:$0xff]  ;;  %vm2435_vm1 = vcmask 1047559   ;;  %vm2438_vm2 = vcmask 130048  }
  0x94   : > { %475 = vst.msk [vmem:[#allocation2 + $0xa9] sm:$0xff] %vm462_vm5, %v457_v25  ;;  %472 = vst.msk [vmem:[#allocation2 + $0x81] sm:$0xff] %vm462_vm5, %v454_v26  ;;  %v458_v28 = vld [vmem:[%s4633_s25 + $0x68] sm:$0xff]  ;;  %p3536_p5 = scmp.ne.s32.totalorder %s5884_s8, 0 }
  0x95   : > { %474 = vst.msk [vmem:[#allocation2 + $0x99] sm:$0xff] %vm462_vm5, %v456_v27  ;;  %476 = vst.msk [vmem:[#allocation2 + $0xb1] sm:$0xff] %vm462_vm5, %v458_v28  ;;  %601 = vadd.xlane.f32.xlu0 %v600_v23  ;;  %v4722_v19 = vld [vmem:[#allocation2 + $0x1] sm:$0xff]  ;;  %v4734_v25 = vld [vmem:[#allocation2 + $0x9] sm:$0xff] }
  0x96   : > { %v483_v29 = vld [vmem:[#allocation2 + $0x30] sm:$0xff]  ;;  %v4665_v30 = vld [vmem:[#allocation2 + $0x18] sm:$0xff]  ;;  %v3570_v24 = vpack.c.bf16 %v4722_v19, %v4722_v19  ;;  %561 = vst.msk [vmem:[#allocation3 + $0xc] sm:$0xf] %vm559_vm6, %v3555_v11  ;;  %560 = vst.msk [vmem:[#allocation3] sm:$0xf] %vm559_vm6, %v3554_v7  ;;  %v3571_v27 = vpack.c.bf16 %v4734_v25, %v4734_v25 }
  0x97   : > { %v485_v31 = vld [vmem:[#allocation2 + $0x48] sm:$0xff]  ;;  %v585_v32 = vmul.f32 %v4623_v9, %v483_v29  ;;  %v583_v33 = vmul.f32 %v4623_v9, %v4665_v30  ;;  %v482_v34 = vld [vmem:[#allocation2 + $0x20] sm:$0xff]  ;;  %v4700_v12 = vpack.c.bf16 %v483_v29, %v483_v29  ;;  %v4704_v13 = vpack.c.bf16 %v4665_v30, %v4665_v30  ;;  %v4736_v26 = vld [vmem:[#allocation2 + $0x31] sm:$0xff] }
  0x98   : > { %v587_v35 = vmul.f32 %v4623_v9, %v485_v31  ;;  %v584_v36 = vmul.f32 %v4623_v9, %v482_v34  ;;  %v487_v37 = vld [vmem:[#allocation2 + $0x60] sm:$0xff]  ;;  %v484_v38 = vld [vmem:[#allocation2 + $0x38] sm:$0xff]  ;;  %v4706_v14 = vpack.c.bf16 %v485_v31, %v485_v31  ;;  %v4708_v15 = vpack.c.bf16 %v482_v34, %v482_v34  ;;  %v667_v31 = vld [vmem:[#allocation2 + $0x49] sm:$0xff] }
  0x99   : > { %v609_v39 = vsel %vm462_vm5, %v585_v32, 0.0  ;;  %v603_v40 = vsel %vm462_vm5, %v583_v33, 0.0  ;;  %v589_v43 = vmul.f32 %v4623_v9, %v487_v37  ;;  %v586_v44 = vmul.f32 %v4623_v9, %v484_v38  ;;  %v489_v45 = vld [vmem:[#allocation2 + $0x78] sm:$0xff]  ;;  %v486_v46 = vld [vmem:[#allocation2 + $0x50] sm:$0xff]  ;;  %562 = vst.msk [vmem:[#allocation3 + $0x18] sm:$0xf] %vm559_vm6, %v4704_v13 }
  0x9a   : > { %610 = vadd.xlane.f32.xlu0 %v609_v39  ;;  %604 = vadd.xlane.f32.xlu1 %v603_v40  ;;  %v615_v41 = vsel %vm462_vm5, %v587_v35, 0.0  ;;  %v606_v42 = vsel %vm462_vm5, %v584_v36, 0.0  ;;  %v591_v47 = vmul.f32 %v4623_v9, %v489_v45  ;;  %v588_v48 = vmul.f32 %v4623_v9, %v486_v46  ;;  %v491_v49 = vld [vmem:[#allocation2 + $0x90] sm:$0xff]  ;;  %v488_v52 = vld [vmem:[#allocation2 + $0x68] sm:$0xff]  ;;  %563 = vst.msk [vmem:[#allocation3 + $0x24] sm:$0xf] %vm559_vm6, %v4708_v15 }
  0x9b   : > { %v621_v50 = vsel %vm462_vm5, %v589_v43, 0.0  ;;  %v612_v51 = vsel %vm462_vm5, %v586_v44, 0.0  ;;  %v493_v55 = vld [vmem:[#allocation2 + $0xa8] sm:$0xff]  ;;  %v490_v56 = vld [vmem:[#allocation2 + $0x80] sm:$0xff]  ;;  %v593_v57 = vmul.f32 %v4623_v9, %v491_v49  ;;  %v590_v58 = vmul.f32 %v4623_v9, %v488_v52  ;;  %564 = vst.msk [vmem:[#allocation3 + $0x30] sm:$0xf] %vm559_vm6, %v4700_v12 }
  0x9c   : > { %v627_v53 = vsel %vm462_vm5, %v591_v47, 0.0  ;;  %v618_v54 = vsel %vm462_vm5, %v588_v48, 0.0  ;;  %v595_v61 = vmul.f32 %v4623_v9, %v493_v55  ;;  %v592_v62 = vmul.f32 %v4623_v9, %v490_v56  ;;  %v492_v63 = vld [vmem:[#allocation2 + $0x98] sm:$0xff]  ;;  %v494_v3 = vld [vmem:[#allocation2 + $0xb0] sm:$0xff]  ;;  %566 = vst.msk [vmem:[#allocation3 + $0x48] sm:$0xf] %vm559_vm6, %v4706_v14 }
  0x9d   : > { %v633_v59 = vsel %vm462_vm5, %v593_v57, 0.0  ;;  %v624_v60 = vsel %vm462_vm5, %v590_v58, 0.0  ;;  %v594_v2 = vmul.f32 %v4623_v9, %v492_v63  ;;  %v596_v5 = vmul.f32 %v4623_v9, %v494_v3  ;;  %v663_v29 = vld [vmem:[#allocation2 + $0x19] sm:$0xff]  ;;  %v664_v34 = vld [vmem:[#allocation2 + $0x21] sm:$0xff]  ;;  %v673_v43 = vld [vmem:[#allocation2 + $0x91] sm:$0xff] }
  0x9e   : > { %616 = vadd.xlane.f32.xlu0 %v615_v41  ;;  %607 = vadd.xlane.f32.xlu1 %v606_v42  ;;  %v639_v0 = vsel %vm462_vm5, %v595_v61, 0.0  ;;  %v630_v1 = vsel %vm462_vm5, %v592_v62, 0.0  ;;  %v4710_v9 = vpack.c.bf16 %v487_v37, %v487_v37  ;;  %v4712_v16 = vpack.c.bf16 %v484_v38, %v484_v38  ;;  %v669_v35 = vld [vmem:[#allocation2 + $0x61] sm:$0xff]  ;;  %v666_v38 = vld [vmem:[#allocation2 + $0x39] sm:$0xff]  ;;  %v668_v42 = vld [vmem:[#allocation2 + $0x51] sm:$0xff] }
  0x9f   : > { %v636_v4 = vsel %vm462_vm5, %v594_v2, 0.0  ;;  %v642_v6 = vsel %vm462_vm5, %v596_v5, 0.0  ;;  %v4714_v17 = vpack.c.bf16 %v489_v45, %v489_v45  ;;  %v4716_v8 = vpack.c.bf16 %v486_v46, %v486_v46  ;;  %v671_v39 = vld [vmem:[#allocation2 + $0x79] sm:$0xff]  ;;  %v670_v46 = vld [vmem:[#allocation2 + $0x69] sm:$0xff] }
  0xa0   : > { %v4718_v18 = vpack.c.bf16 %v491_v49, %v491_v49  ;;  %v4720_v10 = vpack.c.bf16 %v488_v52, %v488_v52  ;;  %v4724_v20 = vpack.c.bf16 %v493_v55, %v493_v55  ;;  %v4726_v21 = vpack.c.bf16 %v490_v56, %v490_v56  ;;  %565 = vst.msk [vmem:[#allocation3 + $0x3c] sm:$0xf] %vm559_vm6, %v4712_v16  ;;  %v675_v47 = vld [vmem:[#allocation2 + $0xa9] sm:$0xff]  ;;  %v674_v52 = vld [vmem:[#allocation2 + $0x99] sm:$0xff]  ;;  %v3364_v56 = vld [vmem:[#allocation12 + $0x1] ss:$0 sm:$0xff] }
  0xa1   : > { %v4728_v22 = vpack.c.bf16 %v492_v63, %v492_v63  ;;  %v4730_v23 = vpack.c.bf16 %v494_v3, %v494_v3  ;;  %567 = vst.msk [vmem:[#allocation3 + $0x54] sm:$0xf] %vm559_vm6, %v4716_v8  ;;  %568 = vst.msk [vmem:[#allocation3 + $0x60] sm:$0xf] %vm559_vm6, %v4710_v9  ;;  %v4773_v28 = vpack.c.bf16 %v4736_v26, %v4736_v26 }
  0xa2   : > { %622 = vadd.xlane.f32.xlu0 %v621_v50  ;;  %613 = vadd.xlane.f32.xlu1 %v612_v51  ;;  %569 = vst.msk [vmem:[#allocation3 + $0x6c] sm:$0xf] %vm559_vm6, %v4720_v10  ;;  %570 = vst.msk [vmem:[#allocation3 + $0x78] sm:$0xf] %vm559_vm6, %v4714_v17  ;;  %v3572_v32 = vpack.c.bf16 %v663_v29, %v663_v29  ;;  %v4778_v33 = vpack.c.bf16 %v667_v31, %v667_v31  ;;  %v672_v50 = vld [vmem:[#allocation2 + $0x81] sm:$0xff] }
  0xa3   : > { %571 = vst.msk [vmem:[#allocation3 + $0x84] sm:$0xf] %vm559_vm6, %v4726_v21  ;;  %572 = vst.msk [vmem:[#allocation3 + $0x90] sm:$0xf] %vm559_vm6, %v4718_v18  ;;  %v3573_v36 = vpack.c.bf16 %v664_v34, %v664_v34  ;;  %v4783_v37 = vpack.c.bf16 %v669_v35, %v669_v35  ;;  %v4786_v40 = vpack.c.bf16 %v666_v38, %v666_v38 }
  0xa4   : > { %573 = vst.msk [vmem:[#allocation3 + $0x9c] sm:$0xf] %vm559_vm6, %v4728_v22  ;;  %574 = vst.msk [vmem:[#allocation3 + $0xa8] sm:$0xf] %vm559_vm6, %v4724_v20  ;;  %v4790_v41 = vpack.c.bf16 %v671_v39, %v671_v39  ;;  %v4794_v44 = vpack.c.bf16 %v668_v42, %v668_v42  ;;  %v4798_v45 = vpack.c.bf16 %v673_v43, %v673_v43 }
  0xa5   : > { %575 = vst.msk [vmem:[#allocation3 + $0xb4] sm:$0xf] %vm559_vm6, %v4730_v23  ;;  %v4802_v48 = vpack.c.bf16 %v670_v46, %v670_v46  ;;  %v3584_v49 = vpack.c.bf16 %v675_v47, %v675_v47  ;;  %v4808_v51 = vpack.c.bf16 %v672_v50, %v672_v50  ;;  %v795_v57 = vmul.f32 %v3364_v56, %v4722_v19 }
  0xa6   : > { %628 = vadd.xlane.f32.xlu0 %v627_v53  ;;  %619 = vadd.xlane.f32.xlu1 %v618_v54  ;;  %v3583_v53 = vpack.c.bf16 %v674_v52, %v674_v52  ;;  %v676_v54 = vld [vmem:[#allocation2 + $0xb1] sm:$0xff]  ;;  %v798_v61 = vmul.f32 %v3364_v56, %v664_v34  ;;  %v799_v63 = vmul.f32 %v3364_v56, %v4736_v26 }
  0xa7   : > { %v3585_v55 = vpack.c.bf16 %v676_v54, %v676_v54  ;;  %v811_v58 = vsel %vm462_vm5, %v795_v57, 0.0  ;;  %v796_v2 = vmul.f32 %v3364_v56, %v4734_v25  ;;  %v803_v5 = vmul.f32 %v3364_v56, %v669_v35  ;;  %v4846_v57 = vld [vmem:[#allocation2 + $0x2] sm:$0xff] }
  0xa8   : > { %v820_v62 = vsel %vm462_vm5, %v798_v61, 0.0  ;;  %v805_v19 = vmul.f32 %v3364_v56, %v671_v39  ;;  %v809_v34 = vmul.f32 %v3364_v56, %v675_v47  ;;  %v806_v35 = vmul.f32 %v3364_v56, %v672_v50  ;;  %v4858_v61 = vld [vmem:[#allocation2 + $0x32] sm:$0xff] }
  0xa9   : > { %v835_v7 = vsel %vm462_vm5, %v803_v5, 0.0  ;;  %v808_v39 = vmul.f32 %v3364_v56, %v674_v52 }
  0xaa   : > { %634 = vadd.xlane.f32.xlu0 %v633_v59  ;;  %625 = vadd.xlane.f32.xlu1 %v624_v60  ;;  %v797_v59 = vmul.f32 %v3364_v56, %v663_v29  ;;  %v841_v26 = vsel %vm462_vm5, %v805_v19, 0.0  ;;  %v804_v29 = vmul.f32 %v3364_v56, %v670_v46  ;;  %v810_v46 = vmul.f32 %v3364_v56, %v676_v54  ;;  %v459_v54 = vld [vmem:[%s4633_s25 + $0x70] sm:$0xff]  ;;  %v4892_v19 = vld [vmem:[#allocation2 + $0x62] sm:$0xff] }
  0xab   : > { %477 = vst.msk [vmem:[#allocation2 + $0xc1] sm:$0xff] %vm462_vm5, %v459_v54 }
  0xac   : > { %v817_v60 = vsel %vm462_vm5, %v797_v59, 0.0  ;;  %v856_v47 = vsel %vm462_vm5, %v810_v46, 0.0 }
  0xae   : > { %640 = vadd.xlane.f32.xlu0 %v639_v0  ;;  %631 = vadd.xlane.f32.xlu1 %v630_v1  ;;  %v823_v0 = vsel %vm462_vm5, %v799_v63, 0.0  ;;  %v801_v1 = vmul.f32 %v3364_v56, %v667_v31 }
  0xb0   : > { %v829_v3 = vsel %vm462_vm5, %v801_v1, 0.0  ;;  %v4869_v1 = vpack.c.bf16 %v4858_v61, %v4858_v61 }
  0xb2   : > { %637 = vadd.xlane.f32.xlu1 %v636_v4  ;;  %v814_v4 = vsel %vm462_vm5, %v796_v2, 0.0  ;;  %v4871_v2 = vld [vmem:[#allocation2 + $0x1a] sm:$0xff] }
  0xb6   : > { %643 = vadd.xlane.f32.xlu1 %v642_v6  ;;  %v800_v6 = vmul.f32 %v3364_v56, %v666_v38  ;;  %v844_v38 = vsel %vm462_vm5, %v806_v35, 0.0 }
  0xb8   : > { %v826_v11 = vsel %vm462_vm5, %v800_v6, 0.0  ;;  %v4882_v6 = vpack.c.bf16 %v4871_v2, %v4871_v2 }
  0xc4   : > { %725 = vrot.lane.b32.xlu0 %v3570_v24, %s4346_s27  ;;  %v802_v24 = vmul.f32 %v3364_v56, %v668_v42 }
  0xc6   : > { %v832_v25 = vsel %vm462_vm5, %v802_v24, 0.0  ;;  %v460_v24 = vld [vmem:[%s4633_s25 + $0x78] sm:$0xff] }
  0xc7   : > { %727 = vrot.lane.b32.xlu1 %v3571_v27, %s4346_s27  ;;  %v807_v27 = vmul.f32 %v3364_v56, %v673_v43  ;;  %v850_v43 = vsel %vm462_vm5, %v808_v39, 0.0  ;;  %v3586_v56 = vpack.c.bf16 %v4846_v57, %v4846_v57  ;;  %478 = vst.msk [vmem:[#allocation2 + $0xc9] sm:$0xff] %vm462_vm5, %v460_v24  ;;  %v4931_v39 = vld [vmem:[#allocation2 + $0x52] sm:$0xff]  ;;  %v4952_v24 = vld [vmem:[#allocation2 + $0xaa] sm:$0xff] }
  0xc8   : > { %733 = vrot.lane.b32.xlu0 %v4773_v28, %s4346_s27  ;;  %v4941_v54 = vpack.c.bf16 %v4931_v39, %v4931_v39 }
  0xc9   : > { %v847_v31 = vsel %vm462_vm5, %v807_v27, 0.0 }
  0xcb   : > { %729 = vrot.lane.b32.xlu1 %v3572_v32, %s4346_s27  ;;  %v838_v32 = vsel %vm462_vm5, %v804_v29, 0.0  ;;  %v4910_v29 = vpack.c.bf16 %v4892_v19, %v4892_v19 }
  0xcc   : > { %737 = vrot.lane.b32.xlu0 %v4778_v33, %s4346_s27 }
  0xcf   : > { %731 = vrot.lane.b32.xlu1 %v3573_v36, %s4346_s27  ;;  %v853_v36 = vsel %vm462_vm5, %v809_v34, 0.0 }
  0xd0   : > { %741 = vrot.lane.b32.xlu0 %v4783_v37, %s4346_s27 }
  0xd3   : > { %735 = vrot.lane.b32.xlu1 %v4786_v40, %s4346_s27 }
  0xd4   : > { %745 = vrot.lane.b32.xlu0 %v4790_v41, %s4346_s27 }
  0xd7   : > { %739 = vrot.lane.b32.xlu1 %v4794_v44, %s4346_s27 }
  0xd8   : > { %749 = vrot.lane.b32.xlu0 %v4798_v45, %s4346_s27 }
  0xdb   : > { %743 = vrot.lane.b32.xlu1 %v4802_v48, %s4346_s27 }
  0xdc   : > { %753 = vrot.lane.b32.xlu0 %v3584_v49, %s4346_s27 }
  0xdf   : > { %747 = vrot.lane.b32.xlu1 %v4808_v51, %s4346_s27 }
  0xe3   : > { %751 = vrot.lane.b32.xlu1 %v3583_v53, %s4346_s27 }
  0xe7   : > { %755 = vrot.lane.b32.xlu1 %v3585_v55, %s4346_s27 }
  0xfb   : > { %812 = vadd.xlane.f32.xlu0 %v811_v58 }
  0xff   : > { %818 = vadd.xlane.f32.xlu0 %v817_v60  ;;  %v4856_v60 = vld [vmem:[#allocation2 + $0xa] sm:$0xff] }
 0x103   : > { %821 = vadd.xlane.f32.xlu0 %v820_v62 }
 0x107   : > { %824 = vadd.xlane.f32.xlu0 %v823_v0  ;;  %v3587_v0 = vpack.c.bf16 %v4856_v60, %v4856_v60 }
 0x10b   : > { %830 = vadd.xlane.f32.xlu0 %v829_v3  ;;  %815 = vadd.xlane.f32.xlu1 %v814_v4  ;;  %v4873_v3 = vld [vmem:[#allocation2 + $0x4a] sm:$0xff] }
 0x10f   : > { %836 = vadd.xlane.f32.xlu0 %v835_v7  ;;  %827 = vadd.xlane.f32.xlu1 %v826_v11  ;;  %v4888_v7 = vpack.c.bf16 %v4873_v3, %v4873_v3  ;;  %v4890_v11 = vld [vmem:[#allocation2 + $0x22] sm:$0xff] }
 0x110   : > { %v4904_v27 = vpack.c.bf16 %v4890_v11, %v4890_v11 }
 0x113   : > { %842 = vadd.xlane.f32.xlu0 %v841_v26  ;;  %833 = vadd.xlane.f32.xlu1 %v832_v25 }
 0x117   : > { %848 = vadd.xlane.f32.xlu0 %v847_v31  ;;  %839 = vadd.xlane.f32.xlu1 %v838_v32  ;;  %v4912_v31 = vld [vmem:[#allocation2 + $0x3a] sm:$0xff] }
 0x118   : > { %v4914_v32 = vld [vmem:[#allocation2 + $0x7a] sm:$0xff] }
 0x11a   : > { %v4832_v42 = vpop.xlane.xlu0 %598 }
 0x11b   : > { %6340 = vst [vmem:[#allocation27_spill] sm:$0xff] %v4832_v42  ;;  %854 = vadd.xlane.f32.xlu0 %v853_v36  ;;  %845 = vadd.xlane.f32.xlu1 %v844_v38  ;;  %v4922_v36 = vpack.c.bf16 %v4912_v31, %v4912_v31  ;;  %v4929_v38 = vpack.c.bf16 %v4914_v32, %v4914_v32 }
 0x11e   : > { %v4835_v49 = vpop.xlane.xlu0 %601 }
 0x11f   : > { %6341 = vst [vmem:[#allocation28_spill] sm:$0xff] %v4835_v49  ;;  %851 = vadd.xlane.f32.xlu1 %v850_v43  ;;  %v4933_v43 = vld [vmem:[#allocation2 + $0x92] sm:$0xff] }
 0x123   : > { %857 = vadd.xlane.f32.xlu1 %v856_v47  ;;  %v4838_v50 = vpop.xlane.xlu1 %604  ;;  %v4840_v53 = vpop.xlane.xlu0 %610 }
 0x124   : > { %6342 = vst [vmem:[#allocation29_spill] sm:$0xff] %v4838_v50  ;;  %6343 = vst [vmem:[#allocation30_spill] sm:$0xff] %v4840_v53 }
 0x127   : > { %v4842_v55 = vpop.xlane.xlu1 %607  ;;  %v4844_v52 = vpop.xlane.xlu0 %616 }
 0x128   : > { %6344 = vst [vmem:[#allocation31_spill] sm:$0xff] %v4842_v55  ;;  %6345 = vst [vmem:[#allocation32_spill] sm:$0xff] %v4844_v52  ;;  %v3381_v55 = vld [vmem:[#allocation12 + $0x2] ss:$0 sm:$0xff] }
 0x129   : > { %v1011_v53 = vmul.f32 %v3381_v55, %v4871_v2  ;;  %v1013_v50 = vmul.f32 %v3381_v55, %v4858_v61  ;;  %v1010_v2 = vmul.f32 %v3381_v55, %v4856_v60 }
 0x12b   : > { %v4848_v58 = vpop.xlane.xlu1 %613  ;;  %v4850_v59 = vpop.xlane.xlu0 %622  ;;  %v1028_v61 = vsel %vm462_vm5, %v1010_v2, 0.0 }
 0x12c   : > { %6346 = vst [vmem:[#allocation33_spill] sm:$0xff] %v4848_v58  ;;  %6347 = vst [vmem:[#allocation34_spill] sm:$0xff] %v4850_v59 }
 0x12f   : > { %v4860_v62 = vpop.xlane.xlu1 %619  ;;  %v4862_v63 = vpop.xlane.xlu0 %628 }
 0x130   : > { %6348 = vst [vmem:[#allocation35_spill] sm:$0xff] %v4860_v62  ;;  %6349 = vst [vmem:[#allocation36_spill] sm:$0xff] %v4862_v63  ;;  %v4990_v62 = vld [vmem:[#allocation2 + $0xb2] sm:$0xff] }
 0x131   : > { %939 = vrot.lane.b32.xlu0 %v3586_v56, %s4347_s26  ;;  %v4948_v56 = vpack.c.bf16 %v4933_v43, %v4933_v43 }
 0x133   : > { %v4875_v4 = vpop.xlane.xlu1 %625  ;;  %v4877_v5 = vpop.xlane.xlu0 %634 }
 0x134   : > { %6350 = vst [vmem:[#allocation37_spill] sm:$0xff] %v4875_v4  ;;  %6351 = vst [vmem:[#allocation38_spill] sm:$0xff] %v4877_v5  ;;  %941 = vrot.lane.b32.xlu1 %v3587_v0, %s4347_s26  ;;  %v4950_v0 = vld [vmem:[#allocation2 + $0x6a] sm:$0xff] }
 0x135   : > { %947 = vrot.lane.b32.xlu0 %v4869_v1, %s4347_s26 }
 0x137   : > { %v4895_v26 = vpop.xlane.xlu1 %631  ;;  %v4897_v25 = vpop.xlane.xlu0 %640 }
 0x138   : > { %6352 = vst [vmem:[#allocation39_spill] sm:$0xff] %v4895_v26  ;;  %6353 = vst [vmem:[#allocation40_spill] sm:$0xff] %v4897_v25  ;;  %943 = vrot.lane.b32.xlu1 %v4882_v6, %s4347_s26  ;;  %v4968_v26 = vld [vmem:[#allocation2 + $0x82] sm:$0xff] }
 0x139   : > { %951 = vrot.lane.b32.xlu0 %v4888_v7, %s4347_s26  ;;  %v4975_v25 = vpack.c.bf16 %v4968_v26, %v4968_v26 }
 0x13b   : > { %v4916_v34 = vpop.xlane.xlu1 %637  ;;  %v726_v35 = vpop.permute.xlu0 %725 }
 0x13c   : > { %6354 = vst [vmem:[#allocation41_spill] sm:$0xff] %v4916_v34  ;;  %945 = vrot.lane.b32.xlu1 %v4904_v27, %s4347_s26  ;;  %774 = vst.msk [vmem:[#allocation3] sm:$0xf] %vm773_vm7, %v726_v35  ;;  %v4966_v34 = vpack.c.bf16 %v4952_v24, %v4952_v24 }
 0x13d   : > { %955 = vrot.lane.b32.xlu0 %v4910_v29, %s4347_s26 }
 0x13f   : > { %v4935_v46 = vpop.xlane.xlu1 %643  ;;  %v734_v47 = vpop.permute.xlu0 %733 }
 0x140   : > { %6355 = vst [vmem:[#allocation42_spill] sm:$0xff] %v4935_v46  ;;  %949 = vrot.lane.b32.xlu1 %v4922_v36, %s4347_s26  ;;  %778 = vst.msk [vmem:[#allocation3 + $0x30] sm:$0xf] %vm773_vm7, %v734_v47  ;;  %v4959_v47 = vpack.c.bf16 %v4950_v0, %v4950_v0 }
 0x141   : > { %959 = vrot.lane.b32.xlu0 %v4929_v38, %s4347_s26 }
 0x143   : > { %v728_v35 = vpop.permute.xlu1 %727  ;;  %v738_v46 = vpop.permute.xlu0 %737 }
 0x144   : > { %775 = vst.msk [vmem:[#allocation3 + $0xc] sm:$0xf] %vm773_vm7, %v728_v35  ;;  %953 = vrot.lane.b32.xlu1 %v4941_v54, %s4347_s26  ;;  %780 = vst.msk [vmem:[#allocation3 + $0x48] sm:$0xf] %vm773_vm7, %v738_v46  ;;  %v4980_v46 = vld [vmem:[#allocation2 + $0x9a] sm:$0xff] }
 0x145   : > { %963 = vrot.lane.b32.xlu0 %v4948_v56, %s4347_s26 }
 0x147   : > { %v730_v42 = vpop.permute.xlu1 %729  ;;  %v742_v35 = vpop.permute.xlu0 %741 }
 0x148   : > { %776 = vst.msk [vmem:[#allocation3 + $0x18] sm:$0xf] %vm773_vm7, %v730_v42  ;;  %957 = vrot.lane.b32.xlu1 %v4959_v47, %s4347_s26  ;;  %782 = vst.msk [vmem:[#allocation3 + $0x60] sm:$0xf] %vm773_vm7, %v742_v35  ;;  %v4987_v42 = vpack.c.bf16 %v4980_v46, %v4980_v46 }
 0x149   : > { %967 = vrot.lane.b32.xlu0 %v4966_v34, %s4347_s26 }
 0x14a   : > { %6356 = vst [vmem:[#allocation43_spill] sm:$0xff] %v4987_v42 }
 0x14b   : > { %v732_v4 = vpop.permute.xlu1 %731  ;;  %v746_v5 = vpop.permute.xlu0 %745 }
 0x14c   : > { %777 = vst.msk [vmem:[#allocation3 + $0x24] sm:$0xf] %vm773_vm7, %v732_v4  ;;  %961 = vrot.lane.b32.xlu1 %v4975_v25, %s4347_s26  ;;  %784 = vst.msk [vmem:[#allocation3 + $0x78] sm:$0xf] %vm773_vm7, %v746_v5  ;;  %v4997_v4 = vpack.c.bf16 %v4990_v62, %v4990_v62 }
 0x14f   : > { %v736_v35 = vpop.permute.xlu1 %735  ;;  %v750_v63 = vpop.permute.xlu0 %749 }
 0x150   : > { %779 = vst.msk [vmem:[#allocation3 + $0x3c] sm:$0xf] %vm773_vm7, %v736_v35  ;;  %965 = vrot.lane.b32.xlu1 %v4987_v42, %s4347_s26  ;;  %786 = vst.msk [vmem:[#allocation3 + $0x90] sm:$0xf] %vm773_vm7, %v750_v63  ;;  %v1009_v63 = vmul.f32 %v3381_v55, %v4846_v57  ;;  %v1015_v57 = vmul.f32 %v3381_v55, %v4873_v3  ;;  %v1019_v3 = vmul.f32 %v3381_v55, %v4914_v32 }
 0x151   : > { %v1023_v32 = vmul.f32 %v3381_v55, %v4952_v24  ;;  %v1024_v24 = vmul.f32 %v3381_v55, %v4990_v62 }
 0x153   : > { %v740_v58 = vpop.permute.xlu1 %739  ;;  %v754_v59 = vpop.permute.xlu0 %753 }
 0x154   : > { %781 = vst.msk [vmem:[#allocation3 + $0x54] sm:$0xf] %vm773_vm7, %v740_v58  ;;  %969 = vrot.lane.b32.xlu1 %v4997_v4, %s4347_s26  ;;  %788 = vst.msk [vmem:[#allocation3 + $0xa8] sm:$0xf] %vm773_vm7, %v754_v59  ;;  %v1025_v58 = vsel %vm462_vm5, %v1009_v63, 0.0  ;;  %v1031_v59 = vsel %vm462_vm5, %v1011_v53, 0.0 }
 0x155   : > { %v1924_v53 = vld [vmem:[#allocation2 + $0xc9] sm:$0xff]  ;;  %v1043_v63 = vsel %vm462_vm5, %v1015_v57, 0.0 }
 0x157   : > { %v744_v5 = vpop.permute.xlu1 %743 }
 0x158   : > { %783 = vst.msk [vmem:[#allocation3 + $0x6c] sm:$0xf] %vm773_vm7, %v744_v5  ;;  %v1012_v5 = vmul.f32 %v3381_v55, %v4890_v11  ;;  %v5022_v11 = vpack.c.bf16 %v1924_v53, %v1924_v53  ;;  %v1067_v53 = vsel %vm462_vm5, %v1023_v32, 0.0  ;;  %v5101_v32 = vld [vmem:[#allocation2 + $0xa9] sm:$0xff] }
 0x15a   : > { %1398 = vst.msk [vmem:[#allocation3 + $0xb8] sm:$0xf] %vm559_vm6, %v5022_v11 }
 0x15b   : > { %v748_v35 = vpop.permute.xlu1 %747 }
 0x15c   : > { %785 = vst.msk [vmem:[#allocation3 + $0x84] sm:$0xf] %vm773_vm7, %v748_v35  ;;  %v1034_v35 = vsel %vm462_vm5, %v1012_v5, 0.0  ;;  %v1016_v5 = vmul.f32 %v3381_v55, %v4931_v39  ;;  %v1020_v39 = vmul.f32 %v3381_v55, %v4968_v26  ;;  %v1070_v26 = vsel %vm462_vm5, %v1024_v24, 0.0 }
 0x15f   : > { %v752_v52 = vpop.permute.xlu1 %751 }
 0x160   : > { %787 = vst.msk [vmem:[#allocation3 + $0x9c] sm:$0xf] %vm773_vm7, %v752_v52  ;;  %v1923_v52 = vld [vmem:[#allocation2 + $0xc1] sm:$0xff] }
 0x161   : > { %v5015_v42 = vpack.c.bf16 %v1923_v52, %v1923_v52  ;;  %v1018_v52 = vmul.f32 %v3381_v55, %v4950_v0  ;;  %v1022_v0 = vmul.f32 %v3381_v55, %v4980_v46 }
 0x163   : > { %v756_v49 = vpop.permute.xlu1 %755  ;;  %1397 = vst.msk [vmem:[#allocation3 + $0xac] sm:$0xf] %vm559_vm6, %v5015_v42  ;;  %v1052_v57 = vsel %vm462_vm5, %v1018_v52, 0.0 }
 0x164   : > { %789 = vst.msk [vmem:[#allocation3 + $0xb4] sm:$0xf] %vm773_vm7, %v756_v49  ;;  %v1037_v49 = vsel %vm462_vm5, %v1013_v50, 0.0 }
 0x168   : > { %1026 = vadd.xlane.f32.xlu0 %v1025_v58  ;;  %v1017_v58 = vmul.f32 %v3381_v55, %v4892_v19  ;;  %v1046_v19 = vsel %vm462_vm5, %v1016_v5, 0.0 }
 0x16a   : > { %v1049_v50 = vsel %vm462_vm5, %v1017_v58, 0.0 }
 0x16c   : > { %1032 = vadd.xlane.f32.xlu0 %v1031_v59  ;;  %v1014_v59 = vmul.f32 %v3381_v55, %v4912_v31  ;;  %v1021_v31 = vmul.f32 %v3381_v55, %v4933_v43  ;;  %v1058_v43 = vsel %vm462_vm5, %v1020_v39, 0.0  ;;  %v5108_v39 = vpack.c.bf16 %v5101_v32, %v5101_v32 }
 0x16e   : > { %v1040_v60 = vsel %vm462_vm5, %v1014_v59, 0.0  ;;  %1395 = vst.msk [vmem:[#allocation3 + $0x94] sm:$0xf] %vm559_vm6, %v5108_v39 }
 0x170   : > { %1035 = vadd.xlane.f32.xlu0 %v1034_v35  ;;  %v1055_v35 = vsel %vm462_vm5, %v1019_v3, 0.0 }
 0x174   : > { %1038 = vadd.xlane.f32.xlu0 %v1037_v49  ;;  %v1061_v49 = vsel %vm462_vm5, %v1021_v31, 0.0 }
 0x178   : > { %1044 = vadd.xlane.f32.xlu0 %v1043_v63  ;;  %1029 = vadd.xlane.f32.xlu1 %v1028_v61  ;;  %v1064_v61 = vsel %vm462_vm5, %v1022_v0, 0.0 }
 0x17c   : > { %1050 = vadd.xlane.f32.xlu0 %v1049_v50  ;;  %1041 = vadd.xlane.f32.xlu1 %v1040_v60 }
 0x180   : > { %1056 = vadd.xlane.f32.xlu0 %v1055_v35  ;;  %1047 = vadd.xlane.f32.xlu1 %v1046_v19 }
 0x184   : > { %v5042_v2 = vpop.xlane.xlu0 %812  ;;  %1062 = vadd.xlane.f32.xlu0 %v1061_v49  ;;  %1053 = vadd.xlane.f32.xlu1 %v1052_v57 }
 0x185   : > { %6357 = vst [vmem:[#allocation44_spill] sm:$0xff] %v5042_v2 }
 0x188   : > { %1068 = vadd.xlane.f32.xlu0 %v1067_v53  ;;  %v5047_v63 = vpop.xlane.xlu0 %818  ;;  %1059 = vadd.xlane.f32.xlu1 %v1058_v43 }
 0x18c   : > { %v5051_v58 = vpop.xlane.xlu0 %821  ;;  %1065 = vadd.xlane.f32.xlu1 %v1064_v61 }
 0x190   : > { %v5054_v59 = vpop.xlane.xlu0 %824  ;;  %1071 = vadd.xlane.f32.xlu1 %v1070_v26 }
 0x194   : > { %v5056_v50 = vpop.xlane.xlu0 %830  ;;  %v5058_v60 = vpop.xlane.xlu1 %815 }
 0x198   : > { %v5060_v46 = vpop.xlane.xlu0 %836  ;;  %v5062_v3 = vpop.xlane.xlu1 %827 }
 0x19c   : > { %v5064_v5 = vpop.xlane.xlu0 %842  ;;  %v5066_v35 = vpop.xlane.xlu1 %833 }
 0x19d   : > { %6358 = vst [vmem:[#allocation45_spill] sm:$0xff] %v5066_v35 }
 0x19e   : > { %1153 = vrot.lane.b32.xlu0 %v4704_v13, %s4348_s19 }
 0x1a0   : > { %v5070_v55 = vpop.xlane.xlu0 %848  ;;  %v5072_v62 = vpop.xlane.xlu1 %839 }
 0x1a1   : > { %6359 = vst [vmem:[#allocation46_spill] sm:$0xff] %v5070_v55  ;;  %6360 = vst [vmem:[#allocation47_spill] sm:$0xff] %v5072_v62  ;;  %1155 = vrot.lane.b32.xlu1 %v4708_v15, %s4348_s19  ;;  %v5093_v15 = vld [vmem:[#allocation2 + $0x99] sm:$0xff] }
 0x1a2   : > { %1161 = vrot.lane.b32.xlu0 %v4706_v14, %s4348_s19  ;;  %v5097_v49 = vpack.c.bf16 %v5093_v15, %v5093_v15  ;;  %v2127_v62 = vld [vmem:[#allocation2 + $0x52] sm:$0xff]  ;;  %v5324_v55 = vld [vmem:[#allocation10 + $0x88] sm:$0xff]  }
 0x1a4   : > { %v5078_v19 = vpop.xlane.xlu0 %854  ;;  %v5080_v31 = vpop.xlane.xlu1 %845  ;;  %1394 = vst.msk [vmem:[#allocation3 + $0x88] sm:$0xf] %vm559_vm6, %v5097_v49 }
 0x1a5   : > { %6361 = vst [vmem:[#allocation48_spill] sm:$0xff] %v5078_v19  ;;  %6362 = vst [vmem:[#allocation49_spill] sm:$0xff] %v5080_v31  ;;  %1157 = vrot.lane.b32.xlu1 %v4700_v12, %s4348_s19  ;;  %v2125_v31 = vld [vmem:[#allocation2 + $0x3a] sm:$0xff]  ;;  %v2126_v19 = vld [vmem:[#allocation2 + $0x4a] sm:$0xff] }
 0x1a6   : > { %1165 = vrot.lane.b32.xlu0 %v4710_v9, %s4348_s19  ;;  %v3683_v2 = vpack.c.bf16 %v2125_v31, %v2125_v31  ;;  %v2129_v31 = vld [vmem:[#allocation2 + $0x6a] sm:$0xff] }
 0x1a8   : > { %v5086_v13 = vpop.xlane.xlu1 %851  ;;  %v940_v52 = vpop.permute.xlu0 %939  ;;  %2205 = vst.msk [vmem:[#allocation3 + $0x14] sm:$0xf] %vm559_vm6, %v3683_v2  ;;  %v2128_v2 = vld [vmem:[#allocation2 + $0x62] sm:$0xff] }
 0x1a9   : > { %6363 = vst [vmem:[#allocation50_spill] sm:$0xff] %v5086_v13  ;;  %1159 = vrot.lane.b32.xlu1 %v4712_v16, %s4348_s19  ;;  %988 = vst.msk [vmem:[#allocation3] sm:$0xf] %vm987_vm8, %v940_v52 }
 0x1aa   : > { %1169 = vrot.lane.b32.xlu0 %v4714_v17, %s4348_s19  ;;  %v5114_v17 = vld [vmem:[#allocation2 + $0xc0] sm:$0xff] }
 0x1ac   : > { %v5099_v57 = vpop.xlane.xlu1 %857  ;;  %v948_v9 = vpop.permute.xlu0 %947 }
 0x1ad   : > { %6364 = vst [vmem:[#allocation51_spill] sm:$0xff] %v5099_v57  ;;  %1163 = vrot.lane.b32.xlu1 %v4716_v8, %s4348_s19  ;;  %992 = vst.msk [vmem:[#allocation3 + $0x30] sm:$0xf] %vm987_vm8, %v948_v9  ;;  %v3963_v57 = vld [vmem:[#allocation10 + $0x30] sm:$0xff]  }
 0x1ae   : > { %1173 = vrot.lane.b32.xlu0 %v4718_v18, %s4348_s19  ;;  %v5126_v18 = vpack.c.bf16 %v5114_v17, %v5114_v17 }
 0x1b0   : > { %v942_v53 = vpop.permute.xlu1 %941  ;;  %v952_v43 = vpop.permute.xlu0 %951 }
 0x1b1   : > { %989 = vst.msk [vmem:[#allocation3 + $0xc] sm:$0xf] %vm987_vm8, %v942_v53  ;;  %1167 = vrot.lane.b32.xlu1 %v4720_v10, %s4348_s19  ;;  %994 = vst.msk [vmem:[#allocation3 + $0x48] sm:$0xf] %vm987_vm8, %v952_v43  ;;  %v5134_v10 = vld [vmem:[#allocation2 + $0xb1] sm:$0xff]  ;;  %v5156_v43 = vld [vmem:[#allocation2 + $0x19] sm:$0xff] }
 0x1b2   : > { %1177 = vrot.lane.b32.xlu0 %v4724_v20, %s4348_s19  ;;  %v5138_v20 = vpack.c.bf16 %v5134_v10, %v5134_v10 }
 0x1b4   : > { %v944_v0 = vpop.permute.xlu1 %943  ;;  %v956_v61 = vpop.permute.xlu0 %955  ;;  %1396 = vst.msk [vmem:[#allocation3 + $0xa0] sm:$0xf] %vm559_vm6, %v5138_v20 }
 0x1b5   : > { %990 = vst.msk [vmem:[#allocation3 + $0x18] sm:$0xf] %vm987_vm8, %v944_v0  ;;  %1171 = vrot.lane.b32.xlu1 %v4726_v21, %s4348_s19  ;;  %996 = vst.msk [vmem:[#allocation3 + $0x60] sm:$0xf] %vm987_vm8, %v956_v61  ;;  %v5146_v21 = vld [vmem:[#allocation2 + $0xc8] sm:$0xff]  ;;  %v3618_v0 = vpack.c.bf16 %v5156_v43, %v5156_v43 }
 0x1b6   : > { %1181 = vrot.lane.b32.xlu0 %v5126_v18, %s4348_s19  ;;  %v5153_v53 = vpack.c.bf16 %v5146_v21, %v5146_v21  ;;  %v3961_v61 = vld [vmem:[#allocation10 + $0x38] sm:$0xff]  }
 0x1b7   : > { %1383 = vst.msk [vmem:[#allocation3 + $0x4] sm:$0xf] %vm559_vm6, %v3618_v0  ;;  %v3965_v0 = vld [vmem:[#allocation10 + $0x28] sm:$0xff]  }
 0x1b8   : > { %v946_v24 = vpop.permute.xlu1 %945  ;;  %v960_v26 = vpop.permute.xlu0 %959 }
 0x1b9   : > { %991 = vst.msk [vmem:[#allocation3 + $0x24] sm:$0xf] %vm987_vm8, %v946_v24  ;;  %1175 = vrot.lane.b32.xlu1 %v4728_v22, %s4348_s19  ;;  %998 = vst.msk [vmem:[#allocation3 + $0x78] sm:$0xf] %vm987_vm8, %v960_v26  ;;  %v3960_v22 = vld [vmem:[#allocation10 + $0x78] sm:$0xff]  }
 0x1ba   : > { %3699 = vmatprep.subr.bf16.mxu0 %v3960_v22  ;;  %3793 = vmatprep.subr.bf16.mxu1 %v3960_v22  ;;  %v3964_v22 = vld [vmem:[#allocation10 + $0x68] sm:$0xff]  }
 0x1bb   : > { %3700 = vmatpush3.bf16.msra.mxu0 %v3961_v61  ;;  %3801 = vmatpush3.bf16.msra.mxu1 %v3961_v61  ;;  %v3966_v61 = vld [vmem:[#allocation10 + $0x60] sm:$0xff]  }
 0x1bc   : > { %v950_v52 = vpop.permute.xlu1 %949  ;;  %v964_v9 = vpop.permute.xlu0 %963 }
 0x1bd   : > { %993 = vst.msk [vmem:[#allocation3 + $0x3c] sm:$0xf] %vm987_vm8, %v950_v52  ;;  %1179 = vrot.lane.b32.xlu1 %v4730_v23, %s4348_s19  ;;  %1000 = vst.msk [vmem:[#allocation3 + $0x90] sm:$0xf] %vm987_vm8, %v964_v9  ;;  %v3962_v23 = vld [vmem:[#allocation10 + $0x70] sm:$0xff]  }
 0x1be   : > { %v5165_v52 = vld [vmem:[#allocation2 + $0x21] sm:$0xff]  ;;  %3701 = vmatprep.subr.bf16.mxu0 %v3962_v23  ;;  %3794 = vmatprep.subr.bf16.mxu1 %v3962_v23  ;;  %v3968_v23 = vld [vmem:[#allocation10 + $0x58] sm:$0xff]  }
 0x1bf   : > { %v3619_v9 = vpack.c.bf16 %v5165_v52, %v5165_v52  ;;  %3702 = vmatpush3.bf16.msra.mxu0 %v3963_v57  ;;  %3802 = vmatpush3.bf16.msra.mxu1 %v3963_v57 }
 0x1c0   : > { %v954_v24 = vpop.permute.xlu1 %953  ;;  %v968_v26 = vpop.permute.xlu0 %967  ;;  %3703 = vmatprep.subr.bf16.mxu0 %v3964_v22  ;;  %3795 = vmatprep.subr.bf16.mxu1 %v3964_v22 }
 0x1c1   : > { %995 = vst.msk [vmem:[#allocation3 + $0x54] sm:$0xf] %vm987_vm8, %v954_v24  ;;  %1183 = vrot.lane.b32.xlu1 %v5153_v53, %s4348_s19  ;;  %1002 = vst.msk [vmem:[#allocation3 + $0xa8] sm:$0xf] %vm987_vm8, %v968_v26 }
 0x1c2   : > { %1384 = vst.msk [vmem:[#allocation3 + $0x10] sm:$0xf] %vm559_vm6, %v3619_v9 }
 0x1c3   : > { %3704 = vmatpush3.bf16.msra.mxu0 %v3965_v0  ;;  %3803 = vmatpush3.bf16.msra.mxu1 %v3965_v0  ;;  %v3970_v0 = vld [vmem:[#allocation10 + $0x50] sm:$0xff]  }
 0x1c4   : > { %v958_v13 = vpop.permute.xlu1 %957  ;;  %3705 = vmatprep.subr.bf16.mxu0 %v3966_v61  ;;  %3796 = vmatprep.subr.bf16.mxu1 %v3966_v61  ;;  %v3975_v61 = vld [vmem:[#allocation10] sm:$0xff]  }
 0x1c5   : > { %997 = vst.msk [vmem:[#allocation3 + $0x6c] sm:$0xf] %vm987_vm8, %v958_v13  ;;  %1548 = vrot.lane.b32.xlu1 %v4882_v6, %s4346_s27  ;;  %v5176_v13 = vld [vmem:[#allocation12 + $0x3] ss:$0 sm:$0xff]  ;;  %v3967_v6 = vld [vmem:[#allocation10 + $0x20] sm:$0xff]  }
 0x1c6   : > { %v1223_v57 = vmul.f32 %v5176_v13, %v4665_v30  ;;  %v3972_v30 = vld [vmem:[#allocation10 + $0x48] sm:$0xff]  }
 0x1c7   : > { %3706 = vmatpush3.bf16.msra.mxu0 %v3967_v6  ;;  %3804 = vmatpush3.bf16.msra.mxu1 %v3967_v6 }
 0x1c8   : > { %v962_v24 = vpop.permute.xlu1 %961  ;;  %3707 = vmatprep.subr.bf16.mxu0 %v3968_v23  ;;  %3797 = vmatprep.subr.bf16.mxu1 %v3968_v23  ;;  %v1239_v22 = vsel %vm462_vm5, %v1223_v57, 0.0  ;;  %v5239_v57 = vld [vmem:[#allocation2 + $0x61] sm:$0xff]  ;;  %v5241_v23 = vld [vmem:[#allocation2 + $0xca] sm:$0xff] }
 0x1c9   : > { %999 = vst.msk [vmem:[#allocation3 + $0x84] sm:$0xf] %vm987_vm8, %v962_v24  ;;  %1550 = vrot.lane.b32.xlu1 %v4904_v27, %s4346_s27  ;;  %v3969_v27 = vld [vmem:[#allocation10 + $0x18] sm:$0xff]   ;;  %v3973_v24 = vld [vmem:[#allocation10 + $0x8] sm:$0xff]  }
 0x1cb   : > { %3708 = vmatpush3.bf16.msra.mxu0 %v3969_v27  ;;  %3805 = vmatpush3.bf16.msra.mxu1 %v3969_v27  ;;  %v1925_v27 = vld [vmem:[#allocation2 + $0xd9] sm:$0xff] }
 0x1cc   : > { %v966_v26 = vpop.permute.xlu1 %965  ;;  %3709 = vmatprep.subr.bf16.mxu0 %v3970_v0  ;;  %3798 = vmatprep.subr.bf16.mxu1 %v3970_v0  ;;  %v1713_v0 = vld [vmem:[#allocation2 + $0xe0] sm:$0xff] }
 0x1cd   : > { %1001 = vst.msk [vmem:[#allocation3 + $0x9c] sm:$0xf] %vm987_vm8, %v966_v26  ;;  %1762 = vrot.lane.b32.xlu1 %v4700_v12, %s4347_s26  ;;  %v3971_v12 = vld [vmem:[#allocation10 + $0x10] sm:$0xff]  }
 0x1cf   : > { %3710 = vmatpush3.bf16.msra.mxu0 %v3971_v12  ;;  %3806 = vmatpush3.bf16.msra.mxu1 %v3971_v12 }
 0x1d0   : > { %v970_v9 = vpop.permute.xlu1 %969  ;;  %3711 = vmatprep.subr.bf16.mxu0 %v3972_v30  ;;  %3799 = vmatprep.subr.bf16.mxu1 %v3972_v30  ;;  %v5257_v30 = vld [vmem:[#allocation2 + $0x51] sm:$0xff] }
 0x1d1   : > { %1003 = vst.msk [vmem:[#allocation3 + $0xb4] sm:$0xf] %vm987_vm8, %v970_v9  ;;  %1764 = vrot.lane.b32.xlu1 %v4712_v16, %s4347_s26  ;;  %v3974_v16 = vld [vmem:[#allocation10 + $0x40] sm:$0xff]  }
 0x1d3   : > { %3712 = vmatpush3.bf16.msra.mxu0 %v3973_v24  ;;  %3807 = vmatpush3.bf16.msra.mxu1 %v3973_v24  ;;  %v3680_v24 = vpack.c.bf16 %v1925_v27, %v1925_v27 }
 0x1d4   : > { %3713 = vmatprep.subr.bf16.mxu0 %v3974_v16  ;;  %3800 = vmatprep.subr.bf16.mxu1 %v3974_v16  ;;  %v3623_v16 = vpack.c.bf16 %v5257_v30, %v5257_v30 }
 0x1d5   : > { %1240 = vadd.xlane.f32.xlu0 %v1239_v22  ;;  %1975 = vrot.lane.b32.xlu1 %v4773_v28, %s4348_s19  ;;  %v5195_v28 = vld [vmem:[#allocation2 + $0x31] sm:$0xff]  ;;  %v5253_v22 = vld [vmem:[#allocation2 + $0x79] sm:$0xff] }
 0x1d6   : > { %v3620_v6 = vpack.c.bf16 %v5195_v28, %v5195_v28  ;;  %v3626_v12 = vpack.c.bf16 %v5253_v22, %v5253_v22  ;;  %1388 = vst.msk [vmem:[#allocation3 + $0x40] sm:$0xf] %vm559_vm6, %v3623_v16 }
 0x1d7   : > { %3714 = vmatpush3.bf16.msra.mxu0 %v3975_v61  ;;  %3808 = vmatpush3.bf16.msra.mxu1 %v3975_v61  ;;  %v5263_v61 = vld [vmem:[#allocation2 + $0x60] sm:$0xff] }
 0x1d8   : > { %1385 = vst.msk [vmem:[#allocation3 + $0x1c] sm:$0xf] %vm559_vm6, %v3620_v6  ;;  %1391 = vst.msk [vmem:[#allocation3 + $0x64] sm:$0xf] %vm559_vm6, %v3626_v12  ;;  %3773 = vmatprep.subr.bf16.mxu1 %v5324_v55 }
 0x1d9   : > { %1977 = vrot.lane.b32.xlu1 %v4786_v40, %s4348_s19  ;;  %v5202_v40 = vld [vmem:[#allocation2 + $0x39] sm:$0xff] }
 0x1dd   : > { %1572 = vrot.lane.b32.xlu1 %v4966_v34, %s4346_s27  ;;  %v3621_v34 = vpack.c.bf16 %v5202_v40, %v5202_v40 }
 0x1df   : > { %1386 = vst.msk [vmem:[#allocation3 + $0x28] sm:$0xf] %vm559_vm6, %v3621_v34  ;;  %v3665_v34 = vpack.c.bf16 %v1713_v0, %v1713_v0  ;;  %v5290_v0 = vld [vmem:[#allocation2 + $0x81] sm:$0xff] }
 0x1e0   : > { %v3627_v12 = vpack.c.bf16 %v5290_v0, %v5290_v0 }
 0x1e1   : > { %1786 = vrot.lane.b32.xlu1 %v5126_v18, %s4347_s26  ;;  %v5215_v18 = vld [vmem:[#allocation2 + $0xc2] sm:$0xff] }
 0x1e2   : > { %1392 = vst.msk [vmem:[#allocation3 + $0x70] sm:$0xf] %vm559_vm6, %v3627_v12  ;;  %v2124_v12 = vld [vmem:[#allocation2 + $0x32] sm:$0xff] }
 0x1e5   : > { %1788 = vrot.lane.b32.xlu1 %v5153_v53, %s4347_s26 }
 0x1e9   : > { %1552 = vrot.lane.b32.xlu1 %v4869_v1, %s4346_s27  ;;  %v3648_v1 = vpack.c.bf16 %v5215_v18, %v5215_v18 }
 0x1eb   : > { %1574 = vrot.lane.b32.xlu0 %v4997_v4, %s4346_s27  ;;  %v1712_v4 = vld [vmem:[#allocation2 + $0xd8] sm:$0xff] }
 0x1ed   : > { %1554 = vrot.lane.b32.xlu1 %v4922_v36, %s4346_s27 }
 0x1ef   : > { %1766 = vrot.lane.b32.xlu0 %v4706_v14, %s4347_s26  ;;  %v5229_v14 = vld [vmem:[#allocation2 + $0x49] sm:$0xff] }
 0x1f0   : > { %v3622_v36 = vpack.c.bf16 %v5229_v14, %v5229_v14 }
 0x1f1   : > { %v5217_v53 = vpop.xlane.xlu0 %1026  ;;  %1999 = vrot.lane.b32.xlu1 %v5015_v42, %s4348_s19  ;;  %v3664_v42 = vpack.c.bf16 %v1712_v4, %v1712_v4  ;;  %v5276_v4 = vld [vmem:[#allocation2 + $0x69] sm:$0xff] }
 0x1f2   : > { %6365 = vst [vmem:[#allocation52_spill] sm:$0xff] %v5217_v53  ;;  %1387 = vst.msk [vmem:[#allocation3 + $0x34] sm:$0xf] %vm559_vm6, %v3622_v36  ;;  %v3654_v36 = vpack.c.bf16 %v5263_v61, %v5263_v61 }
 0x1f3   : > { %1979 = vrot.lane.b32.xlu0 %v4778_v33, %s4348_s19 }
 0x1f5   : > { %v5225_v26 = vpop.xlane.xlu0 %1032  ;;  %2001 = vrot.lane.b32.xlu1 %v5022_v11, %s4348_s19  ;;  %v3624_v11 = vpack.c.bf16 %v5239_v57, %v5239_v57 }
 0x1f7   : > { %1576 = vrot.lane.b32.xlu0 %v3648_v1, %s4346_s27  ;;  %1389 = vst.msk [vmem:[#allocation3 + $0x4c] sm:$0xf] %vm559_vm6, %v3624_v11  ;;  %v5272_v1 = vld [vmem:[#allocation2 + $0x91] sm:$0xff] }
 0x1f9   : > { %v5235_v33 = vpop.xlane.xlu0 %1035  ;;  %1768 = vrot.lane.b32.xlu1 %v4716_v8, %s4347_s26  ;;  %v3649_v8 = vpack.c.bf16 %v5241_v23, %v5241_v23 }
 0x1fb   : > { %1790 = vrot.lane.b32.xlu0 %v3664_v42, %s4347_s26  ;;  %v3625_v42 = vpack.c.bf16 %v5276_v4, %v5276_v4 }
 0x1fd   : > { %v5247_v9 = vpop.xlane.xlu0 %1038  ;;  %1981 = vrot.lane.b32.xlu1 %v4794_v44, %s4348_s19  ;;  %1390 = vst.msk [vmem:[#allocation3 + $0x58] sm:$0xf] %vm559_vm6, %v3625_v42  ;;  %v5306_v42 = vld [vmem:[#allocation2 + $0x78] sm:$0xff] }
 0x1ff   : > { %1556 = vrot.lane.b32.xlu0 %v4888_v7, %s4346_s27  ;;  %v3628_v7 = vpack.c.bf16 %v5272_v1, %v5272_v1 }
 0x201   : > { %v5266_v44 = vpop.xlane.xlu0 %1044  ;;  %1578 = vrot.lane.b32.xlu1 %v3649_v8, %s4346_s27  ;;  %v5269_v6 = vpop.xlane.xlu1 %1029  ;;  %1393 = vst.msk [vmem:[#allocation3 + $0x7c] sm:$0xf] %vm559_vm6, %v3628_v7  ;;  %v1926_v8 = vld [vmem:[#allocation2 + $0xe1] sm:$0xff] }
 0x202   : > { %v5302_v7 = vld [vmem:[#allocation2 + $0x68] sm:$0xff] }
 0x203   : > { %2003 = vrot.lane.b32.xlu0 %v3680_v24, %s4348_s19 }
 0x205   : > { %v5284_v11 = vpop.xlane.xlu0 %1050  ;;  %1792 = vrot.lane.b32.xlu1 %v3665_v34, %s4347_s26  ;;  %v5287_v27 = vpop.xlane.xlu1 %1041  ;;  %v3681_v34 = vpack.c.bf16 %v1926_v8, %v1926_v8  ;;  %v3656_v8 = vpack.c.bf16 %v5306_v42, %v5306_v42 }
 0x207   : > { %1770 = vrot.lane.b32.xlu0 %v3654_v36, %s4347_s26 }
 0x209   : > { %v5295_v24 = vpop.xlane.xlu0 %1056  ;;  %1558 = vrot.lane.b32.xlu1 %v4941_v54, %s4346_s27  ;;  %v5299_v16 = vpop.xlane.xlu1 %1047  ;;  %v3655_v54 = vpack.c.bf16 %v5302_v7, %v5302_v7 }
 0x20a   : > { %6366 = vst [vmem:[#allocation53_spill] sm:$0xff] %v5299_v16  ;;  %v3685_v16 = vpack.c.bf16 %v2127_v62, %v2127_v62 }
 0x20b   : > { %1983 = vrot.lane.b32.xlu0 %v4783_v37, %s4348_s19  ;;  %v3682_v37 = vpack.c.bf16 %v2124_v12, %v2124_v12  ;;  %v2131_v12 = vld [vmem:[#allocation2 + $0x82] sm:$0xff] }
 0x20c   : > { %2207 = vst.msk [vmem:[#allocation3 + $0x2c] sm:$0xf] %vm559_vm6, %v3685_v16  ;;  %v3686_v16 = vpack.c.bf16 %v2128_v2, %v2128_v2 }
 0x20d   : > { %v5308_v36 = vpop.xlane.xlu0 %1062  ;;  %2005 = vrot.lane.b32.xlu1 %v3681_v34, %s4348_s19  ;;  %v5311_v53 = vpop.xlane.xlu1 %1053  ;;  %2204 = vst.msk [vmem:[#allocation3 + $0x8] sm:$0xf] %vm559_vm6, %v3682_v37 }
 0x20e   : > { %6367 = vst [vmem:[#allocation54_spill] sm:$0xff] %v5308_v36  ;;  %6368 = vst [vmem:[#allocation55_spill] sm:$0xff] %v5311_v53  ;;  %v3684_v53 = vpack.c.bf16 %v2126_v19, %v2126_v19  ;;  %v5336_v19 = vld [vmem:[#allocation2 + $0x80] sm:$0xff] }
 0x20f   : > { %1560 = vrot.lane.b32.xlu0 %v4910_v29, %s4346_s27  ;;  %v3657_v37 = vpack.c.bf16 %v5336_v19, %v5336_v19  ;;  %2208 = vst.msk [vmem:[#allocation3 + $0x38] sm:$0xf] %vm559_vm6, %v3686_v16  ;;  %v2133_v16 = vld [vmem:[#allocation2 + $0x9a] sm:$0xff] }
 0x210   : > { %2206 = vst.msk [vmem:[#allocation3 + $0x20] sm:$0xf] %vm559_vm6, %v3684_v53  ;;  %v5341_v53 = vld [vmem:[#allocation2 + $0x90] sm:$0xff] }
 0x211   : > { %v5319_v36 = vpop.xlane.xlu0 %1068  ;;  %1772 = vrot.lane.b32.xlu1 %v3655_v54, %s4347_s26  ;;  %v5322_v34 = vpop.xlane.xlu1 %1059  ;;  %v3687_v54 = vpack.c.bf16 %v2129_v31, %v2129_v31  ;;  %v2132_v31 = vld [vmem:[#allocation2 + $0x92] sm:$0xff] }
 0x212   : > { %6369 = vst [vmem:[#allocation56_spill] sm:$0xff] %v5319_v36  ;;  %6370 = vst [vmem:[#allocation57_spill] sm:$0xff] %v5322_v34  ;;  %v3689_v34 = vpack.c.bf16 %v2131_v12, %v2131_v12  ;;  %v2135_v12 = vld [vmem:[#allocation2 + $0xb2] sm:$0xff]  ;;  %v4015_v36 = vld [vmem:[#allocation2 + $0xa8] sm:$0xff] }
 0x213   : > { %1774 = vrot.lane.b32.xlu0 %v3656_v8, %s4347_s26  ;;  %v2130_v8 = vld [vmem:[#allocation2 + $0x7a] sm:$0xff]  ;;  %2209 = vst.msk [vmem:[#allocation3 + $0x44] sm:$0xf] %vm559_vm6, %v3687_v54  ;;  %v3691_v54 = vpack.c.bf16 %v2133_v16, %v2133_v16  ;;  %v5386_v16 = vld [vmem:[#allocation2 + $0xc2] sm:$0xff] }
 0x214   : > { %2211 = vst.msk [vmem:[#allocation3 + $0x5c] sm:$0xf] %vm559_vm6, %v3689_v34 }
 0x215   : > { %1985 = vrot.lane.b32.xlu1 %v4802_v48, %s4348_s19  ;;  %v5334_v29 = vpop.xlane.xlu1 %1065  ;;  %v1154_v62 = vpop.permute.xlu0 %1153  ;;  %2213 = vst.msk [vmem:[#allocation3 + $0x74] sm:$0xf] %vm559_vm6, %v3691_v54 }
 0x216   : > { %6371 = vst [vmem:[#allocation58_spill] sm:$0xff] %v5334_v29  ;;  %1202 = vst.msk [vmem:[#allocation3] sm:$0xf] %vm1201_vm9, %v1154_v62  ;;  %v3688_v29 = vpack.c.bf16 %v2130_v8, %v2130_v8  ;;  %v2134_v8 = vld [vmem:[#allocation2 + $0xaa] sm:$0xff] }
 0x217   : > { %1987 = vrot.lane.b32.xlu0 %v4790_v41, %s4348_s19  ;;  %v3658_v41 = vpack.c.bf16 %v5341_v53, %v5341_v53 }
 0x218   : > { %2210 = vst.msk [vmem:[#allocation3 + $0x50] sm:$0xf] %vm559_vm6, %v3688_v29 }
 0x219   : > { %1562 = vrot.lane.b32.xlu1 %v4959_v47, %s4346_s27  ;;  %v5345_v48 = vpop.xlane.xlu1 %1071  ;;  %v1162_v62 = vpop.permute.xlu0 %1161 }
 0x21a   : > { %6372 = vst [vmem:[#allocation59_spill] sm:$0xff] %v5345_v48  ;;  %1206 = vst.msk [vmem:[#allocation3 + $0x30] sm:$0xf] %vm1201_vm9, %v1162_v62  ;;  %v3693_v62 = vpack.c.bf16 %v2135_v12, %v2135_v12  ;;  %v2139_v12 = vld [vmem:[#allocation2 + $0xe2] sm:$0xff] }
 0x21b   : > { %1564 = vrot.lane.b32.xlu0 %v4929_v38, %s4346_s27  ;;  %v3690_v38 = vpack.c.bf16 %v2132_v31, %v2132_v31 }
 0x21c   : > { %2215 = vst.msk [vmem:[#allocation3 + $0x8c] sm:$0xf] %vm559_vm6, %v3693_v62  ;;  %v3697_v62 = vpack.c.bf16 %v2139_v12, %v2139_v12  ;;  %v4006_v12 = vld [vmem:[#allocation2 + $0x20] sm:$0xff] }
 0x21d   : > { %1776 = vrot.lane.b32.xlu1 %v3657_v37, %s4347_s26  ;;  %v1156_v47 = vpop.permute.xlu1 %1155  ;;  %v1166_v2 = vpop.permute.xlu0 %1165  ;;  %v3692_v37 = vpack.c.bf16 %v2134_v8, %v2134_v8  ;;  %2212 = vst.msk [vmem:[#allocation3 + $0x68] sm:$0xf] %vm559_vm6, %v3690_v38  ;;  %v2137_v38 = vld [vmem:[#allocation2 + $0xca] sm:$0xff]  ;;  %v2138_v8 = vld [vmem:[#allocation2 + $0xda] sm:$0xff] }
 0x21e   : > { %1203 = vst.msk [vmem:[#allocation3 + $0xc] sm:$0xf] %vm1201_vm9, %v1156_v47  ;;  %1208 = vst.msk [vmem:[#allocation3 + $0x48] sm:$0xf] %vm1201_vm9, %v1166_v2  ;;  %v5365_v47 = vld [vmem:[#allocation2 + $0x98] sm:$0xff]  ;;  %v3695_v54 = vpack.c.bf16 %v2137_v38, %v2137_v38 }
 0x21f   : > { %1778 = vrot.lane.b32.xlu0 %v3658_v41, %s4347_s26  ;;  %2214 = vst.msk [vmem:[#allocation3 + $0x80] sm:$0xf] %vm559_vm6, %v3692_v37  ;;  %v3659_v2 = vpack.c.bf16 %v5365_v47, %v5365_v47  ;;  %v3696_v37 = vpack.c.bf16 %v2138_v8, %v2138_v8  ;;  %2219 = vst.msk [vmem:[#allocation3 + $0xbc] sm:$0xf] %vm559_vm6, %v3697_v62 }
 0x220   : > { %2217 = vst.msk [vmem:[#allocation3 + $0xa4] sm:$0xf] %vm559_vm6, %v3695_v54 }
 0x221   : > { %1989 = vrot.lane.b32.xlu1 %v4808_v51, %s4348_s19  ;;  %v1158_v34 = vpop.permute.xlu1 %1157  ;;  %v1170_v29 = vpop.permute.xlu0 %1169  ;;  %v5374_v51 = vld [vmem:[#allocation2 + $0xa8] sm:$0xff]  ;;  %2218 = vst.msk [vmem:[#allocation3 + $0xb0] sm:$0xf] %vm559_vm6, %v3696_v37  ;;  %v5422_v37 = vld [vmem:[#allocation2 + $0x38] sm:$0xff] }
 0x222   : > { %1204 = vst.msk [vmem:[#allocation3 + $0x18] sm:$0xf] %vm1201_vm9, %v1158_v34  ;;  %1210 = vst.msk [vmem:[#allocation3 + $0x60] sm:$0xf] %vm1201_vm9, %v1170_v29  ;;  %v1226_v62 = vmul.f32 %v5422_v37, %v5176_v13 }
 0x223   : > { %1991 = vrot.lane.b32.xlu0 %v4798_v45, %s4348_s19  ;;  %v3660_v45 = vpack.c.bf16 %v5374_v51, %v5374_v51 }
 0x225   : > { %1566 = vrot.lane.b32.xlu1 %v4975_v25, %s4346_s27  ;;  %v1160_v41 = vpop.permute.xlu1 %1159  ;;  %v1174_v31 = vpop.permute.xlu0 %1173  ;;  %v3694_v25 = vpack.c.bf16 %v5386_v16, %v5386_v16 }
 0x226   : > { %1205 = vst.msk [vmem:[#allocation3 + $0x24] sm:$0xf] %vm1201_vm9, %v1160_v41  ;;  %1212 = vst.msk [vmem:[#allocation3 + $0x78] sm:$0xf] %vm1201_vm9, %v1174_v31  ;;  %v6373_v31 = vld [vmem:[#allocation43_spill] sm:$0xff] }
 0x227   : > { %1568 = vrot.lane.b32.xlu0 %v4948_v56, %s4346_s27  ;;  %2216 = vst.msk [vmem:[#allocation3 + $0x98] sm:$0xf] %vm559_vm6, %v3694_v25 }
 0x229   : > { %1780 = vrot.lane.b32.xlu1 %v3659_v2, %s4347_s26  ;;  %v1164_v34 = vpop.permute.xlu1 %1163  ;;  %v1178_v29 = vpop.permute.xlu0 %1177  ;;  %v5401_v2 = vld [vmem:[#allocation2 + $0xb0] sm:$0xff] }
 0x22a   : > { %1207 = vst.msk [vmem:[#allocation3 + $0x3c] sm:$0xf] %vm1201_vm9, %v1164_v34  ;;  %1214 = vst.msk [vmem:[#allocation3 + $0x90] sm:$0xf] %vm1201_vm9, %v1178_v29  ;;  %v3661_v38 = vpack.c.bf16 %v5401_v2, %v5401_v2  ;;  %v1224_v34 = vmul.f32 %v4006_v12, %v5176_v13 }
 0x22b   : > { %1782 = vrot.lane.b32.xlu0 %v3660_v45, %s4347_s26 }
 0x22d   : > { %1993 = vrot.lane.b32.xlu1 %v5097_v49, %s4348_s19  ;;  %v1168_v56 = vpop.permute.xlu1 %1167  ;;  %v1182_v41 = vpop.permute.xlu0 %1181 }
 0x22e   : > { %1209 = vst.msk [vmem:[#allocation3 + $0x54] sm:$0xf] %vm1201_vm9, %v1168_v56  ;;  %1216 = vst.msk [vmem:[#allocation3 + $0xa8] sm:$0xf] %vm1201_vm9, %v1182_v41  ;;  %v1248_v41 = vsel %vm462_vm5, %v1226_v62, 0.0 }
 0x22f   : > { %1995 = vrot.lane.b32.xlu0 %v5108_v39, %s4348_s19 }
 0x231   : > { %1570 = vrot.lane.b32.xlu1 %v6373_v31, %s4346_s27  ;;  %v1172_v45 = vpop.permute.xlu1 %1171  ;;  %v5428_v31 = vld [vmem:[#allocation2 + $0x48] sm:$0xff] }
 0x232   : > { %1211 = vst.msk [vmem:[#allocation3 + $0x6c] sm:$0xf] %vm1201_vm9, %v1172_v45  ;;  %v1227_v45 = vmul.f32 %v5428_v31, %v5176_v13 }
 0x235   : > { %1784 = vrot.lane.b32.xlu1 %v3661_v38, %s4347_s26  ;;  %v1176_v49 = vpop.permute.xlu1 %1175 }
 0x236   : > { %1213 = vst.msk [vmem:[#allocation3 + $0x84] sm:$0xf] %vm1201_vm9, %v1176_v49  ;;  %v1251_v49 = vsel %vm462_vm5, %v1227_v45, 0.0 }
 0x239   : > { %1997 = vrot.lane.b32.xlu1 %v5138_v20, %s4348_s19  ;;  %v1180_v25 = vpop.permute.xlu1 %1179  ;;  %v1242_v20 = vsel %vm462_vm5, %v1224_v34, 0.0 }
 0x23a   : > { %1215 = vst.msk [vmem:[#allocation3 + $0x9c] sm:$0xf] %vm1201_vm9, %v1180_v25  ;;  %v4009_v25 = vld [vmem:[#allocation2 + $0x60] sm:$0xff] }
 0x23d   : > { %v1184_v39 = vpop.permute.xlu1 %1183 }
 0x23e   : > { %1217 = vst.msk [vmem:[#allocation3 + $0xb4] sm:$0xf] %vm1201_vm9, %v1184_v39  ;;  %v1229_v39 = vmul.f32 %v4009_v25, %v5176_v13 }
 0x240   : > { %v1257_v34 = vsel %vm462_vm5, %v1229_v39, 0.0 }
 0x241   : > { %v1549_v54 = vpop.permute.xlu1 %1548 }
 0x242   : > { %1596 = vst.msk [vmem:[#allocation3 + $0x4] sm:$0xf] %vm773_vm7, %v1549_v54 }
 0x245   : > { %v1551_v8 = vpop.permute.xlu1 %1550 }
 0x246   : > { %1597 = vst.msk [vmem:[#allocation3 + $0x10] sm:$0xf] %vm773_vm7, %v1551_v8  ;;  %v5436_v8 = vld [vmem:[#allocation2 + $0x30] sm:$0xff] }
 0x247   : > { %v1225_v12 = vmul.f32 %v5436_v8, %v5176_v13 }
 0x249   : > { %v1763_v29 = vpop.permute.xlu1 %1762 }
 0x24a   : > { %1810 = vst.msk [vmem:[#allocation3 + $0x4] sm:$0xf] %vm987_vm8, %v1763_v29  ;;  %v4011_v29 = vld [vmem:[#allocation2 + $0x78] sm:$0xff] }
 0x24d   : > { %v1765_v56 = vpop.permute.xlu1 %1764 }
 0x24e   : > { %1811 = vst.msk [vmem:[#allocation3 + $0x10] sm:$0xf] %vm987_vm8, %v1765_v56  ;;  %1243 = vadd.xlane.f32.xlu0 %v1242_v20  ;;  %v1231_v20 = vmul.f32 %v4011_v29, %v5176_v13  ;;  %v1245_v56 = vsel %vm462_vm5, %v1225_v12, 0.0 }
 0x251   : > { %v1976_v38 = vpop.permute.xlu1 %1975 }
 0x252   : > { %2023 = vst.msk [vmem:[#allocation3 + $0x4] sm:$0xf] %vm1201_vm9, %v1976_v38  ;;  %1249 = vadd.xlane.f32.xlu0 %v1248_v41  ;;  %v5444_v41 = vld [vmem:[#allocation2 + $0x50] sm:$0xff]  ;;  %v1263_v38 = vsel %vm462_vm5, %v1231_v20, 0.0 }
 0x253   : > { %v1228_v45 = vmul.f32 %v5444_v41, %v5176_v13 }
 0x255   : > { %v1978_v54 = vpop.permute.xlu1 %1977  ;;  %v1254_v12 = vsel %vm462_vm5, %v1228_v45, 0.0 }
 0x256   : > { %2024 = vst.msk [vmem:[#allocation3 + $0x10] sm:$0xf] %vm1201_vm9, %v1978_v54  ;;  %1252 = vadd.xlane.f32.xlu0 %v1251_v49  ;;  %v4013_v49 = vld [vmem:[#allocation2 + $0x90] sm:$0xff] }
 0x257   : > { %v1233_v25 = vmul.f32 %v4013_v49, %v5176_v13  ;;  %v3976_v54 = vld [vmem:[#allocation3] ss:$12 sps:$4 sm:$0xff]   ;;  %v1235_v49 = vmul.f32 %v4015_v36, %v5176_v13  ;;  %v5464_v36 = vld [vmem:[#allocation12 + $0x4] ss:$0 sm:$0xff] }
 0x259   : > { %v1573_v62 = vpop.permute.xlu1 %1572  ;;  %v1269_v20 = vsel %vm462_vm5, %v1233_v25, 0.0  ;;  %v1275_v45 = vsel %vm462_vm5, %v1235_v49, 0.0  ;;  %v1237_v25 = vmul.f32 %v5176_v13, %v5114_v17  ;;  %v1404_v17 = vmul.f32 %v5464_v36, %v5156_v43 }
 0x25a   : > { %1608 = vst.msk [vmem:[#allocation3 + $0x94] sm:$0xf] %vm773_vm7, %v1573_v62  ;;  %1258 = vadd.xlane.f32.xlu0 %v1257_v34  ;;  %v4014_v62 = vld [vmem:[#allocation2 + $0x68] sm:$0xff] }
 0x25b   : > { %v1230_v48 = vmul.f32 %v4014_v62, %v5176_v13  ;;  %v1281_v62 = vsel %vm462_vm5, %v1237_v25, 0.0 }
 0x25d   : > { %1246 = vadd.xlane.f32.xlu1 %v1245_v56  ;;  %v1787_v39 = vpop.permute.xlu1 %1786  ;;  %v3978_v29 = vld [vmem:[#allocation3 + $0x4] ss:$12 sps:$4 sm:$0xff]  }
 0x25e   : > { %1822 = vst.msk [vmem:[#allocation3 + $0x94] sm:$0xf] %vm987_vm8, %v1787_v39  ;;  %1264 = vadd.xlane.f32.xlu0 %v1263_v38  ;;  %v5451_v34 = vpop.xlane.xlu0 %1240  ;;  %2792 = vmatprep.mubr.bf16.mxu0 %v3978_v29  ;;  %v1260_v38 = vsel %vm462_vm5, %v1230_v48, 0.0  ;;  %v4016_v39 = vld [vmem:[#allocation2 + $0x80] sm:$0xff] }
 0x25f   : > { %6374 = vst [vmem:[#allocation43_spill] sm:$0xff] %v5451_v34  ;;  %2793 = vmatmul.mubr.bf16.vlgmr.msra.gmra.mxu0 %v3976_v54  ;;  %v1232_v34 = vmul.f32 %v4016_v39, %v5176_v13  ;;  %v1420_v39 = vsel %vm462_vm5, %v1404_v17, 0.0  ;;  %v1405_v17 = vmul.f32 %v5464_v36, %v5165_v52 }
 0x261   : > { %1255 = vadd.xlane.f32.xlu1 %v1254_v12  ;;  %v1789_v56 = vpop.permute.xlu1 %1788  ;;  %v1266_v29 = vsel %vm462_vm5, %v1232_v34, 0.0  ;;  %v4017_v12 = vld [vmem:[#allocation2 + $0x98] sm:$0xff] }
 0x262   : > { %1270 = vadd.xlane.f32.xlu0 %v1269_v20  ;;  %v1575_v35 = vpop.permute.xlu0 %1574 }
 0x263   : > { %1609 = vst.msk [vmem:[#allocation3 + $0xa0] sm:$0xf] %vm773_vm7, %v1575_v35  ;;  %v1234_v35 = vmul.f32 %v4017_v12, %v5176_v13  ;;  %v1408_v12 = vmul.f32 %v5464_v36, %v5229_v14 }
 0x264   : > { %1823 = vst.msk [vmem:[#allocation3 + $0xa0] sm:$0xf] %vm987_vm8, %v1789_v56 }
 0x265   : > { %1261 = vadd.xlane.f32.xlu1 %v1260_v38  ;;  %v1553_v54 = vpop.permute.xlu1 %1552  ;;  %v1272_v56 = vsel %vm462_vm5, %v1234_v35, 0.0  ;;  %v4018_v38 = vld [vmem:[#allocation2 + $0xb0] sm:$0xff] }
 0x266   : > { %1598 = vst.msk [vmem:[#allocation3 + $0x1c] sm:$0xf] %vm773_vm7, %v1553_v54  ;;  %1276 = vadd.xlane.f32.xlu0 %v1275_v45  ;;  %v1767_v48 = vpop.permute.xlu0 %1766  ;;  %v1236_v34 = vmul.f32 %v4018_v38, %v5176_v13  ;;  %v1406_v45 = vmul.f32 %v5464_v36, %v5195_v28  ;;  %v1412_v38 = vmul.f32 %v5464_v36, %v5253_v22 }
 0x267   : > { %1812 = vst.msk [vmem:[#allocation3 + $0x1c] sm:$0xf] %vm987_vm8, %v1767_v48  ;;  %v1238_v48 = vmul.f32 %v5176_v13, %v5146_v21  ;;  %v1432_v21 = vsel %vm462_vm5, %v1408_v12, 0.0  ;;  %v1410_v13 = vmul.f32 %v5464_v36, %v5239_v57  ;;  %v1414_v22 = vmul.f32 %v5464_v36, %v5272_v1 }
 0x268   : > { %v1278_v54 = vsel %vm462_vm5, %v1236_v34, 0.0  ;;  %v3979_v34 = vld [vmem:[#allocation3 + $0x90] ss:$12 sps:$4 sm:$0xff]   ;;  %v1411_v12 = vmul.f32 %v5464_v36, %v5276_v4  ;;  %v1416_v1 = vmul.f32 %v5464_v36, %v5101_v32 }
 0x269   : > { %1267 = vadd.xlane.f32.xlu1 %v1266_v29  ;;  %v1555_v20 = vpop.permute.xlu1 %1554  ;;  %v1426_v29 = vsel %vm462_vm5, %v1406_v45, 0.0  ;;  %v1438_v52 = vsel %vm462_vm5, %v1410_v13, 0.0 }
 0x26a   : > { %1599 = vst.msk [vmem:[#allocation3 + $0x28] sm:$0xf] %vm773_vm7, %v1555_v20  ;;  %1282 = vadd.xlane.f32.xlu0 %v1281_v62  ;;  %v1980_v49 = vpop.permute.xlu0 %1979  ;;  %v1284_v62 = vsel %vm462_vm5, %v1238_v48, 0.0  ;;  %v1441_v4 = vsel %vm462_vm5, %v1411_v12, 0.0  ;;  %v1456_v32 = vsel %vm462_vm5, %v1416_v1, 0.0 }
 0x26b   : > { %2025 = vst.msk [vmem:[#allocation3 + $0x1c] sm:$0xf] %vm1201_vm9, %v1980_v49  ;;  %v1423_v49 = vsel %vm462_vm5, %v1405_v17, 0.0 }
 0x26d   : > { %1273 = vadd.xlane.f32.xlu1 %v1272_v56  ;;  %v2000_v43 = vpop.permute.xlu1 %1999  ;;  %v1407_v56 = vmul.f32 %v5464_v36, %v5202_v40  ;;  %v1409_v40 = vmul.f32 %v5464_v36, %v5257_v30 }
 0x26e   : > { %2035 = vst.msk [vmem:[#allocation3 + $0x94] sm:$0xf] %vm1201_vm9, %v2000_v43  ;;  %1421 = vadd.xlane.f32.xlu0 %v1420_v39  ;;  %v1577_v25 = vpop.permute.xlu0 %1576 }
 0x26f   : > { %1610 = vst.msk [vmem:[#allocation3 + $0xac] sm:$0xf] %vm773_vm7, %v1577_v25  ;;  %v1429_v43 = vsel %vm462_vm5, %v1407_v56, 0.0  ;;  %v3988_v25 = vld [vmem:[#allocation10 + $0x80] sm:$0xff]   ;;  %v1435_v30 = vsel %vm462_vm5, %v1409_v40, 0.0 }
 0x270   : > { %v5531_v56 = vld [vmem:[#allocation12 + $0x5] ss:$0 sm:$0xff] }
 0x271   : > { %1279 = vadd.xlane.f32.xlu1 %v1278_v54  ;;  %v2002_v28 = vpop.permute.xlu1 %2001  ;;  %v1444_v54 = vsel %vm462_vm5, %v1412_v38, 0.0 }
 0x272   : > { %2036 = vst.msk [vmem:[#allocation3 + $0xa0] sm:$0xf] %vm1201_vm9, %v2002_v28  ;;  %1427 = vadd.xlane.f32.xlu0 %v1426_v29  ;;  %v1791_v35 = vpop.permute.xlu0 %1790  ;;  %v1450_v28 = vsel %vm462_vm5, %v1414_v22, 0.0  ;;  %v4021_v22 = vld [vmem:[#allocation2 + $0x32] sm:$0xff] }
 0x273   : > { %1824 = vst.msk [vmem:[#allocation3 + $0xac] sm:$0xf] %vm987_vm8, %v1791_v35 }
 0x275   : > { %1285 = vadd.xlane.f32.xlu1 %v1284_v62  ;;  %v1769_v14 = vpop.permute.xlu1 %1768 }
 0x276   : > { %1813 = vst.msk [vmem:[#allocation3 + $0x28] sm:$0xf] %vm987_vm8, %v1769_v14  ;;  %1433 = vadd.xlane.f32.xlu0 %v1432_v21  ;;  %v1557_v20 = vpop.permute.xlu0 %1556  ;;  %v1413_v14 = vmul.f32 %v5464_v36, %v5290_v0 }
 0x277   : > { %1600 = vst.msk [vmem:[#allocation3 + $0x34] sm:$0xf] %vm773_vm7, %v1557_v20  ;;  %v5527_v20 = vld [vmem:[#allocation2 + $0xc1] sm:$0xff] }
 0x278   : > { %v1447_v0 = vsel %vm462_vm5, %v1413_v14, 0.0 }
 0x279   : > { %1424 = vadd.xlane.f32.xlu1 %v1423_v49  ;;  %v1982_v57 = vpop.permute.xlu1 %1981  ;;  %v3981_v39 = vld [vmem:[#allocation3 + $0x94] ss:$12 sps:$4 sm:$0xff]   ;;  %v1418_v49 = vmul.f32 %v5527_v20, %v5464_v36 }
 0x27a   : > { %2026 = vst.msk [vmem:[#allocation3 + $0x28] sm:$0xf] %vm1201_vm9, %v1982_v57  ;;  %1439 = vadd.xlane.f32.xlu0 %v1438_v52  ;;  %v2004_v45 = vpop.permute.xlu0 %2003  ;;  %2840 = vmatprep.mubr.bf16.mxu1 %v3981_v39  ;;  %v1415_v57 = vmul.f32 %v5464_v36, %v5093_v15  ;;  %v4020_v39 = vld [vmem:[#allocation2 + $0x1a] sm:$0xff] }
 0x27b   : > { %2037 = vst.msk [vmem:[#allocation3 + $0xac] sm:$0xf] %vm1201_vm9, %v2004_v45  ;;  %2841 = vmatmul.mubr.bf16.vlgmr.msra.gmra.mxu1 %v3979_v34  ;;  %v1462_v34 = vsel %vm462_vm5, %v1418_v49, 0.0  ;;  %v1617_v45 = vmul.f32 %v4020_v39, %v5531_v56  ;;  %v4026_v39 = vld [vmem:[#allocation2 + $0x3a] sm:$0xff] }
 0x27c   : > { %3774 = vmatpush3.bf16.msra.mxu1 %v5324_v55  ;;  %v2444_v55 = vld [vmem:[#allocation3 + $0x18] sm:$0xff] }
 0x27d   : > { %1430 = vadd.xlane.f32.xlu1 %v1429_v43  ;;  %v1579_v48 = vpop.permute.xlu1 %1578  ;;  %3775 = vmatprep.subr.bf16.mxu1 %v3988_v25  ;;  %v1633_v15 = vsel %vm462_vm5, %v1617_v45, 0.0  ;;  %v1620_v45 = vmul.f32 %v4026_v39, %v5531_v56  ;;  %v3997_v39 = vld [vmem:[#allocation3 + $0x68] ss:$12 sps:$4 sm:$0xff]  }
 0x27e   : > { %1611 = vst.msk [vmem:[#allocation3 + $0xb8] sm:$0xf] %vm773_vm7, %v1579_v48  ;;  %1445 = vadd.xlane.f32.xlu0 %v1444_v54  ;;  %v1771_v29 = vpop.permute.xlu0 %1770  ;;  %v1417_v54 = vmul.f32 %v5464_v36, %v5134_v10  ;;  %v1619_v48 = vmul.f32 %v4021_v22, %v5531_v56 }
 0x27f   : > { %1814 = vst.msk [vmem:[#allocation3 + $0x34] sm:$0xf] %vm987_vm8, %v1771_v29 }
 0x280   : > { %3776 = vmatpush3.bf16.msra.mxu1 %v3988_v25  ;;  %v1453_v25 = vsel %vm462_vm5, %v1415_v57, 0.0  ;;  %v1459_v12 = vsel %vm462_vm5, %v1417_v54, 0.0  ;;  %v1639_v1 = vsel %vm462_vm5, %v1619_v48, 0.0  ;;  %v3992_v54 = vld [vmem:[#allocation3 + $0x20] ss:$12 sps:$4 sm:$0xff]  }
 0x281   : > { %1436 = vadd.xlane.f32.xlu1 %v1435_v30  ;;  %v1793_v35 = vpop.permute.xlu1 %1792  ;;  %v2446_v62 = vld [vmem:[#allocation3 + $0x24] sm:$0xff] }
 0x282   : > { %v3982_v17 = vld [vmem:[#allocation3 + $0x1c] ss:$12 sps:$4 sm:$0xff]   ;;  %1825 = vst.msk [vmem:[#allocation3 + $0xb8] sm:$0xf] %vm987_vm8, %v1793_v35  ;;  %1451 = vadd.xlane.f32.xlu0 %v1450_v28  ;;  %v1984_v21 = vpop.permute.xlu0 %1983  ;;  %v3488_v13 = vcombine.low %v2444_v55, %v2446_v62 }
 0x283   : > { %2027 = vst.msk [vmem:[#allocation3 + $0x34] sm:$0xf] %vm1201_vm9, %v1984_v21  ;;  %2800 = vmatprep.mubr.bf16.mxu0 %v3982_v17  ;;  %v5549_v28 = vld [vmem:[#allocation2 + $0xc9] sm:$0xff]  ;;  %v3991_v62 = vld [vmem:[#allocation3 + $0x8] ss:$12 sps:$4 sm:$0xff]  }
 0x284   : > { %2801 = vmatmul.mubr.bf16.gmra.mxu0 %v3488_v13  ;;  %v1419_v10 = vmul.f32 %v5549_v28, %v5464_v36  ;;  %v4023_v35 = vld [vmem:[#allocation2 + $0x4a] sm:$0xff] }
 0x285   : > { %1442 = vadd.xlane.f32.xlu1 %v1441_v4  ;;  %v1559_v52 = vpop.permute.xlu1 %1558  ;;  %v1621_v55 = vmul.f32 %v4023_v35, %v5531_v56  ;;  %v3987_v4 = vld [vmem:[#allocation3 + $0xa8] ss:$12 sps:$4 sm:$0xff]  }
 0x286   : > { %1601 = vst.msk [vmem:[#allocation3 + $0x40] sm:$0xf] %vm773_vm7, %v1559_v52  ;;  %1457 = vadd.xlane.f32.xlu0 %v1456_v32  ;;  %v1561_v38 = vpop.permute.xlu0 %1560  ;;  %v1465_v14 = vsel %vm462_vm5, %v1419_v10, 0.0  ;;  %v4024_v32 = vld [vmem:[#allocation2 + $0x22] sm:$0xff]  ;;  %v1642_v10 = vsel %vm462_vm5, %v1620_v45, 0.0  ;;  %v4028_v35 = vld [vmem:[#allocation2 + $0x52] sm:$0xff] }
 0x287   : > { %1602 = vst.msk [vmem:[#allocation3 + $0x4c] sm:$0xf] %vm773_vm7, %v1561_v38  ;;  %v1618_v36 = vmul.f32 %v4024_v32, %v5531_v56  ;;  %v1645_v49 = vsel %vm462_vm5, %v1621_v55, 0.0  ;;  %v4025_v52 = vld [vmem:[#allocation2 + $0x62] sm:$0xff]  ;;  %v1622_v55 = vmul.f32 %v4028_v35, %v5531_v56  ;;  %v4030_v32 = vld [vmem:[#allocation2 + $0x6a] sm:$0xff] }
 0x288   : > { %v1623_v38 = vmul.f32 %v4025_v52, %v5531_v56  ;;  %v4031_v52 = vld [vmem:[#allocation2 + $0xaa] sm:$0xff] }
 0x289   : > { %1448 = vadd.xlane.f32.xlu1 %v1447_v0  ;;  %v2006_v43 = vpop.permute.xlu1 %2005 }
 0x28a   : > { %2038 = vst.msk [vmem:[#allocation3 + $0xb8] sm:$0xf] %vm1201_vm9, %v2006_v43  ;;  %1463 = vadd.xlane.f32.xlu0 %v1462_v34  ;;  %v1775_v40 = vpop.permute.xlu0 %1774  ;;  %v1636_v34 = vsel %vm462_vm5, %v1618_v36, 0.0  ;;  %v1651_v43 = vsel %vm462_vm5, %v1623_v38, 0.0  ;;  %v2448_v48 = vld [vmem:[#allocation3 + $0x30] sm:$0xff]  ;;  %v1624_v36 = vmul.f32 %v4030_v32, %v5531_v56  ;;  %v1629_v38 = vmul.f32 %v4031_v52, %v5531_v56  ;;  %v4034_v32 = vld [vmem:[#allocation2 + $0xb2] sm:$0xff] }
 0x28b   : > { %1816 = vst.msk [vmem:[#allocation3 + $0x4c] sm:$0xf] %vm987_vm8, %v1775_v40  ;;  %v4027_v40 = vld [vmem:[#allocation2 + $0x7a] sm:$0xff] }
 0x28d   : > { %1454 = vadd.xlane.f32.xlu1 %v1453_v25  ;;  %v1773_v29 = vpop.permute.xlu1 %1772  ;;  %v1625_v25 = vmul.f32 %v4027_v40, %v5531_v56  ;;  %v4032_v40 = vld [vmem:[#allocation2 + $0x82] sm:$0xff] }
 0x28e   : > { %1815 = vst.msk [vmem:[#allocation3 + $0x40] sm:$0xf] %vm987_vm8, %v1773_v29  ;;  %1634 = vadd.xlane.f32.xlu0 %v1633_v15  ;;  %v1988_v30 = vpop.permute.xlu0 %1987  ;;  %v3993_v15 = vld [vmem:[#allocation3 + $0x38] ss:$12 sps:$4 sm:$0xff]  }
 0x28f   : > { %2029 = vst.msk [vmem:[#allocation3 + $0x4c] sm:$0xf] %vm1201_vm9, %v1988_v30 }
 0x291   : > { %1460 = vadd.xlane.f32.xlu1 %v1459_v12  ;;  %v1986_v17 = vpop.permute.xlu1 %1985  ;;  %v3984_v21 = vld [vmem:[#allocation3 + $0xac] ss:$12 sps:$4 sm:$0xff]  }
 0x292   : > { %2028 = vst.msk [vmem:[#allocation3 + $0x40] sm:$0xf] %vm1201_vm9, %v1986_v17  ;;  %1640 = vadd.xlane.f32.xlu0 %v1639_v1  ;;  %v1565_v13 = vpop.permute.xlu0 %1564  ;;  %2848 = vmatprep.mubr.bf16.mxu1 %v3984_v21  ;;  %v4029_v17 = vld [vmem:[#allocation2 + $0x92] sm:$0xff] }
 0x293   : > { %1604 = vst.msk [vmem:[#allocation3 + $0x64] sm:$0xf] %vm773_vm7, %v1565_v13  ;;  %2849 = vmatmul.mubr.bf16.gmra.mxu1 %v3987_v4  ;;  %v1627_v21 = vmul.f32 %v4029_v17, %v5531_v56 }
 0x294   : > { %3777 = vmatprep.mubr.msk.bf16.mxu1 %vm462_vm5, %v3991_v62  ;;  %v1657_v62 = vsel %vm462_vm5, %v1625_v25, 0.0  ;;  %v1626_v25 = vmul.f32 %v4032_v40, %v5531_v56 }
 0x295   : > { %1466 = vadd.xlane.f32.xlu1 %v1465_v14  ;;  %v1563_v0 = vpop.permute.xlu1 %1562  ;;  %v1648_v14 = vsel %vm462_vm5, %v1622_v55, 0.0  ;;  %v4033_v55 = vld [vmem:[#allocation2 + $0x9a] sm:$0xff] }
 0x296   : > { %1603 = vst.msk [vmem:[#allocation3 + $0x58] sm:$0xf] %vm773_vm7, %v1563_v0  ;;  %1646 = vadd.xlane.f32.xlu0 %v1645_v49  ;;  %v1779_v57 = vpop.permute.xlu0 %1778  ;;  %v1663_v49 = vsel %vm462_vm5, %v1627_v21, 0.0  ;;  %v4349_v0 = vmov 0   ;;  %v3998_v21 = vld [vmem:[#allocation3 + $0x80] ss:$12 sps:$4 sm:$0xff]  }
 0x297   : > { %1818 = vst.msk [vmem:[#allocation3 + $0x64] sm:$0xf] %vm987_vm8, %v1779_v57  ;;  %3959 = vset.pattern.permute.xlu0 %v4349_v0  ;;  %v3994_v57 = vld [vmem:[#allocation3 + $0x50] ss:$12 sps:$4 sm:$0xff]   ;;  %v1632_v0 = vmul.f32 %v5531_v56, %v5241_v23 }
 0x299   : > { %1637 = vadd.xlane.f32.xlu1 %v1636_v34  ;;  %v1777_v22 = vpop.permute.xlu1 %1776  ;;  %v2450_v29 = vld [vmem:[#allocation3 + $0x3c] sm:$0xff] }
 0x29a   : > { %v3989_v30 = vld [vmem:[#allocation3 + $0x34] ss:$12 sps:$4 sm:$0xff]   ;;  %1817 = vst.msk [vmem:[#allocation3 + $0x58] sm:$0xf] %vm987_vm8, %v1777_v22  ;;  %1652 = vadd.xlane.f32.xlu0 %v1651_v43  ;;  %v1992_v12 = vpop.permute.xlu0 %1991  ;;  %v3491_v1 = vcombine.low %v2448_v48, %v2450_v29  ;;  %v1654_v43 = vsel %vm462_vm5, %v1624_v36, 0.0  ;;  %v2452_v29 = vld [vmem:[#allocation3 + $0x48] sm:$0xff]  ;;  %v1630_v36 = vmul.f32 %v4034_v32, %v5531_v56 }
 0x29b   : > { %2031 = vst.msk [vmem:[#allocation3 + $0x64] sm:$0xf] %vm1201_vm9, %v1992_v12  ;;  %2808 = vmatprep.mubr.bf16.mxu0 %v3989_v30  ;;  %3778 = vmatmul.mubr.msk.bf16.vlgmr.msra.gmra.mxu1 %vm462_vm5, %v3992_v54  ;;  %v1669_v54 = vsel %vm462_vm5, %v1629_v38, 0.0  ;;  %v5591_v22 = vld [vmem:[#allocation12 + $0x6] ss:$0 sm:$0xff] }
 0x29c   : > { %2809 = vmatmul.mubr.bf16.gmra.mxu0 %v3491_v1  ;;  %3781 = vmatprep.mubr.msk.bf16.mxu1 %vm462_vm5, %v3993_v15  ;;  %v1631_v15 = vmul.f32 %v5531_v56, %v5215_v18  ;;  %v1660_v1 = vsel %vm462_vm5, %v1626_v25, 0.0  ;;  %v1628_v18 = vmul.f32 %v4033_v55, %v5531_v56  ;;  %v1831_v17 = vmul.f32 %v5436_v8, %v5591_v22 }
 0x29d   : > { %1643 = vadd.xlane.f32.xlu1 %v1642_v10  ;;  %v1990_v4 = vpop.permute.xlu1 %1989  ;;  %v1833_v52 = vmul.f32 %v5428_v31, %v5591_v22  ;;  %v1672_v38 = vsel %vm462_vm5, %v1630_v36, 0.0  ;;  %v4002_v31 = vld [vmem:[#allocation3 + $0xb0] ss:$12 sps:$4 sm:$0xff]   ;;  %v1678_v25 = vsel %vm462_vm5, %v1632_v0, 0.0  ;;  %v1832_v23 = vmul.f32 %v5422_v37, %v5591_v22 }
 0x29e   : > { %2030 = vst.msk [vmem:[#allocation3 + $0x58] sm:$0xf] %vm1201_vm9, %v1990_v4  ;;  %1658 = vadd.xlane.f32.xlu0 %v1657_v62  ;;  %v1569_v13 = vpop.permute.xlu0 %1568  ;;  %v1675_v62 = vsel %vm462_vm5, %v1631_v15, 0.0  ;;  %v1842_v32 = vmul.f32 %v5591_v22, %v5401_v2 }
 0x29f   : > { %1606 = vst.msk [vmem:[#allocation3 + $0x7c] sm:$0xf] %vm773_vm7, %v1569_v13  ;;  %v4001_v13 = vld [vmem:[#allocation3 + $0x98] ss:$12 sps:$4 sm:$0xff]  }
 0x2a1   : > { %1649 = vadd.xlane.f32.xlu1 %v1648_v14  ;;  %v1567_v34 = vpop.permute.xlu1 %1566  ;;  %v1666_v14 = vsel %vm462_vm5, %v1628_v18, 0.0 }
 0x2a2   : > { %1605 = vst.msk [vmem:[#allocation3 + $0x70] sm:$0xf] %vm773_vm7, %v1567_v34  ;;  %1664 = vadd.xlane.f32.xlu0 %v1663_v49  ;;  %v1783_v45 = vpop.permute.xlu0 %1782  ;;  %v1847_v49 = vsel %vm462_vm5, %v1831_v17, 0.0  ;;  %v1835_v34 = vmul.f32 %v5591_v22, %v5263_v61  ;;  %v1837_v61 = vmul.f32 %v5591_v22, %v5306_v42  ;;  %v1840_v17 = vmul.f32 %v5591_v22, %v5365_v47 }
 0x2a3   : > { %1820 = vst.msk [vmem:[#allocation3 + $0x7c] sm:$0xf] %vm987_vm8, %v1783_v45  ;;  %3782 = vmatmul.mubr.msk.bf16.gmra.mxu1 %vm462_vm5, %v3994_v57  ;;  %v1853_v57 = vsel %vm462_vm5, %v1833_v52, 0.0  ;;  %v2456_v45 = vld [vmem:[#allocation3 + $0x60] sm:$0xff]  ;;  %v1880_v47 = vsel %vm462_vm5, %v1842_v32, 0.0 }
 0x2a4   : > { %3785 = vmatprep.mubr.msk.bf16.mxu1 %vm462_vm5, %v3997_v39  ;;  %v1859_v56 = vsel %vm462_vm5, %v1835_v34, 0.0  ;;  %v1865_v37 = vsel %vm462_vm5, %v1837_v61, 0.0  ;;  %v4043_v61 = vld [vmem:[#allocation2 + $0x79] sm:$0xff] }
 0x2a5   : > { %1655 = vadd.xlane.f32.xlu1 %v1654_v43  ;;  %v1781_v48 = vpop.permute.xlu1 %1780  ;;  %v2454_v30 = vld [vmem:[#allocation3 + $0x54] sm:$0xff] }
 0x2a6   : > { %v3995_v12 = vld [vmem:[#allocation3 + $0x4c] ss:$12 sps:$4 sm:$0xff]   ;;  %1819 = vst.msk [vmem:[#allocation3 + $0x70] sm:$0xf] %vm987_vm8, %v1781_v48  ;;  %1670 = vadd.xlane.f32.xlu0 %v1669_v54  ;;  %v1996_v10 = vpop.permute.xlu0 %1995  ;;  %v3494_v35 = vcombine.low %v2452_v29, %v2454_v30  ;;  %v1850_v48 = vsel %vm462_vm5, %v1832_v23, 0.0  ;;  %v1834_v29 = vmul.f32 %v5444_v41, %v5591_v22  ;;  %v1839_v30 = vmul.f32 %v5591_v22, %v5341_v53 }
 0x2a7   : > { %2033 = vst.msk [vmem:[#allocation3 + $0x7c] sm:$0xf] %vm1201_vm9, %v1996_v10  ;;  %2816 = vmatprep.mubr.bf16.mxu0 %v3995_v12  ;;  %v1836_v12 = vmul.f32 %v5591_v22, %v5302_v7  ;;  %v4005_v41 = vld [vmem:[#allocation3 + $0x78] ss:$12 sps:$4 sm:$0xff]   ;;  %v1838_v53 = vmul.f32 %v5591_v22, %v5336_v19 }
 0x2a8   : > { %2817 = vmatmul.mubr.bf16.gmra.mxu0 %v3494_v35  ;;  %v1856_v42 = vsel %vm462_vm5, %v1834_v29, 0.0  ;;  %v1871_v10 = vsel %vm462_vm5, %v1839_v30, 0.0  ;;  %v5647_v19 = vld [vmem:[#allocation12 + $0x7] ss:$0 sm:$0xff] }
 0x2a9   : > { %1661 = vadd.xlane.f32.xlu1 %v1660_v1  ;;  %v1994_v4 = vpop.permute.xlu1 %1993  ;;  %v1841_v1 = vmul.f32 %v5591_v22, %v5374_v51  ;;  %v1862_v55 = vsel %vm462_vm5, %v1836_v12, 0.0  ;;  %v1868_v51 = vsel %vm462_vm5, %v1838_v53, 0.0  ;;  %v4047_v53 = vld [vmem:[#allocation2 + $0xa9] sm:$0xff] }
 0x2aa   : > { %2032 = vst.msk [vmem:[#allocation3 + $0x70] sm:$0xf] %vm1201_vm9, %v1994_v4  ;;  %1676 = vadd.xlane.f32.xlu0 %v1675_v62  ;;  %v4035_v62 = vld [vmem:[#allocation2 + $0xc0] sm:$0xff]  ;;  %v4036_v4 = vld [vmem:[#allocation2 + $0xd8] sm:$0xff] }
 0x2ab   : > { %3786 = vmatmul.mubr.msk.bf16.gmra.mxu1 %vm462_vm5, %v3998_v21  ;;  %v1877_v18 = vsel %vm462_vm5, %v1841_v1, 0.0  ;;  %v1843_v7 = vmul.f32 %v4035_v62, %v5591_v22  ;;  %v4046_v1 = vld [vmem:[#allocation2 + $0x69] sm:$0xff] }
 0x2ac   : > { %3789 = vmatprep.mubr.msk.bf16.mxu1 %vm462_vm5, %v4001_v13  ;;  %v1845_v13 = vmul.f32 %v4036_v4, %v5591_v22  ;;  %v2056_v4 = vmul.f32 %v5527_v20, %v5647_v19 }
 0x2ad   : > { %1667 = vadd.xlane.f32.xlu1 %v1666_v14  ;;  %v1571_v8 = vpop.permute.xlu1 %1570  ;;  %v1883_v21 = vsel %vm462_vm5, %v1843_v7, 0.0  ;;  %v1874_v14 = vsel %vm462_vm5, %v1840_v17, 0.0  ;;  %v4048_v7 = vld [vmem:[#allocation2 + $0x81] sm:$0xff] }
 0x2ae   : > { %1607 = vst.msk [vmem:[#allocation3 + $0x88] sm:$0xf] %vm773_vm7, %v1571_v8  ;;  %1848 = vadd.xlane.f32.xlu0 %v1847_v49  ;;  %v1889_v36 = vsel %vm462_vm5, %v1845_v13, 0.0  ;;  %v4037_v49 = vld [vmem:[#allocation2 + $0x31] sm:$0xff]  ;;  %v4038_v8 = vld [vmem:[#allocation2 + $0xc8] sm:$0xff] }
 0x2af   : > { %v2044_v52 = vmul.f32 %v4037_v49, %v5647_v19  ;;  %v2096_v49 = vsel %vm462_vm5, %v2056_v4, 0.0  ;;  %v4058_v4 = vld [vmem:[#allocation2 + $0x52] sm:$0xff] }
 0x2b1   : > { %1673 = vadd.xlane.f32.xlu1 %v1672_v38  ;;  %v1785_v39 = vpop.permute.xlu1 %1784  ;;  %v2458_v43 = vld [vmem:[#allocation3 + $0x6c] sm:$0xff]  ;;  %v1844_v38 = vmul.f32 %v4038_v8, %v5591_v22  ;;  %v2060_v0 = vsel %vm462_vm5, %v2044_v52, 0.0  ;;  %v5691_v8 = vld [vmem:[#allocation12 + $0x8] ss:$0 sm:$0xff] }
 0x2b2   : > { %v3999_v40 = vld [vmem:[#allocation3 + $0x64] ss:$12 sps:$4 sm:$0xff]   ;;  %1821 = vst.msk [vmem:[#allocation3 + $0x88] sm:$0xf] %vm987_vm8, %v1785_v39  ;;  %1854 = vadd.xlane.f32.xlu0 %v1853_v57  ;;  %v3497_v54 = vcombine.low %v2456_v45, %v2458_v43  ;;  %v4039_v57 = vld [vmem:[#allocation2 + $0x49] sm:$0xff] }
 0x2b3   : > { %2824 = vmatprep.mubr.bf16.mxu0 %v3999_v40  ;;  %3790 = vmatmul.mubr.msk.bf16.gmra.mxu1 %vm462_vm5, %v4002_v31  ;;  %v2046_v34 = vmul.f32 %v4039_v57, %v5647_v19  ;;  %v1886_v2 = vsel %vm462_vm5, %v1844_v38, 0.0  ;;  %v4040_v31 = vld [vmem:[#allocation2 + $0xe0] sm:$0xff] }
 0x2b4   : > { %2825 = vmatmul.mubr.bf16.gmra.mxu0 %v3497_v54  ;;  %v1846_v39 = vmul.f32 %v4040_v31, %v5591_v22  ;;  %v4041_v43 = vld [vmem:[#allocation2 + $0x61] sm:$0xff]  ;;  %v4042_v54 = vld [vmem:[#allocation2 + $0x39] sm:$0xff] }
 0x2b5   : > { %1679 = vadd.xlane.f32.xlu1 %v1678_v25  ;;  %v1998_v15 = vpop.permute.xlu1 %1997  ;;  %v2066_v45 = vsel %vm462_vm5, %v2046_v34, 0.0  ;;  %v2048_v40 = vmul.f32 %v4041_v43, %v5647_v19  ;;  %v2045_v23 = vmul.f32 %v4042_v54, %v5647_v19  ;;  %v4050_v52 = vld [vmem:[#allocation2 + $0xd9] sm:$0xff] }
 0x2b6   : > { %2034 = vst.msk [vmem:[#allocation3 + $0x88] sm:$0xf] %vm1201_vm9, %v1998_v15  ;;  %1860 = vadd.xlane.f32.xlu0 %v1859_v56  ;;  %v1892_v25 = vsel %vm462_vm5, %v1846_v39, 0.0  ;;  %v2050_v15 = vmul.f32 %v4043_v61, %v5647_v19  ;;  %v4052_v31 = vld [vmem:[#allocation2 + $0x32] sm:$0xff] }
 0x2b7   : > { %v2072_v56 = vsel %vm462_vm5, %v2048_v40, 0.0  ;;  %v2063_v22 = vsel %vm462_vm5, %v2045_v23, 0.0  ;;  %v2225_v39 = vmul.f32 %v4052_v31, %v5691_v8  ;;  %v2057_v40 = vmul.f32 %v5549_v28, %v5647_v19  ;;  %v4053_v23 = vld [vmem:[#allocation2 + $0x4a] sm:$0xff] }
 0x2b8   : > { %v2078_v30 = vsel %vm462_vm5, %v2050_v15, 0.0  ;;  %v4060_v31 = vld [vmem:[#allocation2 + $0x6a] sm:$0xff] }
 0x2b9   : > { %1851 = vadd.xlane.f32.xlu1 %v1850_v48  ;;  %v4044_v48 = vld [vmem:[#allocation2 + $0x51] sm:$0xff]  ;;  %v2241_v54 = vsel %vm462_vm5, %v2225_v39, 0.0  ;;  %v2099_v15 = vsel %vm462_vm5, %v2057_v40, 0.0  ;;  %v2230_v39 = vmul.f32 %v4060_v31, %v5691_v8 }
 0x2ba   : > { %1866 = vadd.xlane.f32.xlu0 %v1865_v37  ;;  %v2047_v29 = vmul.f32 %v4044_v48, %v5647_v19 }
 0x2bd   : > { %1857 = vadd.xlane.f32.xlu1 %v1856_v42  ;;  %v4003_v35 = vld [vmem:[#allocation3 + $0x7c] ss:$12 sps:$4 sm:$0xff]  }
 0x2be   : > { %1872 = vadd.xlane.f32.xlu0 %v1871_v10  ;;  %2832 = vmatprep.mubr.bf16.mxu0 %v4003_v35  ;;  %v4045_v42 = vld [vmem:[#allocation2 + $0x91] sm:$0xff]  ;;  %v2069_v10 = vsel %vm462_vm5, %v2047_v29, 0.0  ;;  %v2049_v35 = vmul.f32 %v4046_v1, %v5647_v19  ;;  %v4056_v1 = vld [vmem:[#allocation2 + $0x3a] sm:$0xff] }
 0x2bf   : > { %2833 = vmatmul.mubr.bf16.gmra.mxu0 %v4005_v41  ;;  %v2052_v12 = vmul.f32 %v4045_v42, %v5647_v19 }
 0x2c0   : > { %v2075_v62 = vsel %vm462_vm5, %v2049_v35, 0.0  ;;  %v2226_v35 = vmul.f32 %v4056_v1, %v5691_v8 }
 0x2c1   : > { %1863 = vadd.xlane.f32.xlu1 %v1862_v55  ;;  %v2084_v55 = vsel %vm462_vm5, %v2052_v12, 0.0 }
 0x2c2   : > { %1878 = vadd.xlane.f32.xlu0 %v1877_v18  ;;  %v2054_v18 = vmul.f32 %v4047_v53, %v5647_v19  ;;  %v4057_v53 = vld [vmem:[#allocation2 + $0x7a] sm:$0xff] }
 0x2c5   : > { %1869 = vadd.xlane.f32.xlu1 %v1868_v51  ;;  %v2051_v51 = vmul.f32 %v4048_v7, %v5647_v19 }
 0x2c6   : > { %1884 = vadd.xlane.f32.xlu0 %v1883_v21  ;;  %v2090_v21 = vsel %vm462_vm5, %v2054_v18, 0.0  ;;  %v2231_v18 = vmul.f32 %v4057_v53, %v5691_v8 }
 0x2c7   : > { %v2081_v13 = vsel %vm462_vm5, %v2051_v51, 0.0 }
 0x2c9   : > { %1875 = vadd.xlane.f32.xlu1 %v1874_v14  ;;  %v4049_v14 = vld [vmem:[#allocation2 + $0x99] sm:$0xff] }
 0x2ca   : > { %1890 = vadd.xlane.f32.xlu0 %v1889_v36  ;;  %v2053_v32 = vmul.f32 %v4049_v14, %v5647_v19 }
 0x2cc   : > { %v2087_v20 = vsel %vm462_vm5, %v2053_v32, 0.0  ;;  %v2259_v32 = vsel %vm462_vm5, %v2231_v18, 0.0 }
 0x2cd   : > { %1881 = vadd.xlane.f32.xlu1 %v1880_v47  ;;  %v2058_v47 = vmul.f32 %v4050_v52, %v5647_v19 }
 0x2ce   : > { %2061 = vadd.xlane.f32.xlu0 %v2060_v0  ;;  %v4051_v0 = vld [vmem:[#allocation2 + $0xb1] sm:$0xff] }
 0x2cf   : > { %v2055_v57 = vmul.f32 %v4051_v0, %v5647_v19 }
 0x2d1   : > { %1887 = vadd.xlane.f32.xlu1 %v1886_v2  ;;  %v2102_v2 = vsel %vm462_vm5, %v2058_v47, 0.0  ;;  %v2093_v43 = vsel %vm462_vm5, %v2055_v57, 0.0 }
 0x2d2   : > { %2067 = vadd.xlane.f32.xlu0 %v2066_v45 }
 0x2d5   : > { %1893 = vadd.xlane.f32.xlu1 %v1892_v25 }
 0x2d6   : > { %2073 = vadd.xlane.f32.xlu0 %v2072_v56  ;;  %v2227_v56 = vmul.f32 %v4053_v23, %v5691_v8 }
 0x2d7   : > { %v5668_v37 = vpop.xlane.xlu0 %1243 }
 0x2d8   : > { %v2247_v28 = vsel %vm462_vm5, %v2227_v56, 0.0 }
 0x2d9   : > { %2064 = vadd.xlane.f32.xlu1 %v2063_v22  ;;  %v4054_v22 = vld [vmem:[#allocation2 + $0xe1] sm:$0xff] }
 0x2da   : > { %2079 = vadd.xlane.f32.xlu0 %v2078_v30  ;;  %v2059_v48 = vmul.f32 %v4054_v22, %v5647_v19  ;;  %v4055_v30 = vld [vmem:[#allocation2 + $0x62] sm:$0xff] }
 0x2db   : > { %v5674_v41 = vpop.xlane.xlu0 %1249  ;;  %v2229_v42 = vmul.f32 %v4055_v30, %v5691_v8  ;;  %v2256_v30 = vsel %vm462_vm5, %v2230_v39, 0.0 }
 0x2dd   : > { %2070 = vadd.xlane.f32.xlu1 %v2069_v10  ;;  %v2105_v10 = vsel %vm462_vm5, %v2059_v48, 0.0  ;;  %v2253_v19 = vsel %vm462_vm5, %v2229_v42, 0.0  ;;  %v4062_v42 = vld [vmem:[#allocation2 + $0x82] sm:$0xff] }
 0x2de   : > { %2085 = vadd.xlane.f32.xlu0 %v2084_v55 }
 0x2df   : > { %v5680_v17 = vpop.xlane.xlu0 %1252 }
 0x2e1   : > { %2076 = vadd.xlane.f32.xlu1 %v2075_v62  ;;  %v6375_v62 = vld [vmem:[#allocation29_spill] sm:$0xff] }
 0x2e2   : > { %2091 = vadd.xlane.f32.xlu0 %v2090_v21  ;;  %v861_v7 = vadd.f32 %v5047_v63, %v6375_v62  ;;  %v2244_v21 = vsel %vm462_vm5, %v2226_v35, 0.0  ;;  %v6380_v62 = vld [vmem:[#allocation34_spill] sm:$0xff] }
 0x2e3   : > { %v5687_v36 = vpop.xlane.xlu0 %1258 }
 0x2e4   : > { %v1075_v47 = vadd.f32 %v5225_v26, %v861_v7  ;;  %v867_v7 = vadd.f32 %v5060_v46, %v6380_v62 }
 0x2e5   : > { %2082 = vadd.xlane.f32.xlu1 %v2081_v13  ;;  %v2228_v13 = vmul.f32 %v4058_v4, %v5691_v8 }
 0x2e6   : > { %2097 = vadd.xlane.f32.xlu0 %v2096_v49  ;;  %v1247_v38 = vpop.xlane.xlu1 %1246  ;;  %v4059_v49 = vld [vmem:[#allocation2 + $0x92] sm:$0xff]  ;;  %v1081_v46 = vadd.f32 %v5284_v11, %v867_v7 }
 0x2e7   : > { %v5695_v34 = vpop.xlane.xlu0 %1264  ;;  %v2233_v52 = vmul.f32 %v4059_v49, %v5691_v8  ;;  %v1289_v0 = vadd.f32 %v1247_v38, %v1075_v47  ;;  %v4064_v49 = vld [vmem:[#allocation2 + $0xda] sm:$0xff]  ;;  %v6391_v7 = vld [vmem:[#allocation40_spill] sm:$0xff] }
 0x2e8   : > { %v6381_v47 = vld [vmem:[#allocation33_spill] sm:$0xff] }
 0x2e9   : > { %2088 = vadd.xlane.f32.xlu1 %v2087_v20  ;;  %v6376_v20 = vld [vmem:[#allocation30_spill] sm:$0xff]  ;;  %v2265_v40 = vsel %vm462_vm5, %v2233_v52, 0.0  ;;  %v2239_v52 = vmul.f32 %v4064_v49, %v5691_v8 }
 0x2ea   : > { %2103 = vadd.xlane.f32.xlu0 %v2102_v2  ;;  %v5699_v45 = vpop.xlane.xlu1 %1255  ;;  %v863_v63 = vadd.f32 %v5054_v59, %v6376_v20  ;;  %v2250_v2 = vsel %vm462_vm5, %v2228_v13, 0.0  ;;  %v6377_v59 = vld [vmem:[#allocation28_spill] sm:$0xff]  ;;  %v864_v20 = vadd.f32 %v5062_v3, %v6381_v47  ;;  %v6394_v47 = vld [vmem:[#allocation27_spill] sm:$0xff] }
 0x2eb   : > { %v5704_v25 = vpop.xlane.xlu0 %1270  ;;  %v860_v38 = vadd.f32 %v5058_v60, %v6377_v59  ;;  %v2237_v60 = vmul.f32 %v5691_v8, %v5386_v16  ;;  %v4063_v16 = vld [vmem:[#allocation2 + $0x9a] sm:$0xff] }
 0x2ec   : > { %v1077_v26 = vadd.f32 %v5247_v9, %v863_v63 }
 0x2ed   : > { %2094 = vadd.xlane.f32.xlu1 %v2093_v43  ;;  %v1074_v9 = vadd.f32 %v5269_v6, %v860_v38 }
 0x2ee   : > { %2242 = vadd.xlane.f32.xlu0 %v2241_v54  ;;  %v5708_v61 = vpop.xlane.xlu1 %1261  ;;  %v4061_v54 = vld [vmem:[#allocation2 + $0xaa] sm:$0xff]  ;;  %v1291_v48 = vadd.f32 %v5680_v17, %v1077_v26 }
 0x2ef   : > { %v5712_v29 = vpop.xlane.xlu0 %1276  ;;  %v2235_v23 = vmul.f32 %v4061_v54, %v5691_v8  ;;  %v6379_v17 = vld [vmem:[#allocation31_spill] sm:$0xff]  ;;  %v1288_v18 = vadd.f32 %v5668_v37, %v1074_v9  ;;  %v2277_v37 = vsel %vm462_vm5, %v2237_v60, 0.0  ;;  %v6387_v9 = vld [vmem:[#allocation53_spill] sm:$0xff] }
 0x2f0   : > { %v862_v53 = vadd.f32 %v5051_v58, %v6379_v17 }
 0x2f1   : > { %2100 = vadd.xlane.f32.xlu1 %v2099_v15  ;;  %v6378_v15 = vld [vmem:[#allocation32_spill] sm:$0xff]  ;;  %v2271_v35 = vsel %vm462_vm5, %v2235_v23, 0.0 }
 0x2f2   : > { %2248 = vadd.xlane.f32.xlu0 %v2247_v28  ;;  %v5716_v12 = vpop.xlane.xlu1 %1267  ;;  %v865_v22 = vadd.f32 %v5056_v50, %v6378_v15  ;;  %v1076_v13 = vadd.f32 %v5235_v33, %v862_v53  ;;  %v6385_v15 = vld [vmem:[#allocation38_spill] sm:$0xff]  ;;  %v6389_v53 = vld [vmem:[#allocation37_spill] sm:$0xff] }
 0x2f3   : > { %v5720_v55 = vpop.xlane.xlu0 %1282 }
 0x2f4   : > { %v1079_v50 = vadd.f32 %v5266_v44, %v865_v22  ;;  %v2234_v44 = vmul.f32 %v4063_v16, %v5691_v8  ;;  %v1290_v63 = vadd.f32 %v5674_v41, %v1076_v13  ;;  %v2283_v41 = vsel %vm462_vm5, %v2239_v52, 0.0  ;;  %v6386_v22 = vld [vmem:[#allocation46_spill] sm:$0xff] }
 0x2f5   : > { %2106 = vadd.xlane.f32.xlu1 %v2105_v10  ;;  %v2232_v10 = vmul.f32 %v4062_v42, %v5691_v8  ;;  %v4067_v13 = vld [vmem:[#allocation2 + $0xe2] sm:$0xff] }
 0x2f6   : > { %2254 = vadd.xlane.f32.xlu0 %v2253_v19  ;;  %v5726_v51 = vpop.xlane.xlu1 %1273  ;;  %v1293_v6 = vadd.f32 %v5687_v36, %v1079_v50  ;;  %v2268_v39 = vsel %vm462_vm5, %v2234_v44, 0.0  ;;  %v6388_v50 = vld [vmem:[#allocation54_spill] sm:$0xff] }
 0x2f7   : > { %v5730_v14 = vpop.xlane.xlu0 %1421  ;;  %v2262_v4 = vsel %vm462_vm5, %v2232_v10, 0.0  ;;  %v4066_v10 = vld [vmem:[#allocation2 + $0xca] sm:$0xff] }
 0x2f9   : > { %2245 = vadd.xlane.f32.xlu1 %v2244_v21 }
 0x2fa   : > { %2260 = vadd.xlane.f32.xlu0 %v2259_v32  ;;  %v5737_v57 = vpop.xlane.xlu1 %1279 }
 0x2fb   : > { %v1428_v43 = vpop.xlane.xlu0 %1427 }
 0x2fc   : > { %v5744_v56 = vadd.f32 %v1428_v43, %v1289_v0  ;;  %v6382_v0 = vld [vmem:[#allocation36_spill] sm:$0xff] }
 0x2fd   : > { %2251 = vadd.xlane.f32.xlu1 %v2250_v2  ;;  %v869_v33 = vadd.f32 %v5064_v5, %v6382_v0  ;;  %v1295_v2 = vadd.f32 %v5695_v34, %v1081_v46  ;;  %v4065_v43 = vld [vmem:[#allocation2 + $0xb2] sm:$0xff]  ;;  %v6383_v5 = vld [vmem:[#allocation35_spill] sm:$0xff] }
 0x2fe   : > { %2266 = vadd.xlane.f32.xlu0 %v2265_v40  ;;  %v5751_v28 = vpop.xlane.xlu1 %1285  ;;  %v2236_v11 = vmul.f32 %v4065_v43, %v5691_v8  ;;  %v1078_v40 = vadd.f32 %v5287_v27, %v864_v20  ;;  %v6384_v34 = vld [vmem:[#allocation45_spill] sm:$0xff]  ;;  %v6395_v20 = vld [vmem:[#allocation44_spill] sm:$0xff] }
 0x2ff   : > { %v1434_v1 = vpop.xlane.xlu0 %1433  ;;  %v1083_v23 = vadd.f32 %v5295_v24, %v869_v33  ;;  %v866_v59 = vadd.f32 %v6384_v34, %v6383_v5  ;;  %v2238_v24 = vmul.f32 %v4066_v10, %v5691_v8  ;;  %v6399_v43 = vld [vmem:[#allocation52_spill] sm:$0xff] }
 0x300   : > { %v5760_v19 = vadd.f32 %v1434_v1, %v1291_v48  ;;  %v1292_v38 = vadd.f32 %v5699_v45, %v1078_v40  ;;  %v871_v48 = vadd.f32 %v6386_v22, %v6385_v15  ;;  %v2274_v42 = vsel %vm462_vm5, %v2236_v11, 0.0  ;;  %v6402_v22 = vld [vmem:[#allocation41_spill] sm:$0xff] }
 0x301   : > { %2257 = vadd.xlane.f32.xlu1 %v2256_v30  ;;  %v1297_v27 = vadd.f32 %v5704_v25, %v1083_v23  ;;  %v1080_v1 = vadd.f32 %v6387_v9, %v866_v59  ;;  %v2280_v44 = vsel %vm462_vm5, %v2238_v24, 0.0  ;;  %v6401_v59 = vld [vmem:[#allocation43_spill] sm:$0xff] }
 0x302   : > { %2272 = vadd.xlane.f32.xlu0 %v2271_v35  ;;  %v1425_v21 = vpop.xlane.xlu1 %1424  ;;  %v1085_v45 = vadd.f32 %v6388_v50, %v871_v48  ;;  %v6403_v48 = vld [vmem:[#allocation50_spill] sm:$0xff]  ;;  %v6406_v50 = vld [vmem:[#allocation51_spill] sm:$0xff] }
 0x303   : > { %v5771_v32 = vadd.f32 %v1425_v21, %v1288_v18  ;;  %v1440_v58 = vpop.xlane.xlu0 %1439  ;;  %v6390_v18 = vld [vmem:[#allocation47_spill] sm:$0xff]  ;;  %v1294_v25 = vadd.f32 %v5708_v61, %v1080_v1  ;;  %v6396_v61 = vld [vmem:[#allocation56_spill] sm:$0xff] }
 0x304   : > { %v5776_v36 = vadd.f32 %v1440_v58, %v1293_v6  ;;  %v868_v62 = vadd.f32 %v6390_v18, %v6389_v53  ;;  %v6392_v6 = vld [vmem:[#allocation48_spill] sm:$0xff]  ;;  %v2240_v58 = vmul.f32 %v4067_v13, %v5691_v8 }
 0x305   : > { %2263 = vadd.xlane.f32.xlu1 %v2262_v4  ;;  %v873_v21 = vadd.f32 %v6392_v6, %v6391_v7  ;;  %v1299_v4 = vadd.f32 %v5712_v29, %v1085_v45 }
 0x306   : > { %2278 = vadd.xlane.f32.xlu0 %v2277_v37  ;;  %v1431_v31 = vpop.xlane.xlu1 %1430  ;;  %v6393_v37 = vld [vmem:[#allocation55_spill] sm:$0xff] }
 0x307   : > { %v5787_v54 = vadd.f32 %v1431_v31, %v1290_v63  ;;  %v1446_v3 = vpop.xlane.xlu0 %1445  ;;  %v1082_v49 = vadd.f32 %v6393_v37, %v868_v62  ;;  %v859_v63 = vadd.f32 %v6395_v20, %v6394_v47  ;;  %v1087_v0 = vadd.f32 %v6396_v61, %v873_v21  ;;  %v6398_v31 = vld [vmem:[#allocation49_spill] sm:$0xff]  ;;  %v6407_v62 = vld [vmem:[#allocation59_spill] sm:$0xff]  ;;  %v3484_v21 = vld [vmem:[#allocation6] ss:$0 sm:$0xff] }
 0x308   : > { %v5791_v26 = vadd.f32 %v1446_v3, %v1295_v2  ;;  %v6397_v2 = vld [vmem:[#allocation39_spill] sm:$0xff]  ;;  %v2286_v3 = vsel %vm462_vm5, %v2240_v58, 0.0 }
 0x309   : > { %2269 = vadd.xlane.f32.xlu1 %v2268_v39  ;;  %v870_v39 = vadd.f32 %v6398_v31, %v6397_v2  ;;  %v1296_v29 = vadd.f32 %v5716_v12, %v1082_v49  ;;  %v1073_v11 = vadd.f32 %v6399_v43, %v859_v63  ;;  %v1301_v8 = vadd.f32 %v5720_v55, %v1087_v0  ;;  %v6404_v55 = vld [vmem:[#allocation58_spill] sm:$0xff] }
 0x30a   : > { %2284 = vadd.xlane.f32.xlu0 %v2283_v41  ;;  %v1437_v30 = vpop.xlane.xlu1 %1436  ;;  %v6400_v41 = vld [vmem:[#allocation57_spill] sm:$0xff] }
 0x30b   : > { %v5802_v35 = vadd.f32 %v1437_v30, %v1292_v38  ;;  %v1452_v60 = vpop.xlane.xlu0 %1451  ;;  %v1084_v23 = vadd.f32 %v6400_v41, %v870_v39  ;;  %v1287_v38 = vadd.f32 %v6401_v59, %v1073_v11 }
 0x30c   : > { %v1478_v17 = vadd.f32 %v1452_v60, %v1297_v27  ;;  %v872_v27 = vadd.f32 %v6403_v48, %v6402_v22  ;;  %v6405_v60 = vld [vmem:[#allocation42_spill] sm:$0xff] }
 0x30d   : > { %2275 = vadd.xlane.f32.xlu1 %v2274_v42  ;;  %v1298_v12 = vadd.f32 %v5726_v51, %v1084_v23  ;;  %v1468_v30 = vadd.f32 %v5730_v14, %v1287_v38  ;;  %v874_v45 = vadd.f32 %v6406_v50, %v6405_v60 }
 0x30e   : > { %v1443_v16 = vpop.xlane.xlu1 %1442  ;;  %v1086_v10 = vadd.f32 %v6404_v55, %v872_v27 }
 0x30f   : > { %v1475_v52 = vadd.f32 %v1443_v16, %v1294_v25  ;;  %v1458_v46 = vpop.xlane.xlu0 %1457  ;;  %v1088_v25 = vadd.f32 %v6407_v62, %v874_v45 }
 0x310   : > { %v1480_v33 = vadd.f32 %v1458_v46, %v1299_v4  ;;  %v1300_v53 = vadd.f32 %v5737_v57, %v1086_v10 }
 0x311   : > { %2281 = vadd.xlane.f32.xlu1 %v2280_v44  ;;  %v1302_v14 = vadd.f32 %v5751_v28, %v1088_v25 }
 0x312   : > { %v1449_v40 = vpop.xlane.xlu1 %1448 }
 0x313   : > { %v1477_v5 = vadd.f32 %v1449_v40, %v1296_v29  ;;  %v1464_v34 = vpop.xlane.xlu0 %1463 }
 0x314   : > { %v1482_v15 = vadd.f32 %v1464_v34, %v1301_v8 }
 0x315   : > { %2287 = vadd.xlane.f32.xlu1 %v2286_v3 }
 0x316   : > { %v1455_v42 = vpop.xlane.xlu1 %1454 }
 0x317   : > { %v1479_v24 = vadd.f32 %v1455_v42, %v1298_v12  ;;  %v1635_v9 = vpop.xlane.xlu0 %1634 }
 0x318   : > { %v1681_v1 = vadd.f32 %v1635_v9, %v1468_v30 }
 0x31a   : > { %v1461_v18 = vpop.xlane.xlu1 %1460 }
 0x31b   : > { %v1481_v7 = vadd.f32 %v1461_v18, %v1300_v53  ;;  %v1641_v6 = vpop.xlane.xlu0 %1640 }
 0x31c   : > { %v1683_v51 = vadd.f32 %v1641_v6, %v5744_v56 }
 0x31e   : > { %v1467_v4 = vpop.xlane.xlu1 %1466 }
 0x31f   : > { %v1483_v16 = vadd.f32 %v1467_v4, %v1302_v14  ;;  %v1647_v44 = vpop.xlane.xlu0 %1646  ;;  %v3715_v23 = vpop.f32.mrf.mxu0 }
 0x320   : > { %v1685_v13 = vadd.f32 %v1647_v44, %v5760_v19  ;;  %2312 = vperm.xlu0 %3959, %v3484_v21  }
 0x321   : > { %v3716_v59 = vpop.f32.mrf.mxu0 }
 0x322   : > { %v1638_v58 = vpop.xlane.xlu1 %1637 }
 0x323   : > { %v1682_v37 = vadd.f32 %v1638_v58, %v5771_v32  ;;  %v1653_v57 = vpop.xlane.xlu0 %1652  ;;  %v3718_v12 = vpop.f32.mrf.mxu0 }
 0x324   : > { %v1687_v49 = vadd.f32 %v1653_v57, %v5776_v36 }
 0x325   : > { %v3719_v9 = vpop.f32.mrf.mxu0 }
 0x326   : > { %v1644_v46 = vpop.xlane.xlu1 %1643 }
 0x327   : > { %v1684_v47 = vadd.f32 %v1644_v46, %v5787_v54  ;;  %v1659_v20 = vpop.xlane.xlu0 %1658 }
 0x328   : > { %v1689_v56 = vadd.f32 %v1659_v20, %v5791_v26 }
 0x32a   : > { %v1650_v28 = vpop.xlane.xlu1 %1649 }
 0x32b   : > { %v1686_v63 = vadd.f32 %v1650_v28, %v5802_v35  ;;  %v1665_v61 = vpop.xlane.xlu0 %1664 }
 0x32c   : > { %v1691_v0 = vadd.f32 %v1665_v61, %v1478_v17 }
 0x32e   : > { %v1656_v2 = vpop.xlane.xlu1 %1655 }
 0x32f   : > { %v1688_v19 = vadd.f32 %v1656_v2, %v1475_v52  ;;  %v1671_v31 = vpop.xlane.xlu0 %1670 }
 0x330   : > { %v1693_v39 = vadd.f32 %v1671_v31, %v1480_v33 }
 0x332   : > { %v1662_v29 = vpop.xlane.xlu1 %1661 }
 0x333   : > { %v1690_v32 = vadd.f32 %v1662_v29, %v1477_v5  ;;  %v1677_v43 = vpop.xlane.xlu0 %1676 }
 0x334   : > { %v1695_v11 = vadd.f32 %v1677_v43, %v1482_v15 }
 0x336   : > { %v1668_v36 = vpop.xlane.xlu1 %1667 }
 0x337   : > { %v1692_v8 = vadd.f32 %v1668_v36, %v1479_v24  ;;  %v1849_v40 = vpop.xlane.xlu0 %1848 }
 0x338   : > { %v5842_v54 = vadd.f32 %v1849_v40, %v1681_v1 }
 0x33a   : > { %v1674_v3 = vpop.xlane.xlu1 %1673 }
 0x33b   : > { %v5844_v26 = vadd.f32 %v1674_v3, %v1481_v7  ;;  %v1855_v41 = vpop.xlane.xlu0 %1854  ;;  %v5856_v48 = vpop.f32.mrf.mxu1 }
 0x33c   : > { %v5846_v35 = vadd.f32 %v1855_v41, %v1683_v51 }
 0x33d   : > { %v5862_v10 = vpop.f32.mrf.mxu1 }
 0x33e   : > { %v1680_v17 = vpop.xlane.xlu1 %1679 }
 0x33f   : > { %v5848_v52 = vadd.f32 %v1680_v17, %v1483_v16  ;;  %v1861_v33 = vpop.xlane.xlu0 %1860  ;;  %v5868_v53 = vpop.f32.mrf.mxu1 }
 0x340   : > { %v5850_v34 = vadd.f32 %v1861_v33, %v1685_v13 }
 0x341   : > { %v5874_v51 = vpop.f32.mrf.mxu1 }
 0x342   : > { %v1852_v5 = vpop.xlane.xlu1 %1851 }
 0x343   : > { %v5852_v38 = vadd.f32 %v1852_v5, %v1682_v37  ;;  %v1867_v15 = vpop.xlane.xlu0 %1866 }
 0x344   : > { %v5854_v22 = vadd.f32 %v1867_v15, %v1687_v49  ;;  %v3721_v45 = vpop.f32.mrf.mxu0 }
 0x346   : > { %v1858_v27 = vpop.xlane.xlu1 %1857  ;;  %v3722_v6 = vpop.f32.mrf.mxu0 }
 0x347   : > { %v5858_v30 = vadd.f32 %v1858_v27, %v1684_v47  ;;  %v1873_v42 = vpop.xlane.xlu0 %1872  ;;  %v3723_v28 = vadd.f32 %v3722_v6, %v3721_v45 }
 0x348   : > { %v5860_v55 = vadd.f32 %v1873_v42, %v1689_v56  ;;  %v3724_v13 = vpop.f32.mrf.mxu0 }
 0x34a   : > { %v1864_v24 = vpop.xlane.xlu1 %1863  ;;  %v3725_v47 = vpop.f32.mrf.mxu0 }
 0x34b   : > { %v5864_v1 = vadd.f32 %v1864_v24, %v1686_v63  ;;  %v1879_v60 = vpop.xlane.xlu0 %1878  ;;  %v3726_v43 = vadd.f32 %v3725_v47, %v3724_v13 }
 0x34c   : > { %v5866_v50 = vadd.f32 %v1879_v60, %v1691_v0 }
 0x34e   : > { %v1870_v18 = vpop.xlane.xlu1 %1869 }
 0x34f   : > { %v5870_v62 = vadd.f32 %v1870_v18, %v1688_v19  ;;  %v1885_v25 = vpop.xlane.xlu0 %1884  ;;  %v3717_v19 = vadd.f32 %v3716_v59, %v3715_v23 }
 0x350   : > { %v5872_v7 = vadd.f32 %v1885_v25, %v1693_v39 }
 0x352   : > { %v1876_v14 = vpop.xlane.xlu1 %1875 }
 0x353   : > { %v5876_v21 = vadd.f32 %v1876_v14, %v1690_v32  ;;  %v1891_v4 = vpop.xlane.xlu0 %1890  ;;  %v5881_v44 = vpop.f32.mrf.mxu1 }
 0x354   : > { %v5879_v16 = vadd.f32 %v1891_v4, %v1695_v11 }
 0x355   : > { %v5886_v37 = vpop.f32.mrf.mxu1 }
 0x356   : > { %v1882_v58 = vpop.xlane.xlu1 %1881 }
 0x357   : > { %v5888_v57 = vadd.f32 %v1882_v58, %v1692_v8  ;;  %v5890_v49 = vpop.xlane.xlu0 %2061  ;;  %v5892_v46 = vpop.f32.mrf.mxu1  ;;  %v3720_v8 = vadd.f32 %v3719_v9, %v3718_v12 }
 0x359   : > { %v5896_v56 = vpop.f32.mrf.mxu1 }
 0x35a   : > { %v5894_v20 = vpop.xlane.xlu1 %1887 }
 0x35b   : > { %v5898_v63 = vpop.xlane.xlu0 %2067  ;;  %v3779_v0 = vpop.f32.mrf.mxu1 }
 0x35c   : > { %v3727_v61 = vpop.f32.mrf.mxu0  ;;  %v5900_v2 = vadd.f32 %v3779_v0, %v3723_v28 }
 0x35d   : > { %v2891_v32 = vpop.f32.mrf.mxu1 }
 0x35e   : > { %6408 = vst [vmem:[#allocation29_spill] sm:$0xff] %v5900_v2  ;;  %v5902_v31 = vpop.xlane.xlu1 %1893  ;;  %v3728_v39 = vpop.f32.mrf.mxu0  ;;  %2956 = vst [vmem:[%s4608_s20 + $0x10] sm:$0xff] %v5900_v2  ;;  %v5908_v11 = vadd.f32 %v3717_v19, %v2891_v32 }
 0x35f   : > { %v5906_v29 = vpop.xlane.xlu0 %2073  ;;  %v3780_v36 = vpop.f32.mrf.mxu1  ;;  %v3729_v59 = vadd.f32 %v3728_v39, %v3727_v61 }
 0x360   : > { %2954 = vst [vmem:[%s4608_s20] sm:$0xff] %v5908_v11  ;;  %v3730_v40 = vpop.f32.mrf.mxu0  ;;  %v5912_v3 = vadd.f32 %v3780_v36, %v3726_v43 }
 0x361   : > { %v2894_v23 = vpop.f32.mrf.mxu1 }
 0x362   : > { %6409 = vst [vmem:[#allocation30_spill] sm:$0xff] %v5912_v3  ;;  %v5914_v41 = vpop.xlane.xlu1 %2064  ;;  %2957 = vst [vmem:[%s4608_s20 + $0x18] sm:$0xff] %v5912_v3  ;;  %v5920_v33 = vadd.f32 %v3720_v8, %v2894_v23  ;;  %v3731_v15 = vpop.f32.mrf.mxu0 }
 0x363   : > { %v5916_v17 = vpop.xlane.xlu0 %2079  ;;  %v3783_v5 = vpop.f32.mrf.mxu1  ;;  %v3732_v45 = vadd.f32 %v3731_v15, %v3730_v40  ;;  %v3759_v15 = vadd.f32 %v5886_v37, %v5881_v44  ;;  %v3762_v44 = vadd.f32 %v5896_v56, %v5892_v46 }
 0x364   : > { %6410 = vst [vmem:[#allocation28_spill] sm:$0xff] %v5920_v33  ;;  %2955 = vst [vmem:[%s4608_s20 + $0x8] sm:$0xff] %v5920_v33  ;;  %v2970_v47 = vadd.f32 %v5920_v33, %v5908_v11 }
 0x365   : > { %v2907_v42 = vpop.f32.mrf.mxu1 }
 0x366   : > { %v5924_v27 = vpop.xlane.xlu1 %2070  ;;  %v5928_v24 = vadd.f32 %v3729_v59, %v2907_v42  ;;  %v2971_v36 = vadd.f32 %v2970_v47, %v5900_v2 }
 0x367   : > { %v5926_v12 = vpop.xlane.xlu0 %2085  ;;  %v3784_v60 = vpop.f32.mrf.mxu1 }
 0x368   : > { %6411 = vst [vmem:[#allocation32_spill] sm:$0xff] %v5928_v24  ;;  %v3733_v9 = vpop.f32.mrf.mxu0  ;;  %2958 = vst [vmem:[%s4608_s20 + $0x20] sm:$0xff] %v5928_v24 }
 0x369   : > { %v2910_v4 = vpop.f32.mrf.mxu1 }
 0x36a   : > { %v5932_v18 = vpop.xlane.xlu1 %2076  ;;  %v3734_v25 = vpop.f32.mrf.mxu0  ;;  %v5936_v13 = vadd.f32 %v3732_v45, %v2910_v4 }
 0x36b   : > { %v5934_v6 = vpop.xlane.xlu0 %2091  ;;  %v3735_v14 = vadd.f32 %v3734_v25, %v3733_v9  ;;  %v3787_v61 = vpop.f32.mrf.mxu1  ;;  %v2972_v9 = vadd.f32 %v2971_v36, %v5912_v3 }
 0x36c   : > { %6412 = vst [vmem:[#allocation31_spill] sm:$0xff] %v5936_v13  ;;  %v3736_v58 = vpop.f32.mrf.mxu0  ;;  %2959 = vst [vmem:[%s4608_s20 + $0x28] sm:$0xff] %v5936_v13 }
 0x36d   : > { %v5940_v28 = vadd.f32 %v3783_v5, %v3735_v14  ;;  %v2923_v43 = vpop.f32.mrf.mxu1 }
 0x36e   : > { %v5944_v0 = vpop.xlane.xlu1 %2082  ;;  %v3737_v19 = vpop.f32.mrf.mxu0 }
 0x36f   : > { %6413 = vst [vmem:[#allocation34_spill] sm:$0xff] %v5940_v28  ;;  %2960 = vst [vmem:[%s4608_s20 + $0x30] sm:$0xff] %v5940_v28  ;;  %v5948_v39 = vpop.xlane.xlu0 %2097  ;;  %v3738_v32 = vadd.f32 %v3737_v19, %v3736_v58  ;;  %v3788_v40 = vpop.f32.mrf.mxu1 }
 0x371   : > { %v5951_v8 = vadd.f32 %v3784_v60, %v3738_v32  ;;  %v2926_v59 = vpop.f32.mrf.mxu1  ;;  %v3753_v60 = vadd.f32 %v5862_v10, %v5856_v48  ;;  %v2973_v48 = vadd.f32 %v2972_v9, %v5928_v24 }
 0x372   : > { %v5953_v23 = vpop.xlane.xlu1 %2088 }
 0x373   : > { %6414 = vst [vmem:[#allocation33_spill] sm:$0xff] %v5951_v8  ;;  %2961 = vst [vmem:[%s4608_s20 + $0x38] sm:$0xff] %v5951_v8  ;;  %v5957_v5 = vpop.xlane.xlu0 %2103  ;;  %v3791_v45 = vpop.f32.mrf.mxu1 }
 0x374   : > { %v3739_v42 = vpop.f32.mrf.mxu0  ;;  %v5964_v25 = vadd.f32 %v3791_v45, %v3759_v15  ;;  %v3756_v15 = vadd.f32 %v5874_v51, %v5868_v53 }
 0x375   : > { %v2939_v19 = vpop.f32.mrf.mxu1 }
 0x376   : > { %v5966_v14 = vpop.xlane.xlu1 %2094  ;;  %v3740_v4 = vpop.f32.mrf.mxu0  ;;  %2968 = vst [vmem:[%s4608_s20 + $0x70] sm:$0xff] %v5964_v25  ;;  %v5974_v37 = vadd.f32 %v3753_v60, %v2939_v19 }
 0x377   : > { %v5968_v58 = vpop.xlane.xlu0 %2242  ;;  %v3741_v47 = vadd.f32 %v3740_v4, %v3739_v42  ;;  %v3792_v36 = vpop.f32.mrf.mxu1  ;;  %v2974_v4 = vadd.f32 %v2973_v48, %v5936_v13 }
 0x378   : > { %v3742_v32 = vpop.f32.mrf.mxu0  ;;  %2966 = vst [vmem:[%s4608_s20 + $0x60] sm:$0xff] %v5974_v37  ;;  %v5983_v42 = vadd.f32 %v3792_v36, %v3762_v44 }
 0x379   : > { %v5977_v10 = vadd.f32 %v3741_v47, %v2923_v43  ;;  %v2942_v60 = vpop.f32.mrf.mxu1  ;;  %v2975_v44 = vadd.f32 %v2974_v4, %v5940_v28 }
 0x37a   : > { %v5985_v46 = vpop.xlane.xlu1 %2100  ;;  %v3743_v56 = vpop.f32.mrf.mxu0  ;;  %2969 = vst [vmem:[%s4608_s20 + $0x78] sm:$0xff] %v5983_v42  ;;  %v5993_v43 = vadd.f32 %v3756_v15, %v2942_v60 }
 0x37b   : > { %6415 = vst [vmem:[#allocation36_spill] sm:$0xff] %v5977_v10  ;;  %2962 = vst [vmem:[%s4608_s20 + $0x40] sm:$0xff] %v5977_v10  ;;  %v5989_v45 = vpop.xlane.xlu0 %2248  ;;  %v3744_v9 = vadd.f32 %v3743_v56, %v3742_v32  ;;  %v2976_v15 = vadd.f32 %v2975_v44, %v5951_v8 }
 0x37c   : > { %6416 = vst [vmem:[#allocation35_spill] sm:$0xff] %v5993_v43  ;;  %2967 = vst [vmem:[%s4608_s20 + $0x68] sm:$0xff] %v5993_v43 }
 0x37d   : > { %v5996_v53 = vadd.f32 %v3744_v9, %v2926_v59  ;;  %v2977_v9 = vadd.f32 %v2976_v15, %v5977_v10 }
 0x37e   : > { %v6000_v51 = vpop.xlane.xlu1 %2106 }
 0x37f   : > { %6417 = vst [vmem:[#allocation45_spill] sm:$0xff] %v5996_v53  ;;  %2963 = vst [vmem:[%s4608_s20 + $0x48] sm:$0xff] %v5996_v53  ;;  %v6004_v47 = vpop.xlane.xlu0 %2254  ;;  %v3745_v19 = vpop.f32.mrf.mxu0  ;;  %v2978_v3 = vadd.f32 %v2977_v9, %v5996_v53 }
 0x381   : > { %v3746_v36 = vpop.f32.mrf.mxu0 }
 0x382   : > { %v2246_v32 = vpop.xlane.xlu1 %2245  ;;  %v3747_v59 = vadd.f32 %v3746_v36, %v3745_v19 }
 0x383   : > { %v6008_v48 = vpop.xlane.xlu0 %2260  ;;  %v3748_v56 = vpop.f32.mrf.mxu0 }
 0x384   : > { %v6011_v60 = vadd.f32 %v3787_v61, %v3747_v59  ;;  %v2347_v61 = vlaneseq }
 0x385   : > { %v3749_v24 = vpop.f32.mrf.mxu0 }
 0x386   : > { %6418 = vst [vmem:[#allocation38_spill] sm:$0xff] %v6011_v60  ;;  %v2252_v13 = vpop.xlane.xlu1 %2251  ;;  %2964 = vst [vmem:[%s4608_s20 + $0x50] sm:$0xff] %v6011_v60  ;;  %v3750_v28 = vadd.f32 %v3749_v24, %v3748_v56  ;;  %v2979_v2 = vadd.f32 %v2978_v3, %v6011_v60  ;;  %v2348_v53 = vand.u32 127, %v2347_v61 }
 0x387   : > { %v2267_v4 = vpop.xlane.xlu0 %2266 }
 0x388   : > { %v6017_v33 = vadd.f32 %v3788_v40, %v3750_v28  ;;  %v2350_v28 = vshrl.u32 %v2347_v61, 7  ;;  %v2353_v40 = vadd.s32 4294967288, %v2348_v53  ;;  %v2110_v61 = vadd.f32 %v5898_v63, %v5846_v35 }
 0x389   : > { %v2116_v35 = vadd.f32 %v5926_v12, %v5860_v55  ;;  %v2120_v55 = vadd.f32 %v5948_v39, %v5872_v7 }
 0x38a   : > { %6419 = vst [vmem:[#allocation46_spill] sm:$0xff] %v6017_v33  ;;  %v2258_v44 = vpop.xlane.xlu1 %2257  ;;  %2965 = vst [vmem:[%s4608_s20 + $0x58] sm:$0xff] %v6017_v33  ;;  %v2980_v19 = vadd.f32 %v2979_v2, %v6017_v33  ;;  %v2108_v33 = vadd.f32 %v5890_v49, %v5842_v54  ;;  %v2112_v54 = vadd.f32 %v5906_v29, %v5850_v34 }
 0x38b   : > { %v6022_v36 = vpop.xlane.xlu0 %2272  ;;  %v2118_v34 = vadd.f32 %v5934_v6, %v5866_v50  ;;  %v2119_v50 = vadd.f32 %v5966_v14, %v5888_v57  ;;  %v2291_v12 = vadd.f32 %v5989_v45, %v2110_v61 }
 0x38c   : > { %v2981_v15 = vadd.f32 %v2980_v19, %v5974_v37  ;;  %v2109_v19 = vadd.f32 %v5914_v41, %v5852_v38  ;;  %v2289_v38 = vadd.f32 %v5968_v58, %v2108_v33  ;;  %v2114_v41 = vadd.f32 %v5916_v17, %v5854_v22 }
 0x38d   : > { %v2117_v17 = vadd.f32 %v5953_v23, %v5876_v21 }
 0x38e   : > { %v2982_v59 = vadd.f32 %v2981_v15, %v5993_v43  ;;  %v2264_v9 = vpop.xlane.xlu1 %2263  ;;  %v6032_v15 = vsub.s32 %v2348_v53, %v2350_v28  ;;  %v6034_v43 = vsub.s32 %v2353_v40, %v2350_v28  ;;  %v2290_v49 = vadd.f32 %v2246_v32, %v2109_v19 }
 0x38f   : > { %v2279_v56 = vpop.xlane.xlu0 %2278  ;;  %v2295_v7 = vadd.f32 %v6008_v48, %v2114_v41 }
 0x390   : > { %v2983_v24 = vadd.f32 %v2982_v59, %v5964_v25  ;;  %v1908_v59 = vadd.f32 %v5894_v20, %v5844_v26  ;;  %v2111_v26 = vadd.f32 %v5924_v27, %v5858_v30  ;;  %v2115_v30 = vadd.f32 %v5944_v0, %v5870_v62 }
 0x391   : > { %v2293_v62 = vadd.f32 %v6004_v47, %v2112_v54 }
 0x392   : > { %v2984_v3 = vadd.f32 %v2983_v24, %v5983_v42  ;;  %v2270_v10 = vpop.xlane.xlu1 %2269  ;;  %v2121_v27 = vadd.f32 %v5985_v46, %v1908_v59  ;;  %v2292_v21 = vadd.f32 %v2252_v13, %v2111_v26  ;;  %v2296_v23 = vadd.f32 %v2264_v9, %v2115_v30  ;;  %v6421_v59 = vld [vmem:[#allocation29_spill] sm:$0xff]  ;;  %v6424_v30 = vld [vmem:[#allocation31_spill] sm:$0xff] }
 0x393   : > { %v2285_v2 = vpop.xlane.xlu0 %2284  ;;  %v2298_v9 = vadd.f32 %v2270_v10, %v2117_v17  ;;  %v6425_v17 = vld [vmem:[#allocation34_spill] sm:$0xff] }
 0x394   : > { %v2985_v60 = vrot.slane %v2984_v3, 4 }
 0x396   : > { %v2986_v8 = vadd.f32 %v2985_v60, %v2984_v3  ;;  %v1910_v60 = vadd.f32 %v5902_v31, %v5848_v52  ;;  %v2113_v52 = vadd.f32 %v5932_v18, %v5864_v1  ;;  %v2276_v31 = vpop.xlane.xlu1 %2275  ;;  %v2122_v1 = vadd.f32 %v5957_v5, %v5879_v16 }
 0x397   : > { %v2300_v28 = vadd.f32 %v2276_v31, %v2119_v50 }
 0x398   : > { %v2987_v24 = vrot.slane %v2986_v8, 2  ;;  %v6072_v18 = vadd.f32 %v6000_v51, %v1910_v60  ;;  %v2294_v0 = vadd.f32 %v2258_v44, %v2113_v52  ;;  %v6420_v51 = vld [vmem:[#allocation28_spill] sm:$0xff]  ;;  %v2301_v44 = vadd.f32 %v2279_v56, %v2120_v55 }
 0x399   : > { %v2303_v3 = vadd.f32 %v2285_v2, %v2122_v1 }
 0x39a   : > { %v2988_v20 = vadd.f32 %v2987_v24, %v2986_v8  ;;  %v2297_v8 = vadd.f32 %v2267_v4, %v2116_v35  ;;  %v2282_v14 = vpop.xlane.xlu1 %2281  ;;  %v2299_v4 = vadd.f32 %v6022_v36, %v2118_v34  ;;  %v6422_v35 = vld [vmem:[#allocation30_spill] sm:$0xff] }
 0x39b   : > { %v6051_v63 = vpop.permute.xlu0 %2312  ;;  %v2302_v40 = vadd.f32 %v2282_v14, %v2121_v27 }
 0x39c   : > { %v2315_v29 = vadd.f32 %v6051_v63, %v2289_v38  ;;  %v2316_v22 = vadd.f32 %v6051_v63, %v2290_v49  ;;  %v2989_v33 = vrot.slane %v2988_v20, 1  ;;  %v2317_v5 = vadd.f32 %v6051_v63, %v2291_v12 }
 0x39d   : > { %v2318_v58 = vadd.f32 %v6051_v63, %v2292_v21  ;;  %v2319_v46 = vadd.f32 %v6051_v63, %v2293_v62  ;;  %v2320_v45 = vadd.f32 %v6051_v63, %v2294_v0  ;;  %v2321_v32 = vadd.f32 %v6051_v63, %v2295_v7 }
 0x39e   : > { %v2990_v6 = vadd.f32 %v2989_v33, %v2988_v20  ;;  %v2352_v39 = vrot.slane %v2315_v29, %v6032_v15  ;;  %v2357_v16 = vrot.slane %v2316_v22, %v6034_v43  ;;  %v2322_v48 = vadd.f32 %v6051_v63, %v2296_v23  ;;  %v6423_v29 = vld [vmem:[#allocation32_spill] sm:$0xff]  ;;  %v2288_v7 = vpop.xlane.xlu1 %2287 }
 0x39f   : > { %v2323_v19 = vadd.f32 %v6051_v63, %v2297_v8  ;;  %v2367_v24 = vrot.slane %v2318_v58, %v6034_v43  ;;  %v2372_v60 = vrot.slane %v2319_v46, %v6032_v15  ;;  %v2376_v36 = vrot.slane %v2320_v45, %v6034_v43 }
 0x3a0   : > { %v6078_v57 = vmul.f32 0.0078125, %v2990_v6  ;;  %v2359_v13 = vsel %vm2358_vm10, %v2357_v16, %v2352_v39  ;;  %v2381_v2 = vrot.slane %v2321_v32, %v6032_v15  ;;  %v2385_v54 = vrot.slane %v2322_v48, %v6034_v43 }
 0x3a1   : > { %v2324_v38 = vadd.f32 %v6051_v63, %v2298_v9  ;;  %v2325_v49 = vadd.f32 %v6051_v63, %v2299_v4  ;;  %v2326_v41 = vadd.f32 %v6051_v63, %v2300_v28  ;;  %v2327_v26 = vadd.f32 %v6051_v63, %v2301_v44 }
 0x3a2   : > { %v2992_v53 = vsub.f32 %v5908_v11, %v6078_v57  ;;  %v2993_v47 = vsub.f32 %v6420_v51, %v6078_v57  ;;  %v2363_v11 = vrot.slane %v2317_v5, %v6032_v15  ;;  %v2994_v61 = vsub.f32 %v6421_v59, %v6078_v57 }
 0x3a3   : > { %v2995_v20 = vsub.f32 %v6422_v35, %v6078_v57  ;;  %v2328_v52 = vadd.f32 %v6051_v63, %v2302_v40  ;;  %v2329_v34 = vadd.f32 %v6051_v63, %v2303_v3  ;;  %v2390_v31 = vrot.slane %v2323_v19, %v6032_v15 }
 0x3a4   : > { %v3008_v10 = vmul.f32 %v2992_v53, %v2992_v53  ;;  %v3009_v56 = vmul.f32 %v2993_v47, %v2993_v47  ;;  %v2996_v22 = vsub.f32 %v6423_v29, %v6078_v57  ;;  %v2997_v55 = vsub.f32 %v6424_v30, %v6078_v57 }
 0x3a5   : > { %v2998_v33 = vsub.f32 %v6425_v17, %v6078_v57  ;;  %v3010_v1 = vmul.f32 %v2994_v61, %v2994_v61  ;;  %v2368_v27 = vsel %vm2358_vm10, %v2367_v24, %v2363_v11  ;;  %v2377_v12 = vsel %vm2358_vm10, %v2376_v36, %v2372_v60  ;;  %v6427_v11 = vld [vmem:[#allocation36_spill] sm:$0xff]  ;;  %v6428_v60 = vld [vmem:[#allocation45_spill] sm:$0xff] }
 0x3a6   : > { %v3024_v50 = vadd.f32 %v3009_v56, %v3008_v10  ;;  %v2386_v62 = vsel %vm2358_vm10, %v2385_v54, %v2381_v2  ;;  %v2394_v6 = vrot.slane %v2324_v38, %v6034_v43  ;;  %v2399_v21 = vrot.slane %v2325_v49, %v6032_v15  ;;  %v6430_v49 = vld [vmem:[#allocation46_spill] sm:$0xff] }
 0x3a7   : > { %v2403_v0 = vrot.slane %v2326_v41, %v6034_v43  ;;  %v2408_v39 = vrot.slane %v2327_v26, %v6032_v15  ;;  %v3011_v16 = vmul.f32 %v2995_v20, %v2995_v20  ;;  %v2412_v23 = vrot.slane %v2328_v52, %v6034_v43 }
 0x3a8   : > { %v3025_v8 = vadd.f32 %v3024_v50, %v3010_v1  ;;  %v2424_v5 = vsel %vm2423_vm11, %v2368_v27, %v2359_v13  ;;  %v2395_v14 = vsel %vm2358_vm10, %v2394_v6, %v2390_v31  ;;  %v2304_v45 = vadd.f32 %v2288_v7, %v6072_v18  ;;  %v6426_v13 = vld [vmem:[#allocation33_spill] sm:$0xff]  ;;  %v6431_v31 = vld [vmem:[#allocation35_spill] sm:$0xff] }
 0x3a9   : > { %v2404_v58 = vsel %vm2358_vm10, %v2403_v0, %v2399_v21  ;;  %v2426_v46 = vsel %vm2425_vm12, %v2377_v12, %v2424_v5  ;;  %v3012_v53 = vmul.f32 %v2996_v22, %v2996_v22  ;;  %v2413_v47 = vsel %vm2358_vm10, %v2412_v23, %v2408_v39 }
 0x3aa   : > { %v3026_v51 = vadd.f32 %v3025_v8, %v3011_v16  ;;  %v2428_v32 = vsel %vm2427_vm13, %v2386_v62, %v2426_v46  ;;  %v2330_v4 = vadd.f32 %v6051_v63, %v2304_v45  ;;  %v2999_v44 = vsub.f32 %v6426_v13, %v6078_v57 }
 0x3ab   : > { %v2430_v48 = vsel %vm2429_vm14, %v2395_v14, %v2428_v32  ;;  %v3013_v9 = vmul.f32 %v2997_v55, %v2997_v55  ;;  %v2417_v18 = vrot.slane %v2329_v34, %v6032_v15  ;;  %v3000_v59 = vsub.f32 %v6427_v11, %v6078_v57  ;;  %v6429_v15 = vld [vmem:[#allocation38_spill] sm:$0xff] }
 0x3ac   : > { %v3027_v3 = vadd.f32 %v3026_v51, %v3012_v53  ;;  %v2432_v28 = vsel %vm2431_vm15, %v2404_v58, %v2430_v48  ;;  %v2421_v19 = vrot.slane %v2330_v4, %v6034_v43  ;;  %v3014_v61 = vmul.f32 %v2998_v33, %v2998_v33 }
 0x3ad   : > { %v2434_v40 = vsel %vm2433_vm0, %v2413_v47, %v2432_v28  ;;  %v3001_v36 = vsub.f32 %v6428_v60, %v6078_v57  ;;  %v3015_v10 = vmul.f32 %v2999_v44, %v2999_v44  ;;  %v3002_v54 = vsub.f32 %v6429_v15, %v6078_v57 }
 0x3ae   : > { %v3028_v63 = vadd.f32 %v3027_v3, %v3013_v9  ;;  %v2422_v24 = vsel %vm2358_vm10, %v2421_v19, %v2417_v18  ;;  %v3016_v38 = vmul.f32 %v3000_v59, %v3000_v59  ;;  %v3003_v41 = vsub.f32 %v6430_v49, %v6078_v57 }
 0x3af   : > { %v2436_v2 = vsel %vm2435_vm1, %v2422_v24, %v2434_v40  ;;  %v3017_v26 = vmul.f32 %v3001_v36, %v3001_v36  ;;  %v3004_v20 = vsub.f32 %v5974_v37, %v6078_v57  ;;  %v3018_v52 = vmul.f32 %v3002_v54, %v3002_v54 }
 0x3b0   : > { %v3029_v56 = vadd.f32 %v3028_v63, %v3014_v61  ;;  %2439 = vst.msk [vmem:[%s4610_s22] sm:$0xff] %vm2438_vm2, %v2436_v2  ;;  %v3005_v29 = vsub.f32 %v6431_v31, %v6078_v57  ;;  %v3019_v22 = vmul.f32 %v3003_v41, %v3003_v41  ;;  %v3006_v55 = vsub.f32 %v5964_v25, %v6078_v57 }
 0x3b1   : > { %v3020_v17 = vmul.f32 %v3004_v20, %v3004_v20  ;;  %v3007_v1 = vsub.f32 %v5983_v42, %v6078_v57 }
 0x3b2   : > { %v3030_v43 = vadd.f32 %v3029_v56, %v3015_v10  ;;  %v3021_v50 = vmul.f32 %v3005_v29, %v3005_v29  ;;  %v3022_v12 = vmul.f32 %v3006_v55, %v3006_v55 }
 0x3b3   : > { %v3023_v37 = vmul.f32 %v3007_v1, %v3007_v1 }
 0x3b4   : > { %v3031_v35 = vadd.f32 %v3030_v43, %v3016_v38 }
 0x3b6   : > { %v3032_v34 = vadd.f32 %v3031_v35, %v3017_v26 }
 0x3b8   : > { %v3033_v30 = vadd.f32 %v3032_v34, %v3018_v52 }
 0x3ba   : > { %v3034_v33 = vadd.f32 %v3033_v30, %v3019_v22 }
 0x3bc   : > { %v3035_v27 = vadd.f32 %v3034_v33, %v3020_v17 }
 0x3be   : > { %v3036_v62 = vadd.f32 %v3035_v27, %v3021_v50 }
 0x3c0   : > { %v3037_v7 = vadd.f32 %v3036_v62, %v3022_v12 }
 0x3c2   : > { %v3038_v6 = vadd.f32 %v3037_v7, %v3023_v37 }
 0x3c4   : > { %v3039_v21 = vrot.slane %v3038_v6, 4 }
 0x3c6   : > { %v3040_v0 = vadd.f32 %v3039_v21, %v3038_v6 }
 0x3c8   : > { %v3041_v39 = vrot.slane %v3040_v0, 2 }
 0x3ca   : > { %v3042_v16 = vadd.f32 %v3041_v39, %v3040_v0  ;;  %3050 = sbr.rel (%p3536_p5) target bundleno = 977 (0x3d1), region = 76 }
 0x3cc   : > { %v3043_v8 = vrot.slane %v3042_v16, 1 }
 0x3ce   : > { %v3044_v23 = vadd.f32 %v3043_v8, %v3042_v16 }
 0x3cf   : > { %3051 = vst [vmem:[#allocation4] sm:$0x1] %v6078_v57 }
 0x3d0   : > { %3052 = vst [vmem:[#allocation5] sm:$0x1] %v3044_v23 }
 0x3d1 PF: > { %p3537_p8 = scmp.le.s32.totalorder %s5884_s8, 0 }
 0x3d2   : > { %s3057_s21 = scvt.s32.f32 (!%p3537_p8), %s5884_s8 }
 0x3d3   : > { %3056 = sbr.rel (%p3537_p8) target bundleno = 1058 (0x422), region = 80 }
 0x3d4   : > { %s3058_s23 = smul.f32 (!%p3537_p8), 128.0, %s3057_s21 }
 0x3d6   : > { %s3059_s1 = sadd.f32 (!%p3537_p8), 128.0, %s3058_s23  ;;  %s3073_s2 = smul.f32 (!%p3537_p8), 128.0, %s3058_s23 }
 0x3d8   : > { %v3062_v25 = vstv %s3059_s1  ;;  %v3060_v5 = vld [vmem:[#allocation4] sm:$0x1]  ;;  %v3070_v58 = vld [vmem:[#allocation5] sm:$0x1] }
 0x3d9   : > { %4068 = vrcp.f32 %v3062_v25  ;;  %v3061_v14 = vsub.f32 %v6078_v57, %v3060_v5  ;;  %v3071_v53 = vadd.f32 %v3070_v58, %v3044_v23 }
 0x3db   : > { %v3072_v46 = vmul.f32 %v3061_v14, %v3061_v14 }
 0x3e6   : > { %v4069_v42 = vpop.eup %4068 }
 0x3e7   : > { %3809 = vpush %v4069_v42 }
 0x418   : > { %s3810_s29 = spop %3809 }
 0x419   : > { %s3065_s18 = smul.f32 128.0, %s3810_s29 }
 0x41a   : > { %s3077_s10 = smul.f32 %s3810_s29, %s3073_s2 }
 0x41b   : > { %v3066_v45 = vstv %s3065_s18 }
 0x41c   : > { %v3067_v51 = vmul.f32 %v3066_v45, %v3061_v14  ;;  %v3078_v47 = vstv %s3077_s10 }
 0x41d   : > { %v3079_v32 = vmul.f32 %v3078_v47, %v3072_v46 }
 0x41e   : > { %v3068_v48 = vadd.f32 %v3067_v51, %v3060_v5 }
 0x41f   : > { %v3080_v4 = vadd.f32 %v3079_v32, %v3071_v53 }
 0x420   : > { %3069 = vst [vmem:[#allocation4] sm:$0x1] %v3068_v48 }
 0x421   : > { %3081 = vst [vmem:[#allocation5] sm:$0x1] %v3080_v4 }
 0x422 PF: > { %p3538_p4 = scmp.ne.s32.totalorder %s5884_s8, 3 }
 0x423   : > { %s6432_s4 = sld [smem:[#allocation63_spill]] (!%p3538_p4) }
 0x424   : > { %3085 = sbr.rel (%p3538_p4) target bundleno = 1091 (0x443), region = 84  ;;  %s6433_s19 = sld [smem:[#allocation64_spill]] (!%p3538_p4) }
 0x429   : > { %v3086_v57 = vld [vmem:[#allocation5] sm:$0x1]  ;;  %v3088_v9 = vld [vmem:[%s6432_s4] sm:$0x1]  ;;  %v3094_v28 = vld [vmem:[#allocation4] sm:$0x1] }
 0x42a   : > { %v3087_v13 = vmul.f32 0.001953125, %v3086_v57  ;;  %v3093_v40 = vld [vmem:[%s6433_s19] sm:$0x1] }
 0x42c   : > { %v3089_v44 = vadd.f32 1e-05, %v3087_v13 }
 0x42e   : > { %4070 = vrsqrt.f32 %v3089_v44 }
 0x43b   : > { %v4071_v3 = vpop.eup %4070 }
 0x43c   : > { %v3091_v18 = vmul.f32 %v4071_v3, %v3088_v9 }
 0x43e   : > { %3092 = vst [vmem:[#allocation16] sm:$0x1] %v3091_v18  ;;  %v3095_v19 = vmul.f32 %v3094_v28, %v3091_v18 }
 0x440   : > { %v3096_v11 = vsub.f32 %v3093_v40, %v3095_v19 }
 0x442   : > { %3097 = vst [vmem:[#allocation16 + $0x1] sm:$0x1] %v3096_v11 }
 0x443 PF: > { %s6434_s28 = sld [smem:[#allocation24_spill]]  ;;  %s3103_s21 = sand.u32 1, %s4457_s17  }
 0x444   : > { %s3546_s23 = sshll.u32 %s5884_s8, 7  ;;  %s6435_s29 = sld [smem:[#allocation66_spill]] }
 0x445   : > { %s3138_s7 = sshll.u32 %s4610_s22, 4  ;;  %s3698_s25 = sshll.u32 %s4318_s3, 4  ;;  %s3139_s7 = int_to_ptr.vmem [resolvable:$true] %s3138_s7 }
 0x446   : > { %s3104_s27 = scalar_lea.sflag [#allocation15], %s3103_s21  ;;  %s4152_s26 = scalar_lea.vmem %s3139_s7, 128 }
 0x447   : > { %p4153_p1 = scmp.ne.s32.totalorder %s3139_s7, %s4152_s26  ;;  %s4350_s19 = smov [#allocation14]  }
 0x448   : > { %s4156_s0 = sshll.u32 %s4350_s19, 4  ;;  %s4157_s0 = int_to_ptr.vmem [resolvable:$false] %s4156_s0 }
 0x449   : > { %p6437_p7 = scmp.ne.s32.totalorder %s6434_s28, 0  ;;  %s4158_s4 = scalar_lea.vmem %s4157_s0, 256 }
 0x44a   : > { %s6436_s18 = smov %s6435_s29  ;;  %s6174_s10 = scalar_lea.hbm %s6435_s29, %s3546_s23 }
 0x44b   : > { %p4154_p9 = pnand %p4153_p1, %p6437_p7  ;;  %p4159_p0 = scmp.lt.s32.totalorder %s3139_s7, %s4157_s0 }
 0x44c   : > { %p4160_p6 = scmp.lt.s32.totalorder %s4158_s4, %s4152_s26 }
 0x44d   : > { %p4155_p13 = pneg %p4154_p9 }
 0x44e   : > { %p4161_p10 = por %p4160_p6, %p4159_p0 }
 0x450   : > { %p4162_p3 = pnand %p4161_p10, %p4155_p13 }
 0x452   : > { %4165 = shalt.err (!%p4162_p3)
}
 0x453   : > { %s4166_s3 = scalar_lea.hbm %s6174_s10, 128  ;;  %s4170_s21 = scalar_lea.hbm %s6436_s18, 512 }
 0x454   : > { %p4167_p11 = scmp.ne.s32.totalorder %s6174_s10, %s4166_s3  ;;  %p4171_p5 = scmp.lt.s32.totalorder %s6174_s10, %s6436_s18 }
 0x455   : > { %p4172_p8 = scmp.lt.s32.totalorder %s4170_s21, %s4166_s3 }
 0x456   : > { %p4168_p12 = pnand %p4167_p11, %p6437_p7 }
 0x457   : > { %p4173_p4 = por %p4172_p8, %p4171_p5 }
 0x458   : > { %p4169_p2 = pneg %p4168_p12 }
 0x45a   : > { %p4174_p1 = pnand %p4173_p4, %p4169_p2 }
 0x45c   : > { %4177 = shalt.err (!%p4174_p1)
}
 0x45d   : > { %3822 = dma.vmem_to_hbm [thread:$0]  (%p6437_p7), %s3139_s7, 128, %s6174_s10, %s3104_s27  }
 0x45e   : > { %s3543_s0 = sshll.u32 %s4322_s13, 5  ;;  %s3120_s4 = sshll.u32 %s4608_s20, 4  ;;  %s6196_s4 = int_to_ptr.vmem [resolvable:$true] %s3120_s4 }
 0x45f   : > { %s3117_s2 = sadd.s32 %s3698_s25, %s3543_s0  ;;  %s6438_s3 = sld [smem:[#allocation65_spill]] }
 0x460   : > { %s3544_s29 = sshll.u32 %s3117_s2, 7  ;;  %s3099_s21 = scalar_lea.sflag [#allocation9], %s4583_s5 }
 0x461   : > { %s4178_s23 = scalar_lea.vmem %s6196_s4, 2048  ;;  %s4351_s13 = smov [#allocation13]  }
 0x462   : > { %p4179_p9 = scmp.ne.s32.totalorder %s6196_s4, %s4178_s23  ;;  %s4182_s20 = sshll.u32 %s4351_s13, 4  ;;  %s4183_s20 = int_to_ptr.vmem [resolvable:$false] %s4182_s20 }
 0x463   : > { %s4184_s10 = scalar_lea.vmem %s4183_s20, 4096  ;;  %p4185_p6 = scmp.lt.s32.totalorder %s6196_s4, %s4183_s20 }
 0x464   : > { %p4180_p13 = pnand %p4179_p9, %p6437_p7  ;;  %p4186_p10 = scmp.lt.s32.totalorder %s4184_s10, %s4178_s23 }
 0x465   : > { %s6439_s22 = smov %s6438_s3  ;;  %s6201_s8 = scalar_lea.hbm %s6438_s3, %s3544_s29 }
 0x466   : > { %p4181_p0 = pneg %p4180_p13  ;;  %p4187_p3 = por %p4186_p10, %p4185_p6 }
 0x468   : > { %p4188_p11 = pnand %p4187_p3, %p4181_p0 }
 0x46a   : > { %4191 = shalt.err (!%p4188_p11)
}
 0x46b   : > { %s4192_s7 = scalar_lea.hbm %s6201_s8, 2048  ;;  %s4196_s1 = scalar_lea.hbm %s6439_s22, 8192 }
 0x46c   : > { %p4193_p12 = scmp.ne.s32.totalorder %s6201_s8, %s4192_s7  ;;  %p4197_p8 = scmp.lt.s32.totalorder %s6201_s8, %s6439_s22 }
 0x46d   : > { %p4198_p4 = scmp.lt.s32.totalorder %s4196_s1, %s4192_s7 }
 0x46e   : > { %p4194_p2 = pnand %p4193_p12, %p6437_p7 }
 0x46f   : > { %p4199_p1 = por %p4198_p4, %p4197_p8 }
 0x470   : > { %p4195_p5 = pneg %p4194_p2 }
 0x472   : > { %p4200_p9 = pnand %p4199_p1, %p4195_p5 }
 0x474   : > { %4203 = shalt.err (!%p4200_p9)
}
 0x475   : > { %s4352_s29 = smov 128   ;;  %s4353_s26 = smov 8  }
 0x476   : > { %3821 = dma.vmem_to_hbm [thread:$0]  (%p6437_p7), %s6196_s4, 2048, %s6201_s8, %s3099_s21, %s4352_s29, %s4352_s29, %s4353_s26  }
 0x477   : > { %s4354_s19 = smov [#allocation16]   ;;  %p6440_p0 = scmp.eq.s32.totalorder %s4457_s17, 3 }
 0x478   : > { %s3149_s3 = sshll.u32 %s4354_s19, 4  ;;  %s3150_s3 = int_to_ptr.vmem [resolvable:$true] %s3149_s3 }
 0x479   : > { %s4204_s23 = scalar_lea.vmem %s3150_s3, 32  ;;  %p4211_p3 = scmp.lt.s32.totalorder %s3150_s3, %s3150_s3 }
 0x47a   : > { %p4205_p13 = scmp.ne.s32.totalorder %s3150_s3, %s4204_s23  ;;  %p4212_p11 = scmp.lt.s32.totalorder %s4204_s23, %s4204_s23 }
 0x47c   : > { %p4206_p6 = pnand %p4205_p13, %p6440_p0  ;;  %p4213_p12 = por %p4212_p11, %p4211_p3 }
 0x47e   : > { %p4207_p10 = pneg %p4206_p6 }
 0x480   : > { %p4214_p2 = pnand %p4213_p12, %p4207_p10 }
 0x482   : > { %4217 = shalt.err (!%p4214_p2)
}
 0x483   : > { %p6441_p5 = pmov %p6440_p0  ;;  %s6442_s28 = sld [smem:[#allocation67_spill]] }
 0x484   : > { %p6443_p7 = pmov %p6440_p0 }
 0x489   : > { %3824 = dma.vmem_to_hbm [thread:$0]  (%p6441_p5), %s3150_s3, 32, %s6442_s28, [#allocation15]  }
 0x48a   : > { %4281 = dma.done.wait (%p6443_p7), [#allocation15], 32   ;;  %p6444_p8 = pmov %p6440_p0 }
 0x48c   : > { %4283 = vsyncadd (%p6444_p8), [#allocation15], 4294967264 }
 0x48d PF: > { %s6445_s5 = sld [smem:[#allocation22_spill]]  ;;  %p3854_p4 = scmp.ge.s32.totalorder %s4334_s16, 2 }
 0x48e   : > { %s6446_s4 = sld [smem:[#allocation25_spill]] }
 0x493   : > { %s3165_s8 = sand.u32 1, %s6445_s5  }
 0x494   : > { %p6447_p1 = scmp.ne.s32.totalorder %s6446_s4, 0  ;;  %s3166_s21 = scalar_lea.sflag [#allocation9], %s3165_s8 }
 0x496   : > { %p3841_p9 = pnand %p3854_p4, %p6447_p1 }
 0x498   : > { %p3842_p13 = pneg %p3841_p9 }
 0x49a   : > { %4285 = dma.done.wait (%p3842_p13), %s3166_s21, 2048  }
 0x49b   : > { %4287 = vsyncadd (%p3842_p13), %s3166_s21, 4294965248  ;;  %s6448_s10 = sadd.s32 4294967294, %s4334_s16  }
 0x49c   : > { %s3174_s7 = sand.u32 1, %s6448_s10  }
 0x49d   : > { %s3175_s25 = scalar_lea.sflag [#allocation15], %s3174_s7 }
 0x49e   : > { %4289 = dma.done.wait (%p3842_p13), %s3175_s25, 128  }
 0x49f   : > { %4291 = vsyncadd (%p3842_p13), %s3175_s25, 4294967168  ;;  %s31_s16 = sadd.s32 1, %s4334_s16   ;;  %s6449_s3 = sld [smem:[#allocation23_spill]] }
 0x4a0   : > { %p28_p0 = scmp.ge.s32.totalorder %s31_s16, 6   ;;  %s6450_s17 = sld [smem:[#allocation26_spill]] }
 0x4a1   : > { %s6451_s29 = smov %s4298_s30  ;;  %s6452_s30 = smov %s4302_s9 }
 0x4a2   : > { %s6453_s9 = smov %s4552_s14  ;;  %s6454_s10 = smov %s4310_s11 }
 0x4a3   : > { %s6455_s11 = smov %s4314_s12  ;;  %s6456_s12 = smov %s4547_s6 }
 0x4a4   : > { %s6457_s13 = smov %s4330_s15  ;;  %s6459_s15 = smov %s6465_s24 }
 0x4a5   :  { %30 = sbr.rel (!%p28_p0) target bundleno = 21 (0x15), region = 157 }
 0x4a6   : > { %s6458_s14 = smov %s6450_s17 }
 0x4aa   :  { %3180 = vsyncpa [#allocation8], 1 }
 0x4ab   :  { %3182 = vsyncpa [#allocation8 + $0x1], 1 }
 0x4ac   :  { %3183 = vsyncpa [#allocation11], 1 }
 0x4ad   :  { %3184 = vsyncpa [#allocation9], 1 }
 0x4ae   :  { %3186 = vsyncpa [#allocation9 + $0x1], 1 }
 0x4af   :  { %3187 = vsyncpa [#allocation15], 1 }
 0x4b0   :  { %3189 = vsyncpa [#allocation15 + $0x1], 1 }

</bundles_post_ra>
